<compile_context>
chip_gen: v7x
topology: tpu7x:2x2x1
jax: 0.10.0
libtpu: 0.0.40
codegen_flags: <defaults>
</compile_context>

<pallas_src>
import numpy as np
import jax
import jax.numpy as jnp
from jax.experimental import pallas as pl
from jax.experimental.pallas import tpu as pltpu


# ---------------------------------------------------------------------------
# Pallas kernel: one batch image per grid step, full H/W/channels in VMEM.
# ---------------------------------------------------------------------------
def csp_kernel(x_ref, w1_ref, s1_ref, b1_ref,
               wm1_ref, sm1_ref, bm1_ref,
               wm2_ref, sm2_ref, bm2_ref,
               w3_ref, w2_ref,
               sbn_ref, bbn_ref,
               w4_ref, s4_ref, b4_ref,
               o_ref, pad_ref):
    _, H, W, C1 = x_ref.shape
    C_ = w1_ref.shape[1]
    C2 = w4_ref.shape[1]

    def silu(v):
        return v * jax.nn.sigmoid(v)

    x = x_ref[0].astype(jnp.float32).reshape(H * W, C1)

    # ---- cv1: 1x1 conv + folded BN + SiLU ----
    a = jnp.dot(x, w1_ref[...], preferred_element_type=jnp.float32)
    a = silu(a * s1_ref[...] + b1_ref[...])                     # (H*W, C_)

    # ---- Bottleneck.cv1: 1x1 conv + BN + SiLU ----
    b = jnp.dot(a, wm1_ref[...], preferred_element_type=jnp.float32)
    b = silu(b * sm1_ref[...] + bm1_ref[...])                   # (H*W, C_)

    # ---- Bottleneck.cv2: 3x3 conv (stride 1, zero pad 1) + BN + SiLU ----
    # zero-padded scratch, then 9 shifted channel-matmuls accumulated in f32
    pad_ref[...] = jnp.zeros(pad_ref.shape, jnp.float32)
    pad_ref[1:1 + H, 1:1 + W, :] = b.reshape(H, W, C_)
    acc = jnp.zeros((H * W, C_), jnp.float32)
    for kh in range(3):
        for kw in range(3):
            patch = pad_ref[kh:kh + H, kw:kw + W, :].reshape(H * W, C_)
            acc = acc + jnp.dot(patch, wm2_ref[kh * 3 + kw],
                                preferred_element_type=jnp.float32)
    c = silu(acc * sm2_ref[...] + bm2_ref[...])

    # ---- shortcut add ----
    m_out = a + c                                               # (H*W, C_)

    # ---- y1 = cv3(m_out), y2 = cv2(x)  (plain 1x1 convs, no BN / act) ----
    y1 = jnp.dot(m_out, w3_ref[...], preferred_element_type=jnp.float32)
    y2 = jnp.dot(x, w2_ref[...], preferred_element_type=jnp.float32)

    # ---- BN over the (virtual) concat + LeakyReLU(0.1), applied per block ----
    z1 = y1 * sbn_ref[:, :C_] + bbn_ref[:, :C_]
    z2 = y2 * sbn_ref[:, C_:] + bbn_ref[:, C_:]
    z1 = jnp.where(z1 >= 0, z1, 0.1 * z1)
    z2 = jnp.where(z2 >= 0, z2, 0.1 * z2)

    # ---- cv4: split-weight matmul (avoids materializing the concat) + BN + SiLU ----
    o = (jnp.dot(z1, w4_ref[:C_, :], preferred_element_type=jnp.float32)
         + jnp.dot(z2, w4_ref[C_:, :], preferred_element_type=jnp.float32))
    o = silu(o * s4_ref[...] + b4_ref[...])

    o_ref[0] = o.reshape(H, W, C2).astype(o_ref.dtype)


# ---------------------------------------------------------------------------
# Wrapper
# ---------------------------------------------------------------------------
def csp_pallas(x_nhwc, w1, s1, b1, wm1, sm1, bm1, wm2, sm2, bm2,
               w3, w2, sbn, bbn, w4, s4, b4):
    N, H, W, C1 = x_nhwc.shape
    C_ = w1.shape[1]
    C2 = w4.shape[1]

    def full_spec(shape):
        nd = len(shape)
        return pl.BlockSpec(shape, lambda n, _nd=nd: (0,) * _nd)

    in_specs = [
        pl.BlockSpec((1, H, W, C1), lambda n: (n, 0, 0, 0)),     # x
        full_spec(w1.shape), full_spec(s1.shape), full_spec(b1.shape),
        full_spec(wm1.shape), full_spec(sm1.shape), full_spec(bm1.shape),
        full_spec(wm2.shape), full_spec(sm2.shape), full_spec(bm2.shape),
        full_spec(w3.shape), full_spec(w2.shape),
        full_spec(sbn.shape), full_spec(bbn.shape),
        full_spec(w4.shape), full_spec(s4.shape), full_spec(b4.shape),
    ]

    grid_spec = pltpu.PrefetchScalarGridSpec(
        num_scalar_prefetch=0,
        grid=(N,),
        in_specs=in_specs,
        out_specs=pl.BlockSpec((1, H, W, C2), lambda n: (n, 0, 0, 0)),
        scratch_shapes=[pltpu.VMEM((H + 2, W + 2, C_), jnp.float32)],
    )

    return pl.pallas_call(
        csp_kernel,
        out_shape=jax.ShapeDtypeStruct((N, H, W, C2), jnp.float32),
        grid_spec=grid_spec,
        compiler_params=pltpu.CompilerParams(
            dimension_semantics=("parallel",),
            vmem_limit_bytes=32 * 1024 * 1024,
        ),
    )(x_nhwc, w1, s1, b1, wm1, sm1, bm1, wm2, sm2, bm2,
      w3, w2, sbn, bbn, w4, s4, b4)


# ---------------------------------------------------------------------------
# Pure-JAX reference (for correctness check only)
# ---------------------------------------------------------------------------
def csp_ref(x, w1, s1, b1, wm1, sm1, bm1, wm2_hwio, sm2, bm2,
            w3, w2, sbn, bbn, w4, s4, b4):
    silu = lambda v: v * jax.nn.sigmoid(v)
    a = silu(jnp.einsum('nhwc,cd->nhwd', x, w1) * s1[0] + b1[0])
    bb = silu(jnp.einsum('nhwc,cd->nhwd', a, wm1) * sm1[0] + bm1[0])
    conv = jax.lax.conv_general_dilated(
        bb, wm2_hwio, window_strides=(1, 1), padding='SAME',
        dimension_numbers=('NHWC', 'HWIO', 'NHWC'))
    cc = silu(conv * sm2[0] + bm2[0])
    m_out = a + cc
    y1 = jnp.einsum('nhwc,cd->nhwd', m_out, w3)
    y2 = jnp.einsum('nhwc,cd->nhwd', x, w2)
    cat = jnp.concatenate([y1, y2], axis=-1)
    z = cat * sbn[0] + bbn[0]
    z = jnp.where(z >= 0, z, 0.1 * z)
    o = jnp.einsum('nhwc,cd->nhwd', z, w4)
    return silu(o * s4[0] + b4[0])


def fold_bn(gamma, beta, mean, var, eps=1e-5):
    scale = gamma / jnp.sqrt(var + eps)
    bias = beta - mean * scale
    return scale[None, :], bias[None, :]       # (1, C) for in-kernel broadcast


if __name__ == "__main__":
    # BottleneckCSP(c1=4, c2=8, n=1, shortcut=True, g=1, e=0.5) -> c_ = 4
    N, C1, H, W = 2, 4, 16, 16
    C2 = 8
    C_ = int(C2 * 0.5)                          # 4

    key = jax.random.PRNGKey(0)
    keys = list(jax.random.split(key, 40))
    _ctr = [0]

    def nxt():
        k = keys[_ctr[0]]
        _ctr[0] += 1
        return k

    def nrm(shape, scale=0.2):
        return scale * jax.random.normal(nxt(), shape, dtype=jnp.float32)

    def bn_params(c):
        g = 0.5 + jax.random.uniform(nxt(), (c,), dtype=jnp.float32)
        be = 0.1 * jax.random.normal(nxt(), (c,), dtype=jnp.float32)
        m = 0.1 * jax.random.normal(nxt(), (c,), dtype=jnp.float32)
        v = 0.5 + jax.random.uniform(nxt(), (c,), dtype=jnp.float32)
        return fold_bn(g, be, m, v)

    # input: PyTorch NCHW -> NHWC for the kernel
    x_nchw = jax.random.normal(nxt(), (N, C1, H, W), dtype=jnp.float32)
    x_nhwc = jnp.transpose(x_nchw, (0, 2, 3, 1))

    # cv1: Conv(c1, c_, 1) ; torch weight (C_, C1, 1, 1) -> (C1, C_)
    w1_t = nrm((C_, C1, 1, 1))
    w1 = jnp.transpose(w1_t[:, :, 0, 0], (1, 0))
    s1, b1 = bn_params(C_)

    # m[0].cv1: Conv(c_, c_, 1)
    wm1_t = nrm((C_, C_, 1, 1))
    wm1 = jnp.transpose(wm1_t[:, :, 0, 0], (1, 0))
    sm1, bm1 = bn_params(C_)

    # m[0].cv2: Conv(c_, c_, 3, pad 1) ; torch OIHW -> HWIO -> (9, C_in, C_out)
    wm2_t = nrm((C_, C_, 3, 3))
    wm2_hwio = jnp.transpose(wm2_t, (2, 3, 1, 0))
    wm2 = wm2_hwio.reshape(9, C_, C_)
    sm2, bm2 = bn_params(C_)

    # cv3: plain Conv2d(c_, c_, 1) no bias / bn / act
    w3_t = nrm((C_, C_, 1, 1))
    w3 = jnp.transpose(w3_t[:, :, 0, 0], (1, 0))

    # cv2: plain Conv2d(c1, c_, 1) no bias / bn / act
    w2_t = nrm((C_, C1, 1, 1))
    w2 = jnp.transpose(w2_t[:, :, 0, 0], (1, 0))

    # bn over the concat (2*c_ channels), then LeakyReLU(0.1)
    sbn, bbn = bn_params(2 * C_)

    # cv4: Conv(2*c_, c2, 1) ; torch (C2, 2*C_, 1, 1) -> (2*C_, C2)
    w4_t = nrm((C2, 2 * C_, 1, 1))
    w4 = jnp.transpose(w4_t[:, :, 0, 0], (1, 0))
    s4, b4 = bn_params(C2)

    out = csp_pallas(x_nhwc, w1, s1, b1, wm1, sm1, bm1, wm2, sm2, bm2,
                     w3, w2, sbn, bbn, w4, s4, b4)
    out = jax.block_until_ready(out)

    ref = jax.block_until_ready(
        csp_ref(x_nhwc, w1, s1, b1, wm1, sm1, bm1, wm2_hwio, sm2, bm2,
                w3, w2, sbn, bbn, w4, s4, b4))

    np.testing.assert_allclose(np.asarray(out), np.asarray(ref),
                               rtol=1e-4, atol=1e-4)
    print("KERNEL_OK")
</pallas_src>

<mosaic_0001>
module attributes {stable_mosaic.version = 11 : i64} {
  func.func @csp_kernel(%arg0: i32, %arg1: memref<1x16x16x4xf32, #tpu.memory_space<vmem>>, %arg2: memref<4x4xf32, #tpu.memory_space<vmem>>, %arg3: memref<1x4xf32, #tpu.memory_space<vmem>>, %arg4: memref<1x4xf32, #tpu.memory_space<vmem>>, %arg5: memref<4x4xf32, #tpu.memory_space<vmem>>, %arg6: memref<1x4xf32, #tpu.memory_space<vmem>>, %arg7: memref<1x4xf32, #tpu.memory_space<vmem>>, %arg8: memref<9x4x4xf32, #tpu.memory_space<vmem>>, %arg9: memref<1x4xf32, #tpu.memory_space<vmem>>, %arg10: memref<1x4xf32, #tpu.memory_space<vmem>>, %arg11: memref<4x4xf32, #tpu.memory_space<vmem>>, %arg12: memref<4x4xf32, #tpu.memory_space<vmem>>, %arg13: memref<1x8xf32, #tpu.memory_space<vmem>>, %arg14: memref<1x8xf32, #tpu.memory_space<vmem>>, %arg15: memref<8x8xf32, #tpu.memory_space<vmem>>, %arg16: memref<1x8xf32, #tpu.memory_space<vmem>>, %arg17: memref<1x8xf32, #tpu.memory_space<vmem>>, %arg18: memref<1x16x16x8xf32, #tpu.memory_space<vmem>>, %arg19: memref<18x18x4xf32, #tpu.memory_space<vmem>>) attributes {dimension_semantics = [#tpu.dimension_semantics<parallel>], iteration_bounds = array<i64: 2>, scalar_prefetch = 0 : i64, scratch_operands = 1 : i64, tpu.core_type = #tpu.core_type<tc>, window_params = [{transform_indices = @transform_0, window_bounds = array<i64: 1, 16, 16, 4>}, {pipeline_mode = #tpu.pipeline_mode<synchronous>, transform_indices = @transform_1, window_bounds = array<i64: 4, 4>}, {pipeline_mode = #tpu.pipeline_mode<synchronous>, transform_indices = @transform_2, window_bounds = array<i64: 1, 4>}, {pipeline_mode = #tpu.pipeline_mode<synchronous>, transform_indices = @transform_3, window_bounds = array<i64: 1, 4>}, {pipeline_mode = #tpu.pipeline_mode<synchronous>, transform_indices = @transform_4, window_bounds = array<i64: 4, 4>}, {pipeline_mode = #tpu.pipeline_mode<synchronous>, transform_indices = @transform_5, window_bounds = array<i64: 1, 4>}, {pipeline_mode = #tpu.pipeline_mode<synchronous>, transform_indices = @transform_6, window_bounds = array<i64: 1, 4>}, {pipeline_mode = #tpu.pipeline_mode<synchronous>, transform_indices = @transform_7, window_bounds = array<i64: 9, 4, 4>}, {pipeline_mode = #tpu.pipeline_mode<synchronous>, transform_indices = @transform_8, window_bounds = array<i64: 1, 4>}, {pipeline_mode = #tpu.pipeline_mode<synchronous>, transform_indices = @transform_9, window_bounds = array<i64: 1, 4>}, {pipeline_mode = #tpu.pipeline_mode<synchronous>, transform_indices = @transform_10, window_bounds = array<i64: 4, 4>}, {pipeline_mode = #tpu.pipeline_mode<synchronous>, transform_indices = @transform_11, window_bounds = array<i64: 4, 4>}, {pipeline_mode = #tpu.pipeline_mode<synchronous>, transform_indices = @transform_12, window_bounds = array<i64: 1, 8>}, {pipeline_mode = #tpu.pipeline_mode<synchronous>, transform_indices = @transform_13, window_bounds = array<i64: 1, 8>}, {pipeline_mode = #tpu.pipeline_mode<synchronous>, transform_indices = @transform_14, window_bounds = array<i64: 8, 8>}, {pipeline_mode = #tpu.pipeline_mode<synchronous>, transform_indices = @transform_15, window_bounds = array<i64: 1, 8>}, {pipeline_mode = #tpu.pipeline_mode<synchronous>, transform_indices = @transform_16, window_bounds = array<i64: 1, 8>}, {transform_indices = @transform_17, window_bounds = array<i64: 1, 16, 16, 8>}]} {
    %c0 = arith.constant 0 : index
    %c0_0 = arith.constant 0 : index
    %c0_1 = arith.constant 0 : index
    %c0_2 = arith.constant 0 : index
    %0 = vector.load %arg1[%c0, %c0_0, %c0_1, %c0_2] : memref<1x16x16x4xf32, #tpu.memory_space<vmem>>, vector<1x16x16x4xf32>
    %1 = vector.shape_cast %0 : vector<1x16x16x4xf32> to vector<16x16x4xf32>
    %2 = vector.shape_cast %1 : vector<16x16x4xf32> to vector<256x4xf32>
    %c0_3 = arith.constant 0 : index
    %c0_4 = arith.constant 0 : index
    %3 = vector.load %arg2[%c0_3, %c0_4] : memref<4x4xf32, #tpu.memory_space<vmem>>, vector<4x4xf32>
    %cst = arith.constant dense<0.000000e+00> : vector<256x4xf32>
    %4 = tpu.matmul %2, %3, %cst {dimension_numbers = #tpu.dot_dimension_numbers<[1], [0], [0], [1], [0, 0, 1, 1], [], []>} : vector<256x4xf32>, vector<4x4xf32>, vector<256x4xf32> -> vector<256x4xf32>
    %c0_5 = arith.constant 0 : index
    %c0_6 = arith.constant 0 : index
    %5 = vector.load %arg3[%c0_5, %c0_6] : memref<1x4xf32, #tpu.memory_space<vmem>>, vector<1x4xf32>
    %6 = vector.broadcast %5 : vector<1x4xf32> to vector<256x4xf32>
    %7 = arith.mulf %4, %6 : vector<256x4xf32>
    %c0_7 = arith.constant 0 : index
    %c0_8 = arith.constant 0 : index
    %8 = vector.load %arg4[%c0_7, %c0_8] : memref<1x4xf32, #tpu.memory_space<vmem>>, vector<1x4xf32>
    %9 = vector.broadcast %8 : vector<1x4xf32> to vector<256x4xf32>
    %10 = arith.addf %7, %9 : vector<256x4xf32>
    %11 = arith.negf %10 : vector<256x4xf32>
    %12 = math.exp %11 : vector<256x4xf32>
    %cst_9 = arith.constant 1.000000e+00 : f32
    %13 = vector.broadcast %cst_9 : f32 to vector<256x4xf32>
    %14 = arith.addf %13, %12 : vector<256x4xf32>
    %15 = arith.divf %13, %14 : vector<256x4xf32>
    %16 = arith.mulf %10, %15 : vector<256x4xf32>
    %c0_10 = arith.constant 0 : index
    %c0_11 = arith.constant 0 : index
    %17 = vector.load %arg5[%c0_10, %c0_11] : memref<4x4xf32, #tpu.memory_space<vmem>>, vector<4x4xf32>
    %cst_12 = arith.constant dense<0.000000e+00> : vector<256x4xf32>
    %18 = tpu.matmul %16, %17, %cst_12 {dimension_numbers = #tpu.dot_dimension_numbers<[1], [0], [0], [1], [0, 0, 1, 1], [], []>} : vector<256x4xf32>, vector<4x4xf32>, vector<256x4xf32> -> vector<256x4xf32>
    %c0_13 = arith.constant 0 : index
    %c0_14 = arith.constant 0 : index
    %19 = vector.load %arg6[%c0_13, %c0_14] : memref<1x4xf32, #tpu.memory_space<vmem>>, vector<1x4xf32>
    %20 = vector.broadcast %19 : vector<1x4xf32> to vector<256x4xf32>
    %21 = arith.mulf %18, %20 : vector<256x4xf32>
    %c0_15 = arith.constant 0 : index
    %c0_16 = arith.constant 0 : index
    %22 = vector.load %arg7[%c0_15, %c0_16] : memref<1x4xf32, #tpu.memory_space<vmem>>, vector<1x4xf32>
    %23 = vector.broadcast %22 : vector<1x4xf32> to vector<256x4xf32>
    %24 = arith.addf %21, %23 : vector<256x4xf32>
    %25 = arith.negf %24 : vector<256x4xf32>
    %26 = math.exp %25 : vector<256x4xf32>
    %cst_17 = arith.constant 1.000000e+00 : f32
    %27 = vector.broadcast %cst_17 : f32 to vector<256x4xf32>
    %28 = arith.addf %27, %26 : vector<256x4xf32>
    %29 = arith.divf %27, %28 : vector<256x4xf32>
    %30 = arith.mulf %24, %29 : vector<256x4xf32>
    %cst_18 = arith.constant 0.000000e+00 : f32
    %31 = vector.broadcast %cst_18 : f32 to vector<18x18x4xf32>
    %c0_19 = arith.constant 0 : index
    %c0_20 = arith.constant 0 : index
    %c0_21 = arith.constant 0 : index
    %32 = vector.load %arg19[%c0_19, %c0_20, %c0_21] : memref<18x18x4xf32, #tpu.memory_space<vmem>>, vector<18x18x4xf32>
    tpu.vector_store %arg19[%c0_19, %c0_20, %c0_21], %31 {strides = array<i32>} : memref<18x18x4xf32, #tpu.memory_space<vmem>>, vector<18x18x4xf32>,
    %33 = vector.shape_cast %30 : vector<256x4xf32> to vector<16x16x4xf32>
    %c1 = arith.constant 1 : index
    %c1_22 = arith.constant 1 : index
    %c0_23 = arith.constant 0 : index
    %34 = vector.load %arg19[%c1, %c1_22, %c0_23] : memref<18x18x4xf32, #tpu.memory_space<vmem>>, vector<16x16x4xf32>
    tpu.vector_store %arg19[%c1, %c1_22, %c0_23], %33 {strides = array<i32>} : memref<18x18x4xf32, #tpu.memory_space<vmem>>, vector<16x16x4xf32>,
    %cst_24 = arith.constant 0.000000e+00 : f32
    %35 = vector.broadcast %cst_24 : f32 to vector<256x4xf32>
    %c0_25 = arith.constant 0 : index
    %c0_26 = arith.constant 0 : index
    %c0_27 = arith.constant 0 : index
    %36 = vector.load %arg19[%c0_25, %c0_26, %c0_27] : memref<18x18x4xf32, #tpu.memory_space<vmem>>, vector<16x16x4xf32>
    %37 = vector.shape_cast %36 : vector<16x16x4xf32> to vector<256x4xf32>
    %c0_28 = arith.constant 0 : index
    %c0_29 = arith.constant 0 : index
    %c0_30 = arith.constant 0 : index
    %38 = vector.load %arg8[%c0_28, %c0_29, %c0_30] : memref<9x4x4xf32, #tpu.memory_space<vmem>>, vector<1x4x4xf32>
    %39 = vector.shape_cast %38 : vector<1x4x4xf32> to vector<4x4xf32>
    %cst_31 = arith.constant dense<0.000000e+00> : vector<256x4xf32>
    %40 = tpu.matmul %37, %39, %cst_31 {dimension_numbers = #tpu.dot_dimension_numbers<[1], [0], [0], [1], [0, 0, 1, 1], [], []>} : vector<256x4xf32>, vector<4x4xf32>, vector<256x4xf32> -> vector<256x4xf32>
    %41 = arith.addf %35, %40 : vector<256x4xf32>
    %c0_32 = arith.constant 0 : index
    %c1_33 = arith.constant 1 : index
    %c0_34 = arith.constant 0 : index
    %42 = vector.load %arg19[%c0_32, %c1_33, %c0_34] : memref<18x18x4xf32, #tpu.memory_space<vmem>>, vector<16x16x4xf32>
    %43 = vector.shape_cast %42 : vector<16x16x4xf32> to vector<256x4xf32>
    %c1_35 = arith.constant 1 : index
    %c0_36 = arith.constant 0 : index
    %c0_37 = arith.constant 0 : index
    %44 = vector.load %arg8[%c1_35, %c0_36, %c0_37] : memref<9x4x4xf32, #tpu.memory_space<vmem>>, vector<1x4x4xf32>
    %45 = vector.shape_cast %44 : vector<1x4x4xf32> to vector<4x4xf32>
    %cst_38 = arith.constant dense<0.000000e+00> : vector<256x4xf32>
    %46 = tpu.matmul %43, %45, %cst_38 {dimension_numbers = #tpu.dot_dimension_numbers<[1], [0], [0], [1], [0, 0, 1, 1], [], []>} : vector<256x4xf32>, vector<4x4xf32>, vector<256x4xf32> -> vector<256x4xf32>
    %47 = arith.addf %41, %46 : vector<256x4xf32>
    %c0_39 = arith.constant 0 : index
    %c2 = arith.constant 2 : index
    %c0_40 = arith.constant 0 : index
    %48 = vector.load %arg19[%c0_39, %c2, %c0_40] : memref<18x18x4xf32, #tpu.memory_space<vmem>>, vector<16x16x4xf32>
    %49 = vector.shape_cast %48 : vector<16x16x4xf32> to vector<256x4xf32>
    %c2_41 = arith.constant 2 : index
    %c0_42 = arith.constant 0 : index
    %c0_43 = arith.constant 0 : index
    %50 = vector.load %arg8[%c2_41, %c0_42, %c0_43] : memref<9x4x4xf32, #tpu.memory_space<vmem>>, vector<1x4x4xf32>
    %51 = vector.shape_cast %50 : vector<1x4x4xf32> to vector<4x4xf32>
    %cst_44 = arith.constant dense<0.000000e+00> : vector<256x4xf32>
    %52 = tpu.matmul %49, %51, %cst_44 {dimension_numbers = #tpu.dot_dimension_numbers<[1], [0], [0], [1], [0, 0, 1, 1], [], []>} : vector<256x4xf32>, vector<4x4xf32>, vector<256x4xf32> -> vector<256x4xf32>
    %53 = arith.addf %47, %52 : vector<256x4xf32>
    %c1_45 = arith.constant 1 : index
    %c0_46 = arith.constant 0 : index
    %c0_47 = arith.constant 0 : index
    %54 = vector.load %arg19[%c1_45, %c0_46, %c0_47] : memref<18x18x4xf32, #tpu.memory_space<vmem>>, vector<16x16x4xf32>
    %55 = vector.shape_cast %54 : vector<16x16x4xf32> to vector<256x4xf32>
    %c3 = arith.constant 3 : index
    %c0_48 = arith.constant 0 : index
    %c0_49 = arith.constant 0 : index
    %56 = vector.load %arg8[%c3, %c0_48, %c0_49] : memref<9x4x4xf32, #tpu.memory_space<vmem>>, vector<1x4x4xf32>
    %57 = vector.shape_cast %56 : vector<1x4x4xf32> to vector<4x4xf32>
    %cst_50 = arith.constant dense<0.000000e+00> : vector<256x4xf32>
    %58 = tpu.matmul %55, %57, %cst_50 {dimension_numbers = #tpu.dot_dimension_numbers<[1], [0], [0], [1], [0, 0, 1, 1], [], []>} : vector<256x4xf32>, vector<4x4xf32>, vector<256x4xf32> -> vector<256x4xf32>
    %59 = arith.addf %53, %58 : vector<256x4xf32>
    %c1_51 = arith.constant 1 : index
    %c1_52 = arith.constant 1 : index
    %c0_53 = arith.constant 0 : index
    %60 = vector.load %arg19[%c1_51, %c1_52, %c0_53] : memref<18x18x4xf32, #tpu.memory_space<vmem>>, vector<16x16x4xf32>
    %61 = vector.shape_cast %60 : vector<16x16x4xf32> to vector<256x4xf32>
    %c4 = arith.constant 4 : index
    %c0_54 = arith.constant 0 : index
    %c0_55 = arith.constant 0 : index
    %62 = vector.load %arg8[%c4, %c0_54, %c0_55] : memref<9x4x4xf32, #tpu.memory_space<vmem>>, vector<1x4x4xf32>
    %63 = vector.shape_cast %62 : vector<1x4x4xf32> to vector<4x4xf32>
    %cst_56 = arith.constant dense<0.000000e+00> : vector<256x4xf32>
    %64 = tpu.matmul %61, %63, %cst_56 {dimension_numbers = #tpu.dot_dimension_numbers<[1], [0], [0], [1], [0, 0, 1, 1], [], []>} : vector<256x4xf32>, vector<4x4xf32>, vector<256x4xf32> -> vector<256x4xf32>
    %65 = arith.addf %59, %64 : vector<256x4xf32>
    %c1_57 = arith.constant 1 : index
    %c2_58 = arith.constant 2 : index
    %c0_59 = arith.constant 0 : index
    %66 = vector.load %arg19[%c1_57, %c2_58, %c0_59] : memref<18x18x4xf32, #tpu.memory_space<vmem>>, vector<16x16x4xf32>
    %67 = vector.shape_cast %66 : vector<16x16x4xf32> to vector<256x4xf32>
    %c5 = arith.constant 5 : index
    %c0_60 = arith.constant 0 : index
    %c0_61 = arith.constant 0 : index
    %68 = vector.load %arg8[%c5, %c0_60, %c0_61] : memref<9x4x4xf32, #tpu.memory_space<vmem>>, vector<1x4x4xf32>
    %69 = vector.shape_cast %68 : vector<1x4x4xf32> to vector<4x4xf32>
    %cst_62 = arith.constant dense<0.000000e+00> : vector<256x4xf32>
    %70 = tpu.matmul %67, %69, %cst_62 {dimension_numbers = #tpu.dot_dimension_numbers<[1], [0], [0], [1], [0, 0, 1, 1], [], []>} : vector<256x4xf32>, vector<4x4xf32>, vector<256x4xf32> -> vector<256x4xf32>
    %71 = arith.addf %65, %70 : vector<256x4xf32>
    %c2_63 = arith.constant 2 : index
    %c0_64 = arith.constant 0 : index
    %c0_65 = arith.constant 0 : index
    %72 = vector.load %arg19[%c2_63, %c0_64, %c0_65] : memref<18x18x4xf32, #tpu.memory_space<vmem>>, vector<16x16x4xf32>
    %73 = vector.shape_cast %72 : vector<16x16x4xf32> to vector<256x4xf32>
    %c6 = arith.constant 6 : index
    %c0_66 = arith.constant 0 : index
    %c0_67 = arith.constant 0 : index
    %74 = vector.load %arg8[%c6, %c0_66, %c0_67] : memref<9x4x4xf32, #tpu.memory_space<vmem>>, vector<1x4x4xf32>
    %75 = vector.shape_cast %74 : vector<1x4x4xf32> to vector<4x4xf32>
    %cst_68 = arith.constant dense<0.000000e+00> : vector<256x4xf32>
    %76 = tpu.matmul %73, %75, %cst_68 {dimension_numbers = #tpu.dot_dimension_numbers<[1], [0], [0], [1], [0, 0, 1, 1], [], []>} : vector<256x4xf32>, vector<4x4xf32>, vector<256x4xf32> -> vector<256x4xf32>
    %77 = arith.addf %71, %76 : vector<256x4xf32>
    %c2_69 = arith.constant 2 : index
    %c1_70 = arith.constant 1 : index
    %c0_71 = arith.constant 0 : index
    %78 = vector.load %arg19[%c2_69, %c1_70, %c0_71] : memref<18x18x4xf32, #tpu.memory_space<vmem>>, vector<16x16x4xf32>
    %79 = vector.shape_cast %78 : vector<16x16x4xf32> to vector<256x4xf32>
    %c7 = arith.constant 7 : index
    %c0_72 = arith.constant 0 : index
    %c0_73 = arith.constant 0 : index
    %80 = vector.load %arg8[%c7, %c0_72, %c0_73] : memref<9x4x4xf32, #tpu.memory_space<vmem>>, vector<1x4x4xf32>
    %81 = vector.shape_cast %80 : vector<1x4x4xf32> to vector<4x4xf32>
    %cst_74 = arith.constant dense<0.000000e+00> : vector<256x4xf32>
    %82 = tpu.matmul %79, %81, %cst_74 {dimension_numbers = #tpu.dot_dimension_numbers<[1], [0], [0], [1], [0, 0, 1, 1], [], []>} : vector<256x4xf32>, vector<4x4xf32>, vector<256x4xf32> -> vector<256x4xf32>
    %83 = arith.addf %77, %82 : vector<256x4xf32>
    %c2_75 = arith.constant 2 : index
    %c2_76 = arith.constant 2 : index
    %c0_77 = arith.constant 0 : index
    %84 = vector.load %arg19[%c2_75, %c2_76, %c0_77] : memref<18x18x4xf32, #tpu.memory_space<vmem>>, vector<16x16x4xf32>
    %85 = vector.shape_cast %84 : vector<16x16x4xf32> to vector<256x4xf32>
    %c8 = arith.constant 8 : index
    %c0_78 = arith.constant 0 : index
    %c0_79 = arith.constant 0 : index
    %86 = vector.load %arg8[%c8, %c0_78, %c0_79] : memref<9x4x4xf32, #tpu.memory_space<vmem>>, vector<1x4x4xf32>
    %87 = vector.shape_cast %86 : vector<1x4x4xf32> to vector<4x4xf32>
    %cst_80 = arith.constant dense<0.000000e+00> : vector<256x4xf32>
    %88 = tpu.matmul %85, %87, %cst_80 {dimension_numbers = #tpu.dot_dimension_numbers<[1], [0], [0], [1], [0, 0, 1, 1], [], []>} : vector<256x4xf32>, vector<4x4xf32>, vector<256x4xf32> -> vector<256x4xf32>
    %89 = arith.addf %83, %88 : vector<256x4xf32>
    %c0_81 = arith.constant 0 : index
    %c0_82 = arith.constant 0 : index
    %90 = vector.load %arg9[%c0_81, %c0_82] : memref<1x4xf32, #tpu.memory_space<vmem>>, vector<1x4xf32>
    %91 = vector.broadcast %90 : vector<1x4xf32> to vector<256x4xf32>
    %92 = arith.mulf %89, %91 : vector<256x4xf32>
    %c0_83 = arith.constant 0 : index
    %c0_84 = arith.constant 0 : index
    %93 = vector.load %arg10[%c0_83, %c0_84] : memref<1x4xf32, #tpu.memory_space<vmem>>, vector<1x4xf32>
    %94 = vector.broadcast %93 : vector<1x4xf32> to vector<256x4xf32>
    %95 = arith.addf %92, %94 : vector<256x4xf32>
    %96 = arith.negf %95 : vector<256x4xf32>
    %97 = math.exp %96 : vector<256x4xf32>
    %cst_85 = arith.constant 1.000000e+00 : f32
    %98 = vector.broadcast %cst_85 : f32 to vector<256x4xf32>
    %99 = arith.addf %98, %97 : vector<256x4xf32>
    %100 = arith.divf %98, %99 : vector<256x4xf32>
    %101 = arith.mulf %95, %100 : vector<256x4xf32>
    %102 = arith.addf %16, %101 : vector<256x4xf32>
    %c0_86 = arith.constant 0 : index
    %c0_87 = arith.constant 0 : index
    %103 = vector.load %arg11[%c0_86, %c0_87] : memref<4x4xf32, #tpu.memory_space<vmem>>, vector<4x4xf32>
    %cst_88 = arith.constant dense<0.000000e+00> : vector<256x4xf32>
    %104 = tpu.matmul %102, %103, %cst_88 {dimension_numbers = #tpu.dot_dimension_numbers<[1], [0], [0], [1], [0, 0, 1, 1], [], []>} : vector<256x4xf32>, vector<4x4xf32>, vector<256x4xf32> -> vector<256x4xf32>
    %c0_89 = arith.constant 0 : index
    %c0_90 = arith.constant 0 : index
    %105 = vector.load %arg12[%c0_89, %c0_90] : memref<4x4xf32, #tpu.memory_space<vmem>>, vector<4x4xf32>
    %cst_91 = arith.constant dense<0.000000e+00> : vector<256x4xf32>
    %106 = tpu.matmul %2, %105, %cst_91 {dimension_numbers = #tpu.dot_dimension_numbers<[1], [0], [0], [1], [0, 0, 1, 1], [], []>} : vector<256x4xf32>, vector<4x4xf32>, vector<256x4xf32> -> vector<256x4xf32>
    %c0_92 = arith.constant 0 : index
    %c0_93 = arith.constant 0 : index
    %107 = vector.load %arg13[%c0_92, %c0_93] : memref<1x8xf32, #tpu.memory_space<vmem>>, vector<1x4xf32>
    %108 = vector.broadcast %107 : vector<1x4xf32> to vector<256x4xf32>
    %109 = arith.mulf %104, %108 : vector<256x4xf32>
    %c0_94 = arith.constant 0 : index
    %c0_95 = arith.constant 0 : index
    %110 = vector.load %arg14[%c0_94, %c0_95] : memref<1x8xf32, #tpu.memory_space<vmem>>, vector<1x4xf32>
    %111 = vector.broadcast %110 : vector<1x4xf32> to vector<256x4xf32>
    %112 = arith.addf %109, %111 : vector<256x4xf32>
    %c0_96 = arith.constant 0 : index
    %c4_97 = arith.constant 4 : index
    %113 = vector.load %arg13[%c0_96, %c4_97] : memref<1x8xf32, #tpu.memory_space<vmem>>, vector<1x4xf32>
    %114 = vector.broadcast %113 : vector<1x4xf32> to vector<256x4xf32>
    %115 = arith.mulf %106, %114 : vector<256x4xf32>
    %c0_98 = arith.constant 0 : index
    %c4_99 = arith.constant 4 : index
    %116 = vector.load %arg14[%c0_98, %c4_99] : memref<1x8xf32, #tpu.memory_space<vmem>>, vector<1x4xf32>
    %117 = vector.broadcast %116 : vector<1x4xf32> to vector<256x4xf32>
    %118 = arith.addf %115, %117 : vector<256x4xf32>
    %cst_100 = arith.constant 0.000000e+00 : f32
    %119 = vector.broadcast %cst_100 : f32 to vector<256x4xf32>
    %120 = arith.cmpf oge, %112, %119 : vector<256x4xf32>
    %cst_101 = arith.constant 1.000000e-01 : f32
    %121 = vector.broadcast %cst_101 : f32 to vector<256x4xf32>
    %122 = arith.mulf %121, %112 : vector<256x4xf32>
    %123 = arith.select %120, %112, %122 : vector<256x4xi1>, vector<256x4xf32>
    %cst_102 = arith.constant 0.000000e+00 : f32
    %124 = vector.broadcast %cst_102 : f32 to vector<256x4xf32>
    %125 = arith.cmpf oge, %118, %124 : vector<256x4xf32>
    %cst_103 = arith.constant 1.000000e-01 : f32
    %126 = vector.broadcast %cst_103 : f32 to vector<256x4xf32>
    %127 = arith.mulf %126, %118 : vector<256x4xf32>
    %128 = arith.select %125, %118, %127 : vector<256x4xi1>, vector<256x4xf32>
    %c0_104 = arith.constant 0 : index
    %c0_105 = arith.constant 0 : index
    %129 = vector.load %arg15[%c0_104, %c0_105] : memref<8x8xf32, #tpu.memory_space<vmem>>, vector<4x8xf32>
    %cst_106 = arith.constant dense<0.000000e+00> : vector<256x8xf32>
    %130 = tpu.matmul %123, %129, %cst_106 {dimension_numbers = #tpu.dot_dimension_numbers<[1], [0], [0], [1], [0, 0, 1, 1], [], []>} : vector<256x4xf32>, vector<4x8xf32>, vector<256x8xf32> -> vector<256x8xf32>
    %c4_107 = arith.constant 4 : index
    %c0_108 = arith.constant 0 : index
    %131 = vector.load %arg15[%c4_107, %c0_108] : memref<8x8xf32, #tpu.memory_space<vmem>>, vector<4x8xf32>
    %cst_109 = arith.constant dense<0.000000e+00> : vector<256x8xf32>
    %132 = tpu.matmul %128, %131, %cst_109 {dimension_numbers = #tpu.dot_dimension_numbers<[1], [0], [0], [1], [0, 0, 1, 1], [], []>} : vector<256x4xf32>, vector<4x8xf32>, vector<256x8xf32> -> vector<256x8xf32>
    %133 = arith.addf %130, %132 : vector<256x8xf32>
    %c0_110 = arith.constant 0 : index
    %c0_111 = arith.constant 0 : index
    %134 = vector.load %arg16[%c0_110, %c0_111] : memref<1x8xf32, #tpu.memory_space<vmem>>, vector<1x8xf32>
    %135 = vector.broadcast %134 : vector<1x8xf32> to vector<256x8xf32>
    %136 = arith.mulf %133, %135 : vector<256x8xf32>
    %c0_112 = arith.constant 0 : index
    %c0_113 = arith.constant 0 : index
    %137 = vector.load %arg17[%c0_112, %c0_113] : memref<1x8xf32, #tpu.memory_space<vmem>>, vector<1x8xf32>
    %138 = vector.broadcast %137 : vector<1x8xf32> to vector<256x8xf32>
    %139 = arith.addf %136, %138 : vector<256x8xf32>
    %140 = arith.negf %139 : vector<256x8xf32>
    %141 = math.exp %140 : vector<256x8xf32>
    %cst_114 = arith.constant 1.000000e+00 : f32
    %142 = vector.broadcast %cst_114 : f32 to vector<256x8xf32>
    %143 = arith.addf %142, %141 : vector<256x8xf32>
    %144 = arith.divf %142, %143 : vector<256x8xf32>
    %145 = arith.mulf %139, %144 : vector<256x8xf32>
    %146 = vector.shape_cast %145 : vector<256x8xf32> to vector<16x16x8xf32>
    %c0_115 = arith.constant 0 : index
    %c0_116 = arith.constant 0 : index
    %c0_117 = arith.constant 0 : index
    %c0_118 = arith.constant 0 : index
    %147 = vector.load %arg18[%c0_115, %c0_116, %c0_117, %c0_118] : memref<1x16x16x8xf32, #tpu.memory_space<vmem>>, vector<1x16x16x8xf32>
    %148 = vector.shape_cast %147 : vector<1x16x16x8xf32> to vector<16x16x8xf32>
    %149 = vector.shape_cast %146 : vector<16x16x8xf32> to vector<1x16x16x8xf32>
    tpu.vector_store %arg18[%c0_115, %c0_116, %c0_117, %c0_118], %149 {strides = array<i32>} : memref<1x16x16x8xf32, #tpu.memory_space<vmem>>, vector<1x16x16x8xf32>,
    return
  }
  func.func @transform_0(%arg0: i32) -> (i32, i32, i32, i32) {
    %c0_i32 = arith.constant 0 : i32
    %c0_i32_0 = arith.constant 0 : i32
    %c0_i32_1 = arith.constant 0 : i32
    %c0_i32_2 = arith.constant 0 : i32
    return %arg0, %c0_i32, %c0_i32_0, %c0_i32_1 : i32, i32, i32, i32
  }
  func.func @transform_1(%arg0: i32) -> (i32, i32) {
    %c0_i32 = arith.constant 0 : i32
    %c0_i32_0 = arith.constant 0 : i32
    %c0_i32_1 = arith.constant 0 : i32
    return %c0_i32, %c0_i32_0 : i32, i32
  }
  func.func @transform_2(%arg0: i32) -> (i32, i32) {
    %c0_i32 = arith.constant 0 : i32
    %c0_i32_0 = arith.constant 0 : i32
    %c0_i32_1 = arith.constant 0 : i32
    return %c0_i32, %c0_i32_0 : i32, i32
  }
  func.func @transform_3(%arg0: i32) -> (i32, i32) {
    %c0_i32 = arith.constant 0 : i32
    %c0_i32_0 = arith.constant 0 : i32
    %c0_i32_1 = arith.constant 0 : i32
    return %c0_i32, %c0_i32_0 : i32, i32
  }
  func.func @transform_4(%arg0: i32) -> (i32, i32) {
    %c0_i32 = arith.constant 0 : i32
    %c0_i32_0 = arith.constant 0 : i32
    %c0_i32_1 = arith.constant 0 : i32
    return %c0_i32, %c0_i32_0 : i32, i32
  }
  func.func @transform_5(%arg0: i32) -> (i32, i32) {
    %c0_i32 = arith.constant 0 : i32
    %c0_i32_0 = arith.constant 0 : i32
    %c0_i32_1 = arith.constant 0 : i32
    return %c0_i32, %c0_i32_0 : i32, i32
  }
  func.func @transform_6(%arg0: i32) -> (i32, i32) {
    %c0_i32 = arith.constant 0 : i32
    %c0_i32_0 = arith.constant 0 : i32
    %c0_i32_1 = arith.constant 0 : i32
    return %c0_i32, %c0_i32_0 : i32, i32
  }
  func.func @transform_7(%arg0: i32) -> (i32, i32, i32) {
    %c0_i32 = arith.constant 0 : i32
    %c0_i32_0 = arith.constant 0 : i32
    %c0_i32_1 = arith.constant 0 : i32
    %c0_i32_2 = arith.constant 0 : i32
    return %c0_i32, %c0_i32_0, %c0_i32_1 : i32, i32, i32
  }
  func.func @transform_8(%arg0: i32) -> (i32, i32) {
    %c0_i32 = arith.constant 0 : i32
    %c0_i32_0 = arith.constant 0 : i32
    %c0_i32_1 = arith.constant 0 : i32
    return %c0_i32, %c0_i32_0 : i32, i32
  }
  func.func @transform_9(%arg0: i32) -> (i32, i32) {
    %c0_i32 = arith.constant 0 : i32
    %c0_i32_0 = arith.constant 0 : i32
    %c0_i32_1 = arith.constant 0 : i32
    return %c0_i32, %c0_i32_0 : i32, i32
  }
  func.func @transform_10(%arg0: i32) -> (i32, i32) {
    %c0_i32 = arith.constant 0 : i32
    %c0_i32_0 = arith.constant 0 : i32
    %c0_i32_1 = arith.constant 0 : i32
    return %c0_i32, %c0_i32_0 : i32, i32
  }
  func.func @transform_11(%arg0: i32) -> (i32, i32) {
    %c0_i32 = arith.constant 0 : i32
    %c0_i32_0 = arith.constant 0 : i32
    %c0_i32_1 = arith.constant 0 : i32
    return %c0_i32, %c0_i32_0 : i32, i32
  }
  func.func @transform_12(%arg0: i32) -> (i32, i32) {
    %c0_i32 = arith.constant 0 : i32
    %c0_i32_0 = arith.constant 0 : i32
    %c0_i32_1 = arith.constant 0 : i32
    return %c0_i32, %c0_i32_0 : i32, i32
  }
  func.func @transform_13(%arg0: i32) -> (i32, i32) {
    %c0_i32 = arith.constant 0 : i32
    %c0_i32_0 = arith.constant 0 : i32
    %c0_i32_1 = arith.constant 0 : i32
    return %c0_i32, %c0_i32_0 : i32, i32
  }
  func.func @transform_14(%arg0: i32) -> (i32, i32) {
    %c0_i32 = arith.constant 0 : i32
    %c0_i32_0 = arith.constant 0 : i32
    %c0_i32_1 = arith.constant 0 : i32
    return %c0_i32, %c0_i32_0 : i32, i32
  }
  func.func @transform_15(%arg0: i32) -> (i32, i32) {
    %c0_i32 = arith.constant 0 : i32
    %c0_i32_0 = arith.constant 0 : i32
    %c0_i32_1 = arith.constant 0 : i32
    return %c0_i32, %c0_i32_0 : i32, i32
  }
  func.func @transform_16(%arg0: i32) -> (i32, i32) {
    %c0_i32 = arith.constant 0 : i32
    %c0_i32_0 = arith.constant 0 : i32
    %c0_i32_1 = arith.constant 0 : i32
    return %c0_i32, %c0_i32_0 : i32, i32
  }
  func.func @transform_17(%arg0: i32) -> (i32, i32, i32, i32) {
    %c0_i32 = arith.constant 0 : i32
    %c0_i32_0 = arith.constant 0 : i32
    %c0_i32_1 = arith.constant 0 : i32
    %c0_i32_2 = arith.constant 0 : i32
    return %arg0, %c0_i32, %c0_i32_0, %c0_i32_1 : i32, i32, i32, i32
  }
}

</mosaic_0001>

<bundles_post_ra>
// kernel: tpu_custom_call.1
= control target key start
LH: loop header
LB: loop body
LE: loop exit
PB: predicated region body
PF: predicated region fallthrough
CT: control target
= control target key end

     0   :  { %s10484_s24 = smov 0   ;;  %s13045_s0 = inlined_call_operand.vmem [shape: f32[2,16,16,4], index: 0, kind: input, shape index: {}]   ;;  %s13046_s1 = inlined_call_operand.vmem [shape: f32[4,4], index: 1, kind: input, shape index: {}]   ;;  %s13047_s2 = inlined_call_operand.vmem [shape: f32[1,4], index: 2, kind: input, shape index: {}]   ;;  %s13048_s3 = inlined_call_operand.vmem [shape: f32[1,4], index: 3, kind: input, shape index: {}]   ;;  %s13049_s4 = inlined_call_operand.vmem [shape: f32[4,4], index: 4, kind: input, shape index: {}]   ;;  %s13050_s5 = inlined_call_operand.vmem [shape: f32[1,4], index: 5, kind: input, shape index: {}]   ;;  %s13051_s6 = inlined_call_operand.vmem [shape: f32[1,4], index: 6, kind: input, shape index: {}]   ;;  %s13052_s7 = inlined_call_operand.vmem [shape: f32[9,4,4], index: 7, kind: input, shape index: {}]   ;;  %s13053_s8 = inlined_call_operand.vmem [shape: f32[1,4], index: 8, kind: input, shape index: {}]   ;;  %s13054_s9 = inlined_call_operand.vmem [shape: f32[1,4], index: 9, kind: input, shape index: {}]   ;;  %s13055_s10 = inlined_call_operand.vmem [shape: f32[4,4], index: 10, kind: input, shape index: {}]   ;;  %s13056_s11 = inlined_call_operand.vmem [shape: f32[4,4], index: 11, kind: input, shape index: {}]   ;;  %s13057_s12 = inlined_call_operand.vmem [shape: f32[1,8], index: 12, kind: input, shape index: {}]   ;;  %s13058_s13 = inlined_call_operand.vmem [shape: f32[1,8], index: 13, kind: input, shape index: {}]   ;;  %s13059_s14 = inlined_call_operand.vmem [shape: f32[8,8], index: 14, kind: input, shape index: {}]   ;;  %s13060_s15 = inlined_call_operand.vmem [shape: f32[1,8], index: 15, kind: input, shape index: {}]   ;;  %s13061_s16 = inlined_call_operand.vmem [shape: f32[1,8], index: 16, kind: input, shape index: {}]   ;;  %s13062_s17 = inlined_call_operand.vmem [shape: f32[2,16,16,8], index: 17, kind: output, shape index: {}]  }
   0x1   :  { %13154 = sst [smem:[#allocation83_spill]] %s13045_s0 }
   0x2   :  { %13155 = sst [smem:[#allocation84_spill]] %s13046_s1 }
   0x3 LB: > { %s7639_s25 = sadd.s32 4294967295, %s10390_s24   ;;  %p7643_p0 = scmp.ge.s32.totalorder %s10390_s24, 1  ;;  %s10390_s24 = sphi %s10484_s24, %s27_s24  }
   0x4   : > { %p487_p1 = scmp.lt.s32.totalorder %s10390_s24, 3 }
   0x6   : > { %p488_p2 = pnand %p7643_p0, %p487_p1 }
   0x8   : > { %491 = sbr.rel (%p488_p2) target bundleno = 1857 (0x741), region = 88 }
   0xf   : > { %s13156_s28 = sld [smem:[#allocation84_spill]]  ;;  %vm679_vm0 = vcmask 1043456   ;;  %p539_p3 = scmp.lt.s32.totalorder %s7639_s25, 1  ;;  %v1210_v1 = vld [vmem:[%s13049_s4] sm:$0xf]  ;;  %vm582_vm1 = vcmask 31744  }
  0x10   : > { %s13157_s1 = sld [smem:[#allocation83_spill]]  ;;  %v10579_v34 = vld [vmem:[%s13047_s2] ss:$0 sm:$0xff]  ;;  %vm1839_vm2 = vcmask 25600   ;;  %s10393_s26 = smov 124  }
  0x11   : > { %s13353_s25 = smov (!%p539_p3, %s7639_s25), 1  ;;  %v10584_v36 = vld [vmem:[%s13048_s3] ss:$0 sm:$0xff] }
  0x12   : > { %s8291_s30 = sshll.u32 %s13353_s25, 8 }
  0x13   : > { %s12854_s18 = scalar_lea.vmem %s13062_s17, %s8291_s30 }
  0x15   : > { %v581_v0 = vld [vmem:[%s13156_s28] sm:$0xf] }
  0x16   : > { %8788 = vmatprep.subr.msk.mxu1 %vm679_vm0, %v581_v0  ;;  %s10509_s20 = scalar_lea.vmem %s13157_s1, %s8291_s30 }
  0x17   : > { %8789 = vmatpush3.msk.msra.mxu1 %vm679_vm0, %v581_v0  ;;  %v549_v2 = vld [vmem:[%s10509_s20] sm:$0xff]  ;;  %v550_v3 = vld [vmem:[%s10509_s20 + $0x8] sm:$0xff]  ;;  %v551_v4 = vld [vmem:[%s10509_s20 + $0x10] sm:$0xff] }
  0x18   : > { %8838 = vmatprep.subr.msk.mxu1 %vm679_vm0, %v1210_v1  ;;  %8790 = vmatprep.mubr.msk.f32.mxu1 %vm582_vm1, %v549_v2  ;;  %v552_v5 = vld [vmem:[%s10509_s20 + $0x18] sm:$0xff]  ;;  %v553_v6 = vld [vmem:[%s10509_s20 + $0x20] sm:$0xff]  ;;  %v554_v7 = vld [vmem:[%s10509_s20 + $0x28] sm:$0xff] }
  0x19   : > { %8791 = vmatmul.mubr.msk.f32.vlgmr.msra.gmra.mrb[0].mxu1 %vm582_vm1, %v550_v3  ;;  %v555_v8 = vld [vmem:[%s10509_s20 + $0x30] sm:$0xff]  ;;  %v556_v9 = vld [vmem:[%s10509_s20 + $0x38] sm:$0xff]  ;;  %v557_v10 = vld [vmem:[%s10509_s20 + $0x40] sm:$0xff] }
  0x1a   : > { %8793 = vmatprep.mubr.msk.f32.mxu1 %vm582_vm1, %v551_v4  ;;  %8839 = vmatpush3.msk.msra.mxu1 %vm679_vm0, %v1210_v1  ;;  %v558_v11 = vld [vmem:[%s10509_s20 + $0x48] sm:$0xff]  ;;  %v559_v12 = vld [vmem:[%s10509_s20 + $0x50] sm:$0xff]  ;;  %v560_v13 = vld [vmem:[%s10509_s20 + $0x58] sm:$0xff] }
  0x1b   : > { %v561_v14 = vld [vmem:[%s10509_s20 + $0x60] sm:$0xff]  ;;  %v562_v15 = vld [vmem:[%s10509_s20 + $0x68] sm:$0xff]  ;;  %v563_v16 = vld [vmem:[%s10509_s20 + $0x70] sm:$0xff] }
  0x1c   : > { %v564_v17 = vld [vmem:[%s10509_s20 + $0x78] sm:$0xff]  ;;  %v565_v18 = vld [vmem:[%s10509_s20 + $0x80] sm:$0xff]  ;;  %v566_v19 = vld [vmem:[%s10509_s20 + $0x88] sm:$0xff] }
  0x1d   : > { %8794 = vmatmul.mubr.msk.f32.gmra.mrb[2].mxu1 %vm582_vm1, %v552_v5  ;;  %v567_v20 = vld [vmem:[%s10509_s20 + $0x90] sm:$0xff]  ;;  %v568_v21 = vld [vmem:[%s10509_s20 + $0x98] sm:$0xff]  ;;  %v569_v22 = vld [vmem:[%s10509_s20 + $0xa0] sm:$0xff] }
  0x1e   : > { %8796 = vmatprep.mubr.msk.f32.mxu1 %vm582_vm1, %v553_v6  ;;  %v570_v23 = vld [vmem:[%s10509_s20 + $0xa8] sm:$0xff]  ;;  %v571_v24 = vld [vmem:[%s10509_s20 + $0xb0] sm:$0xff]  ;;  %v572_v25 = vld [vmem:[%s10509_s20 + $0xb8] sm:$0xff] }
  0x1f   : > { %v573_v26 = vld [vmem:[%s10509_s20 + $0xc0] sm:$0xff]  ;;  %v574_v27 = vld [vmem:[%s10509_s20 + $0xc8] sm:$0xff]  ;;  %v575_v28 = vld [vmem:[%s10509_s20 + $0xd0] sm:$0xff] }
  0x20   : > { %v576_v29 = vld [vmem:[%s10509_s20 + $0xd8] sm:$0xff]  ;;  %v577_v30 = vld [vmem:[%s10509_s20 + $0xe0] sm:$0xff]  ;;  %v578_v31 = vld [vmem:[%s10509_s20 + $0xe8] sm:$0xff] }
  0x21   : > { %8797 = vmatmul.mubr.msk.f32.gmra.mrb[4].mxu1 %vm582_vm1, %v554_v7  ;;  %v579_v32 = vld [vmem:[%s10509_s20 + $0xf0] sm:$0xff]  ;;  %v580_v33 = vld [vmem:[%s10509_s20 + $0xf8] sm:$0xff] }
  0x22   : > { %8799 = vmatprep.mubr.msk.f32.mxu1 %vm582_vm1, %v555_v8 }
  0x25   : > { %8800 = vmatmul.mubr.msk.f32.gmra.mrb[6].mxu1 %vm582_vm1, %v556_v9 }
  0x26   : > { %8802 = vmatprep.mubr.msk.f32.mxu1 %vm582_vm1, %v557_v10 }
  0x29   : > { %8803 = vmatmul.mubr.msk.f32.gmra.mrb[8].mxu1 %vm582_vm1, %v558_v11 }
  0x2a   : > { %8805 = vmatprep.mubr.msk.f32.mxu1 %vm582_vm1, %v559_v12 }
  0x2d   : > { %8806 = vmatmul.mubr.msk.f32.gmra.mrb[10].mxu1 %vm582_vm1, %v560_v13 }
  0x2e   : > { %8808 = vmatprep.mubr.msk.f32.mxu1 %vm582_vm1, %v561_v14 }
  0x31   : > { %8809 = vmatmul.mubr.msk.f32.gmra.mrb[12].mxu1 %vm582_vm1, %v562_v15 }
  0x32   : > { %8811 = vmatprep.mubr.msk.f32.mxu1 %vm582_vm1, %v563_v16 }
  0x35   : > { %8812 = vmatmul.mubr.msk.f32.gmra.mrb[14].mxu1 %vm582_vm1, %v564_v17 }
  0x36   : > { %8814 = vmatprep.mubr.msk.f32.mxu1 %vm582_vm1, %v565_v18 }
  0x39   : > { %8815 = vmatmul.mubr.msk.f32.gmra.mrb[16].mxu1 %vm582_vm1, %v566_v19 }
  0x3a   : > { %8817 = vmatprep.mubr.msk.f32.mxu1 %vm582_vm1, %v567_v20 }
  0x3d   : > { %8818 = vmatmul.mubr.msk.f32.gmra.mrb[18].mxu1 %vm582_vm1, %v568_v21 }
  0x3e   : > { %8820 = vmatprep.mubr.msk.f32.mxu1 %vm582_vm1, %v569_v22 }
  0x41   : > { %8821 = vmatmul.mubr.msk.f32.gmra.mrb[20].mxu1 %vm582_vm1, %v570_v23 }
  0x42   : > { %8823 = vmatprep.mubr.msk.f32.mxu1 %vm582_vm1, %v571_v24 }
  0x45   : > { %8824 = vmatmul.mubr.msk.f32.gmra.mrb[22].mxu1 %vm582_vm1, %v572_v25 }
  0x46   : > { %8826 = vmatprep.mubr.msk.f32.mxu1 %vm582_vm1, %v573_v26 }
  0x49   : > { %8827 = vmatmul.mubr.msk.f32.gmra.mrb[24].mxu1 %vm582_vm1, %v574_v27 }
  0x4a   : > { %8829 = vmatprep.mubr.msk.f32.mxu1 %vm582_vm1, %v575_v28 }
  0x4d   : > { %8830 = vmatmul.mubr.msk.f32.gmra.mrb[26].mxu1 %vm582_vm1, %v576_v29 }
  0x4e   : > { %8832 = vmatprep.mubr.msk.f32.mxu1 %vm582_vm1, %v577_v30 }
  0x51   : > { %8833 = vmatmul.mubr.msk.f32.gmra.mrb[28].mxu1 %vm582_vm1, %v578_v31 }
  0x52   : > { %8835 = vmatprep.mubr.msk.f32.mxu1 %vm582_vm1, %v579_v32 }
  0x55   : > { %8836 = vmatmul.mubr.msk.f32.gmra.mrb[30].mxu1 %vm582_vm1, %v580_v33 }
  0xec   : > { %v8792_v35 = vpop.f32.mrb[0].mxu1 }
  0xed   : > { %v916_v37 = vmul.f32 %v8792_v35, %v10579_v34  ;;  %v749_v38 = vpop.f32.mrb[1].mxu1 }
  0xee   : > { %v915_v39 = vmul.f32 %v10579_v34, %v749_v38 }
  0xef   : > { %v10589_v40 = vadd.f32 %v10584_v36, %v916_v37 }
  0xf0   : > { %v10592_v41 = vadd.f32 %v10584_v36, %v915_v39  ;;  %v8795_v42 = vpop.f32.mrb[2].mxu1 }
  0xf1   : > { %v7684_v43 = vmul.f32 -1.442695, %v10589_v40  ;;  %v918_v44 = vmul.f32 %v8795_v42, %v10579_v34  ;;  %v759_v45 = vpop.f32.mrb[3].mxu1 }
  0xf2   : > { %v7683_v46 = vmul.f32 -1.442695, %v10592_v41  ;;  %v917_v47 = vmul.f32 %v10579_v34, %v759_v45 }
  0xf3   : > { %9838 = vpow2.f32 %v7684_v43  ;;  %v10599_v48 = vadd.f32 %v10584_v36, %v918_v44 }
  0xf4   : > { %9840 = vpow2.f32 %v7683_v46  ;;  %v10602_v49 = vadd.f32 %v10584_v36, %v917_v47  ;;  %v8798_v50 = vpop.f32.mrb[4].mxu1 }
  0xf5   : > { %v7686_v51 = vmul.f32 -1.442695, %v10599_v48  ;;  %v920_v52 = vmul.f32 %v8798_v50, %v10579_v34  ;;  %v769_v53 = vpop.f32.mrb[5].mxu1 }
  0xf6   : > { %v7685_v54 = vmul.f32 -1.442695, %v10602_v49  ;;  %v919_v55 = vmul.f32 %v10579_v34, %v769_v53 }
  0xf7   : > { %9842 = vpow2.f32 %v7686_v51  ;;  %v10609_v56 = vadd.f32 %v10584_v36, %v920_v52 }
  0xf8   : > { %9844 = vpow2.f32 %v7685_v54  ;;  %v10612_v57 = vadd.f32 %v10584_v36, %v919_v55  ;;  %v8801_v58 = vpop.f32.mrb[6].mxu1 }
  0xf9   : > { %v7688_v59 = vmul.f32 -1.442695, %v10609_v56  ;;  %v922_v60 = vmul.f32 %v8801_v58, %v10579_v34  ;;  %v779_v61 = vpop.f32.mrb[7].mxu1 }
  0xfa   : > { %v7687_v62 = vmul.f32 -1.442695, %v10612_v57  ;;  %v921_v63 = vmul.f32 %v10579_v34, %v779_v61 }
  0xfb   : > { %9846 = vpow2.f32 %v7688_v59  ;;  %v10619_v0 = vadd.f32 %v10584_v36, %v922_v60 }
  0xfc   : > { %9848 = vpow2.f32 %v7687_v62  ;;  %v10622_v1 = vadd.f32 %v10584_v36, %v921_v63  ;;  %v8804_v2 = vpop.f32.mrb[8].mxu1 }
  0xfd   : > { %v9839_v3 = vpop.eup %9838  ;;  %v7690_v4 = vmul.f32 -1.442695, %v10619_v0  ;;  %v924_v5 = vmul.f32 %v8804_v2, %v10579_v34  ;;  %v789_v6 = vpop.f32.mrb[9].mxu1 }
  0xfe   : > { %v9841_v7 = vpop.eup %9840  ;;  %v1083_v8 = vadd.f32 1.0, %v9839_v3  ;;  %v7689_v9 = vmul.f32 -1.442695, %v10622_v1  ;;  %v923_v10 = vmul.f32 %v10579_v34, %v789_v6 }
  0xff   : > { %v1082_v11 = vadd.f32 1.0, %v9841_v7  ;;  %9850 = vpow2.f32 %v7690_v4  ;;  %v10629_v12 = vadd.f32 %v10584_v36, %v924_v5 }
 0x100   : > { %9852 = vrcp.f32 %v1083_v8  ;;  %v10632_v13 = vadd.f32 %v10584_v36, %v923_v10  ;;  %v8807_v14 = vpop.f32.mrb[10].mxu1 }
 0x101   : > { %v9843_v15 = vpop.eup %9842  ;;  %9854 = vrcp.f32 %v1082_v11  ;;  %v7692_v16 = vmul.f32 -1.442695, %v10629_v12  ;;  %v926_v17 = vmul.f32 %v8807_v14, %v10579_v34  ;;  %v799_v18 = vpop.f32.mrb[11].mxu1 }
 0x102   : > { %v9845_v19 = vpop.eup %9844  ;;  %v1085_v20 = vadd.f32 1.0, %v9843_v15  ;;  %9856 = vpow2.f32 %v7689_v9  ;;  %v7691_v21 = vmul.f32 -1.442695, %v10632_v13  ;;  %v925_v22 = vmul.f32 %v10579_v34, %v799_v18 }
 0x103   : > { %v1084_v23 = vadd.f32 1.0, %v9845_v19  ;;  %9858 = vpow2.f32 %v7692_v16  ;;  %v10639_v24 = vadd.f32 %v10584_v36, %v926_v17 }
 0x104   : > { %9860 = vrcp.f32 %v1085_v20  ;;  %v10642_v25 = vadd.f32 %v10584_v36, %v925_v22  ;;  %v8810_v26 = vpop.f32.mrb[12].mxu1 }
 0x105   : > { %v9847_v27 = vpop.eup %9846  ;;  %9862 = vrcp.f32 %v1084_v23  ;;  %v7694_v28 = vmul.f32 -1.442695, %v10639_v24  ;;  %v928_v29 = vmul.f32 %v8810_v26, %v10579_v34  ;;  %v809_v30 = vpop.f32.mrb[13].mxu1 }
 0x106   : > { %v9849_v31 = vpop.eup %9848  ;;  %v1087_v32 = vadd.f32 1.0, %v9847_v27  ;;  %9864 = vpow2.f32 %v7691_v21  ;;  %v7693_v33 = vmul.f32 -1.442695, %v10642_v25  ;;  %v927_v35 = vmul.f32 %v10579_v34, %v809_v30 }
 0x107   : > { %v1086_v37 = vadd.f32 1.0, %v9849_v31  ;;  %9866 = vpow2.f32 %v7694_v28  ;;  %v10649_v38 = vadd.f32 %v10584_v36, %v928_v29 }
 0x108   : > { %9868 = vrcp.f32 %v1087_v32  ;;  %v10652_v39 = vadd.f32 %v10584_v36, %v927_v35  ;;  %v8813_v42 = vpop.f32.mrb[14].mxu1 }
 0x109   : > { %v9851_v43 = vpop.eup %9850  ;;  %9870 = vrcp.f32 %v1086_v37  ;;  %v7696_v44 = vmul.f32 -1.442695, %v10649_v38  ;;  %v930_v45 = vmul.f32 %v8813_v42, %v10579_v34  ;;  %v819_v46 = vpop.f32.mrb[15].mxu1 }
 0x10a   : > { %v9853_v47 = vpop.eup %9852  ;;  %v1089_v50 = vadd.f32 1.0, %v9851_v43  ;;  %9872 = vpow2.f32 %v7693_v33  ;;  %v7695_v51 = vmul.f32 -1.442695, %v10652_v39  ;;  %v929_v52 = vmul.f32 %v10579_v34, %v819_v46 }
 0x10b   : > { %v9855_v53 = vpop.eup %9854  ;;  %9874 = vpow2.f32 %v7696_v44  ;;  %v10659_v54 = vadd.f32 %v10584_v36, %v930_v45  ;;  %v10662_v58 = vmul.f32 %v9853_v47, %v10589_v40 }
 0x10c   : > { %v9857_v55 = vpop.eup %9856  ;;  %v10665_v59 = vmul.f32 %v9855_v53, %v10592_v41  ;;  %v10668_v60 = vadd.f32 %v10584_v36, %v929_v52  ;;  %v8816_v61 = vpop.f32.mrb[16].mxu1  ;;  %9876 = vpow2.f32 %v7695_v51 }
 0x10d   : > { %13158 = vst [vmem:[#allocation3_spill] sm:$0xff] %v10662_v58  ;;  %v9859_v62 = vpop.eup %9858  ;;  %v1088_v63 = vadd.f32 1.0, %v9857_v55  ;;  %v7698_v2 = vmul.f32 -1.442695, %v10659_v54  ;;  %v932_v3 = vmul.f32 %v8816_v61, %v10579_v34  ;;  %v829_v4 = vpop.f32.mrb[17].mxu1  ;;  %9878 = vrcp.f32 %v1089_v50 }
 0x10e   : > { %13159 = vst [vmem:[#allocation4_spill] sm:$0xff] %v10665_v59  ;;  %v9861_v5 = vpop.eup %9860  ;;  %v1091_v6 = vadd.f32 1.0, %v9859_v62  ;;  %v7697_v40 = vmul.f32 -1.442695, %v10668_v60  ;;  %v931_v41 = vmul.f32 %v10579_v34, %v829_v4  ;;  %8840 = vmatprep.mubr.msk.f32.mxu1 %vm582_vm1, %v10665_v59 }
 0x10f   : > { %v9863_v7 = vpop.eup %9862  ;;  %9880 = vrcp.f32 %v1088_v63  ;;  %v10677_v8 = vadd.f32 %v10584_v36, %v932_v3  ;;  %8841 = vmatmul.mubr.msk.f32.vlgmr.msra.gmra.mrb[32].mxu1 %vm582_vm1, %v10662_v58  ;;  %v10682_v10 = vmul.f32 %v9861_v5, %v10599_v48 }
 0x110   : > { %v9865_v9 = vpop.eup %9864  ;;  %v10685_v11 = vmul.f32 %v9863_v7, %v10602_v49  ;;  %9882 = vrcp.f32 %v1091_v6  ;;  %v10688_v14 = vadd.f32 %v10584_v36, %v931_v41  ;;  %v8819_v15 = vpop.f32.mrb[18].mxu1 }
 0x111   : > { %13160 = vst [vmem:[#allocation5_spill] sm:$0xff] %v10682_v10  ;;  %v9867_v16 = vpop.eup %9866  ;;  %v1090_v17 = vadd.f32 1.0, %v9865_v9  ;;  %9884 = vpow2.f32 %v7698_v2  ;;  %v7700_v18 = vmul.f32 -1.442695, %v10677_v8  ;;  %v934_v19 = vmul.f32 %v8819_v15, %v10579_v34  ;;  %v839_v20 = vpop.f32.mrb[19].mxu1 }
 0x112   : > { %13161 = vst [vmem:[#allocation6_spill] sm:$0xff] %v10685_v11  ;;  %v9869_v21 = vpop.eup %9868  ;;  %v1093_v22 = vadd.f32 1.0, %v9867_v16  ;;  %9886 = vpow2.f32 %v7697_v40  ;;  %v7699_v48 = vmul.f32 -1.442695, %v10688_v14  ;;  %v933_v49 = vmul.f32 %v10579_v34, %v839_v20  ;;  %8843 = vmatprep.mubr.msk.f32.mxu1 %vm582_vm1, %v10685_v11 }
 0x113   : > { %v9871_v23 = vpop.eup %9870  ;;  %9888 = vrcp.f32 %v1090_v17  ;;  %v10697_v26 = vadd.f32 %v10584_v36, %v934_v19  ;;  %8844 = vmatmul.mubr.msk.f32.gmra.mrb[34].mxu1 %vm582_vm1, %v10682_v10  ;;  %v10702_v28 = vmul.f32 %v9869_v21, %v10609_v56 }
 0x114   : > { %v9873_v27 = vpop.eup %9872  ;;  %v10705_v29 = vmul.f32 %v9871_v23, %v10612_v57  ;;  %9890 = vrcp.f32 %v1093_v22  ;;  %v10708_v30 = vadd.f32 %v10584_v36, %v933_v49  ;;  %v8822_v31 = vpop.f32.mrb[20].mxu1 }
 0x115   : > { %13162 = vst [vmem:[#allocation7_spill] sm:$0xff] %v10702_v28  ;;  %v9875_v32 = vpop.eup %9874  ;;  %v1092_v33 = vadd.f32 1.0, %v9873_v27  ;;  %9892 = vpow2.f32 %v7700_v18  ;;  %v7702_v35 = vmul.f32 -1.442695, %v10697_v26  ;;  %v936_v37 = vmul.f32 %v8822_v31, %v10579_v34  ;;  %v849_v42 = vpop.f32.mrb[21].mxu1 }
 0x116   : > { %13163 = vst [vmem:[#allocation8_spill] sm:$0xff] %v10705_v29  ;;  %v1095_v43 = vadd.f32 1.0, %v9875_v32  ;;  %9894 = vpow2.f32 %v7699_v48  ;;  %v935_v56 = vmul.f32 %v10579_v34, %v849_v42  ;;  %8846 = vmatprep.mubr.msk.f32.mxu1 %vm582_vm1, %v10705_v29  ;;  %v9877_v57 = vpop.eup %9876  ;;  %v7701_v44 = vmul.f32 -1.442695, %v10708_v30 }
 0x117   : > { %9896 = vrcp.f32 %v1092_v33  ;;  %v10717_v45 = vadd.f32 %v10584_v36, %v936_v37  ;;  %8847 = vmatmul.mubr.msk.f32.gmra.mrb[36].mxu1 %vm582_vm1, %v10702_v28  ;;  %v9879_v46 = vpop.eup %9878  ;;  %v1094_v47 = vadd.f32 1.0, %v9877_v57 }
 0x118   : > { %9898 = vrcp.f32 %v1095_v43  ;;  %v10722_v50 = vadd.f32 %v10584_v36, %v935_v56  ;;  %v8825_v51 = vpop.f32.mrb[22].mxu1  ;;  %v10732_v5 = vmul.f32 %v9879_v46, %v10619_v0 }
 0x119   : > { %v9881_v52 = vpop.eup %9880  ;;  %9900 = vpow2.f32 %v7702_v35  ;;  %v7704_v53 = vmul.f32 -1.442695, %v10717_v45  ;;  %v938_v55 = vmul.f32 %v8825_v51, %v10579_v34  ;;  %v859_v61 = vpop.f32.mrb[23].mxu1 }
 0x11a   : > { %v9883_v62 = vpop.eup %9882  ;;  %v10727_v63 = vmul.f32 %v9881_v52, %v10622_v1  ;;  %9902 = vrcp.f32 %v1094_v47  ;;  %v7703_v2 = vmul.f32 -1.442695, %v10722_v50  ;;  %v937_v3 = vmul.f32 %v10579_v34, %v859_v61  ;;  %13165 = vst [vmem:[#allocation10_spill] sm:$0xff] %v10732_v5 }
 0x11b   : > { %v9885_v4 = vpop.eup %9884  ;;  %9904 = vpow2.f32 %v7701_v44  ;;  %v10735_v6 = vadd.f32 %v10584_v36, %v938_v55  ;;  %v10752_v48 = vmul.f32 %v9883_v62, %v10629_v12 }
 0x11c   : > { %13164 = vst [vmem:[#allocation9_spill] sm:$0xff] %v10727_v63  ;;  %v9887_v40 = vpop.eup %9886  ;;  %v1097_v41 = vadd.f32 1.0, %v9885_v4  ;;  %9906 = vpow2.f32 %v7704_v53  ;;  %v10738_v7 = vadd.f32 %v10584_v36, %v937_v3  ;;  %8849 = vmatprep.mubr.msk.f32.mxu1 %vm582_vm1, %v10727_v63  ;;  %v8828_v1 = vpop.f32.mrb[24].mxu1 }
 0x11d   : > { %v9889_v9 = vpop.eup %9888  ;;  %v1096_v15 = vadd.f32 1.0, %v9887_v40  ;;  %9908 = vpow2.f32 %v7703_v2  ;;  %v7706_v0 = vmul.f32 -1.442695, %v10735_v6  ;;  %8850 = vmatmul.mubr.msk.f32.gmra.mrb[38].mxu1 %vm582_vm1, %v10732_v5  ;;  %v940_v16 = vmul.f32 %v8828_v1, %v10579_v34  ;;  %v869_v17 = vpop.f32.mrb[25].mxu1  ;;  %13167 = vst [vmem:[#allocation12_spill] sm:$0xff] %v10752_v48 }
 0x11e   : > { %v9891_v18 = vpop.eup %9890  ;;  %v10747_v19 = vmul.f32 %v9889_v9, %v10632_v13  ;;  %9910 = vrcp.f32 %v1097_v41  ;;  %v7705_v20 = vmul.f32 -1.442695, %v10738_v7  ;;  %v939_v21 = vmul.f32 %v10579_v34, %v869_v17 }
 0x11f   : > { %v9893_v22 = vpop.eup %9892  ;;  %9912 = vrcp.f32 %v1096_v15  ;;  %v10755_v49 = vadd.f32 %v10584_v36, %v940_v16  ;;  %v10772_v46 = vmul.f32 %v9891_v18, %v10639_v24 }
 0x120   : > { %13166 = vst [vmem:[#allocation11_spill] sm:$0xff] %v10747_v19  ;;  %v9895_v23 = vpop.eup %9894  ;;  %v1099_v27 = vadd.f32 1.0, %v9893_v22  ;;  %9914 = vpow2.f32 %v7706_v0  ;;  %v10758_v31 = vadd.f32 %v10584_v36, %v939_v21  ;;  %8852 = vmatprep.mubr.msk.f32.mxu1 %vm582_vm1, %v10747_v19  ;;  %v8831_v13 = vpop.f32.mrb[26].mxu1 }
 0x121   : > { %v9897_v32 = vpop.eup %9896  ;;  %v1098_v33 = vadd.f32 1.0, %v9895_v23  ;;  %9916 = vpow2.f32 %v7705_v20  ;;  %v7708_v12 = vmul.f32 -1.442695, %v10755_v49  ;;  %8853 = vmatmul.mubr.msk.f32.gmra.mrb[40].mxu1 %vm582_vm1, %v10752_v48  ;;  %v942_v35 = vmul.f32 %v8831_v13, %v10579_v34  ;;  %v879_v37 = vpop.f32.mrb[27].mxu1  ;;  %13169 = vst [vmem:[#allocation14_spill] sm:$0xff] %v10772_v46 }
 0x122   : > { %v9899_v42 = vpop.eup %9898  ;;  %v10767_v43 = vmul.f32 %v9897_v32, %v10642_v25  ;;  %9918 = vrcp.f32 %v1099_v27  ;;  %v7707_v56 = vmul.f32 -1.442695, %v10758_v31  ;;  %v941_v57 = vmul.f32 %v10579_v34, %v879_v37 }
 0x123   : > { %v9901_v44 = vpop.eup %9900  ;;  %9920 = vrcp.f32 %v1098_v33  ;;  %v10775_v47 = vadd.f32 %v10584_v36, %v942_v35  ;;  %v10790_v4 = vmul.f32 %v9899_v42, %v10649_v38 }
 0x124   : > { %13168 = vst [vmem:[#allocation13_spill] sm:$0xff] %v10767_v43  ;;  %v9903_v51 = vpop.eup %9902  ;;  %v1101_v52 = vadd.f32 1.0, %v9901_v44  ;;  %9922 = vpow2.f32 %v7708_v12  ;;  %v10778_v53 = vadd.f32 %v10584_v36, %v941_v57  ;;  %8855 = vmatprep.mubr.msk.f32.mxu1 %vm582_vm1, %v10767_v43  ;;  %v8834_v25 = vpop.f32.mrb[28].mxu1 }
 0x125   : > { %v9905_v55 = vpop.eup %9904  ;;  %v10783_v61 = vmul.f32 %v9903_v51, %v10652_v39  ;;  %9924 = vpow2.f32 %v7707_v56  ;;  %v7710_v24 = vmul.f32 -1.442695, %v10775_v47  ;;  %8856 = vmatmul.mubr.msk.f32.gmra.mrb[42].mxu1 %vm582_vm1, %v10772_v46  ;;  %v944_v62 = vmul.f32 %v8834_v25, %v10579_v34  ;;  %v889_v2 = vpop.f32.mrb[29].mxu1  ;;  %13171 = vst [vmem:[#allocation16_spill] sm:$0xff] %v10790_v4 }
 0x126   : > { %v9907_v3 = vpop.eup %9906  ;;  %9926 = vrcp.f32 %v1101_v52  ;;  %v1100_v40 = vadd.f32 1.0, %v9905_v55  ;;  %v943_v41 = vmul.f32 %v10579_v34, %v889_v2  ;;  %v7709_v9 = vmul.f32 -1.442695, %v10778_v53 }
 0x127   : > { %13170 = vst [vmem:[#allocation15_spill] sm:$0xff] %v10783_v61  ;;  %v9909_v1 = vpop.eup %9908  ;;  %v1103_v39 = vadd.f32 1.0, %v9907_v3  ;;  %9928 = vpow2.f32 %v7710_v24  ;;  %v10795_v15 = vadd.f32 %v10584_v36, %v944_v62  ;;  %8858 = vmatprep.mubr.msk.f32.mxu1 %vm582_vm1, %v10783_v61 }
 0x128   : > { %v9911_v0 = vpop.eup %9910  ;;  %9930 = vrcp.f32 %v1100_v40  ;;  %v1102_v16 = vadd.f32 1.0, %v9909_v1  ;;  %v10800_v38 = vadd.f32 %v10584_v36, %v943_v41  ;;  %v8837_v17 = vpop.f32.mrb[30].mxu1 }
 0x129   : > { %v9913_v18 = vpop.eup %9912  ;;  %v10803_v20 = vmul.f32 %v9911_v0, %v10659_v54  ;;  %9932 = vrcp.f32 %v1103_v39  ;;  %v7712_v21 = vmul.f32 -1.442695, %v10795_v15  ;;  %8859 = vmatmul.mubr.msk.f32.gmra.mrb[44].mxu1 %vm582_vm1, %v10790_v4  ;;  %v946_v22 = vmul.f32 %v8837_v17, %v10579_v34  ;;  %v899_v23 = vpop.f32.mrb[31].mxu1 }
 0x12a   : > { %v9915_v27 = vpop.eup %9914  ;;  %v10810_v13 = vmul.f32 %v9913_v18, %v10668_v60  ;;  %9934 = vrcp.f32 %v1102_v16  ;;  %v945_v32 = vmul.f32 %v10579_v34, %v899_v23  ;;  %v7711_v54 = vmul.f32 -1.442695, %v10800_v38 }
 0x12b   : > { %13172 = vst [vmem:[#allocation17_spill] sm:$0xff] %v10803_v20  ;;  %v9917_v33 = vpop.eup %9916  ;;  %v1105_v12 = vadd.f32 1.0, %v9915_v27  ;;  %9936 = vpow2.f32 %v7709_v9  ;;  %v10815_v35 = vadd.f32 %v10584_v36, %v946_v22 }
 0x12c   : > { %13173 = vst [vmem:[#allocation18_spill] sm:$0xff] %v10810_v13  ;;  %v9919_v37 = vpop.eup %9918  ;;  %v1104_v42 = vadd.f32 1.0, %v9917_v33  ;;  %9938 = vpow2.f32 %v7712_v21  ;;  %8861 = vmatprep.mubr.msk.f32.mxu1 %vm582_vm1, %v10810_v13  ;;  %v10820_v60 = vadd.f32 %v10584_v36, %v945_v32 }
 0x12d   : > { %v9921_v56 = vpop.eup %9920  ;;  %v10823_v34 = vmul.f32 %v9919_v37, %v10677_v8  ;;  %9940 = vrcp.f32 %v1105_v12  ;;  %8862 = vmatmul.mubr.msk.f32.gmra.mrb[46].mxu1 %vm582_vm1, %v10803_v20  ;;  %v7714_v57 = vmul.f32 -1.442695, %v10815_v35 }
 0x12e   : > { %v9923_v44 = vpop.eup %9922  ;;  %v10829_v51 = vmul.f32 %v9921_v56, %v10688_v14  ;;  %9942 = vrcp.f32 %v1104_v42  ;;  %v7713_v36 = vmul.f32 -1.442695, %v10820_v60 }
 0x12f   : > { %13174 = vst [vmem:[#allocation19_spill] sm:$0xff] %v10823_v34  ;;  %v9925_v52 = vpop.eup %9924  ;;  %v1107_v25 = vadd.f32 1.0, %v9923_v44  ;;  %9944 = vpow2.f32 %v7711_v54 }
 0x130   : > { %13175 = vst [vmem:[#allocation20_spill] sm:$0xff] %v10829_v51  ;;  %v9927_v55 = vpop.eup %9926  ;;  %v1106_v24 = vadd.f32 1.0, %v9925_v52  ;;  %8864 = vmatprep.mubr.msk.f32.mxu1 %vm582_vm1, %v10829_v51  ;;  %9946 = vpow2.f32 %v7714_v57 }
 0x131   : > { %v9929_v8 = vpop.eup %9928  ;;  %9948 = vrcp.f32 %v1107_v25  ;;  %8865 = vmatmul.mubr.msk.f32.gmra.mrb[48].mxu1 %vm582_vm1, %v10823_v34  ;;  %v10837_v14 = vmul.f32 %v9927_v55, %v10697_v26 }
 0x132   : > { %v9931_v62 = vpop.eup %9930  ;;  %9950 = vrcp.f32 %v1106_v24  ;;  %v1109_v2 = vadd.f32 1.0, %v9929_v8  ;;  %v7849_v8 = vld [vmem:[%s13052_s7 + $0x8] sm:$0xf] }
 0x133   : > { %13176 = vst [vmem:[#allocation21_spill] sm:$0xff] %v10837_v14  ;;  %v9933_v3 = vpop.eup %9932  ;;  %v10840_v40 = vmul.f32 %v9931_v62, %v10708_v30  ;;  %9952 = vpow2.f32 %v7713_v36  ;;  %v10984_v62 = vld [vmem:[%s13052_s7 + $0xc] sm:$0xf] }
 0x134   : > { %v9935_v41 = vpop.eup %9934  ;;  %9954 = vrcp.f32 %v1109_v2  ;;  %v10848_v26 = vmul.f32 %v9933_v3, %v10717_v45  ;;  %v10991_v2 = vld [vmem:[%s13050_s5] ss:$0 sm:$0xff] }
 0x135   : > { %13177 = vst [vmem:[#allocation22_spill] sm:$0xff] %v10840_v40  ;;  %v9937_v1 = vpop.eup %9936  ;;  %v10843_v39 = vmul.f32 %v9935_v41, %v10722_v50  ;;  %8867 = vmatprep.mubr.msk.f32.mxu1 %vm582_vm1, %v10840_v40  ;;  %v10996_v41 = vld [vmem:[%s13051_s6] ss:$0 sm:$0xff] }
 0x136   : > { %v9939_v9 = vpop.eup %9938  ;;  %13179 = vst [vmem:[#allocation24_spill] sm:$0xff] %v10848_v26  ;;  %v1108_v0 = vadd.f32 1.0, %v9937_v1  ;;  %8868 = vmatmul.mubr.msk.f32.gmra.mrb[50].mxu1 %vm582_vm1, %v10837_v14 }
 0x137   : > { %13178 = vst [vmem:[#allocation23_spill] sm:$0xff] %v10843_v39  ;;  %v9941_v30 = vpop.eup %9940  ;;  %v1111_v16 = vadd.f32 1.0, %v9939_v9  ;;  %8870 = vmatprep.mubr.msk.f32.mxu1 %vm582_vm1, %v10843_v39 }
 0x138   : > { %v9943_v17 = vpop.eup %9942  ;;  %9956 = vrcp.f32 %v1108_v0  ;;  %v10858_v45 = vmul.f32 %v9941_v30, %v10735_v6 }
 0x139   : > { %v9945_v50 = vpop.eup %9944  ;;  %v10855_v18 = vmul.f32 %v9943_v17, %v10738_v7  ;;  %9958 = vrcp.f32 %v1111_v16 }
 0x13a   : > { %v9947_v21 = vpop.eup %9946  ;;  %13181 = vst [vmem:[#allocation26_spill] sm:$0xff] %v10858_v45  ;;  %v1110_v22 = vadd.f32 1.0, %v9945_v50  ;;  %8871 = vmatmul.mubr.msk.f32.gmra.mrb[52].mxu1 %vm582_vm1, %v10848_v26 }
 0x13b   : > { %13180 = vst [vmem:[#allocation25_spill] sm:$0xff] %v10855_v18  ;;  %v9949_v23 = vpop.eup %9948  ;;  %8873 = vmatprep.mubr.msk.f32.mxu1 %vm582_vm1, %v10855_v18  ;;  %v1113_v27 = vadd.f32 1.0, %v9947_v21 }
 0x13c   : > { %v9951_v32 = vpop.eup %9950  ;;  %9960 = vrcp.f32 %v1110_v22  ;;  %v10868_v12 = vmul.f32 %v9949_v23, %v10755_v49 }
 0x13d   : > { %v9953_v33 = vpop.eup %9952  ;;  %v10865_v7 = vmul.f32 %v9951_v32, %v10758_v31  ;;  %9962 = vrcp.f32 %v1113_v27 }
 0x13e   : > { %13183 = vst [vmem:[#allocation28_spill] sm:$0xff] %v10868_v12  ;;  %8874 = vmatmul.mubr.msk.f32.gmra.mrb[54].mxu1 %vm582_vm1, %v10858_v45  ;;  %v1112_v6 = vadd.f32 1.0, %v9953_v33  ;;  %v9955_v54 = vpop.eup %9954 }
 0x13f   : > { %13182 = vst [vmem:[#allocation27_spill] sm:$0xff] %v10865_v7  ;;  %8876 = vmatprep.mubr.msk.f32.mxu1 %vm582_vm1, %v10865_v7  ;;  %v10875_v42 = vmul.f32 %v9955_v54, %v10775_v47 }
 0x140   : > { %9964 = vrcp.f32 %v1112_v6 }
 0x141   : > { %13184 = vst [vmem:[#allocation29_spill] sm:$0xff] %v10875_v42 }
 0x142   : > { %v9957_v37 = vpop.eup %9956  ;;  %8877 = vmatmul.mubr.msk.f32.gmra.mrb[56].mxu1 %vm582_vm1, %v10868_v12 }
 0x143   : > { %v9959_v31 = vpop.eup %9958  ;;  %v10880_v49 = vmul.f32 %v9957_v37, %v10778_v53 }
 0x144   : > { %v10885_v57 = vmul.f32 %v9959_v31, %v10795_v15 }
 0x145   : > { %13185 = vst [vmem:[#allocation30_spill] sm:$0xff] %v10880_v49  ;;  %8879 = vmatprep.mubr.msk.f32.mxu1 %vm582_vm1, %v10880_v49 }
 0x146   : > { %v9961_v56 = vpop.eup %9960  ;;  %13186 = vst [vmem:[#allocation31_spill] sm:$0xff] %v10885_v57  ;;  %8880 = vmatmul.mubr.msk.f32.gmra.mrb[58].mxu1 %vm582_vm1, %v10875_v42 }
 0x147   : > { %v9963_v44 = vpop.eup %9962  ;;  %v10890_v47 = vmul.f32 %v9961_v56, %v10800_v38  ;;  %v10392_v38 = vmov 0.0  }
 0x148   : > { %v10897_v53 = vmul.f32 %v9963_v44, %v10815_v35  ;;  %1842 = vst.msk [vmem:[#allocation2 + $0x20] sm:$0xff] %vm582_vm1, %v10392_v38  ;;  %1837 = vst.msk [vmem:[#allocation2] sm:$0xff] %vm582_vm1, %v10392_v38  ;;  %v1957_v35 = vld [vmem:[%s13052_s7] sm:$0xf] }
 0x149   : > { %13187 = vst [vmem:[#allocation32_spill] sm:$0xff] %v10890_v47  ;;  %8882 = vmatprep.mubr.msk.f32.mxu1 %vm582_vm1, %v10890_v47  ;;  %1843 = vst.msk [vmem:[#allocation2 + $0x28] sm:$0x3] %vm1839_vm2, %v10392_v38  ;;  %8938 = vmatprep.subr.msk.mxu0 %vm679_vm0, %v1957_v35 }
 0x14a   : > { %v9965_v52 = vpop.eup %9964  ;;  %8883 = vmatmul.mubr.msk.f32.gmra.mrb[60].mxu1 %vm582_vm1, %v10885_v57  ;;  %13188 = vst [vmem:[#allocation33_spill] sm:$0xff] %v10897_v53  ;;  %1838 = vst.msk [vmem:[#allocation2 + $0x8] sm:$0xff] %vm582_vm1, %v10392_v38  ;;  %8939 = vmatpush3.msk.msra.mxu0 %vm679_vm0, %v1957_v35 }
 0x14b   : > { %v10900_v15 = vmul.f32 %v9965_v52, %v10820_v60  ;;  %1840 = vst.msk [vmem:[#allocation2 + $0x10] sm:$0x3] %vm1839_vm2, %v10392_v38  ;;  %1846 = vst.msk [vmem:[#allocation2 + $0x40] sm:$0x3] %vm1839_vm2, %v10392_v38  ;;  %v7782_v60 = vld [vmem:[%s13052_s7 + $0x4] sm:$0xf]  ;;  %8988 = vmatprep.subr.msk.mxu0 %vm679_vm0, %v7849_v8 }
 0x14c   : > { %1841 = vst.msk [vmem:[#allocation2 + $0x18] sm:$0xff] %vm582_vm1, %v10392_v38  ;;  %1844 = vst.msk [vmem:[#allocation2 + $0x30] sm:$0xff] %vm582_vm1, %v10392_v38  ;;  %8888 = vmatprep.subr.msk.mxu1 %vm679_vm0, %v7782_v60 }
 0x14d   : > { %13189 = vst [vmem:[#allocation34_spill] sm:$0xff] %v10900_v15  ;;  %8885 = vmatprep.mubr.msk.f32.mxu1 %vm582_vm1, %v10900_v15  ;;  %1845 = vst.msk [vmem:[#allocation2 + $0x38] sm:$0xff] %vm582_vm1, %v10392_v38  ;;  %8889 = vmatpush3.msk.msra.mxu1 %vm679_vm0, %v7782_v60 }
 0x14e   : > { %8886 = vmatmul.mubr.msk.f32.gmra.mrb[62].mxu1 %vm582_vm1, %v10897_v53  ;;  %1847 = vst.msk [vmem:[#allocation2 + $0x48] sm:$0xff] %vm582_vm1, %v10392_v38  ;;  %1848 = vst.msk [vmem:[#allocation2 + $0x50] sm:$0xff] %vm582_vm1, %v10392_v38  ;;  %9538 = vmatprep.subr.msk.mxu1 %vm679_vm0, %v1957_v35 }
 0x14f   : > { %1849 = vst.msk [vmem:[#allocation2 + $0x58] sm:$0x3] %vm1839_vm2, %v10392_v38  ;;  %1852 = vst.msk [vmem:[#allocation2 + $0x70] sm:$0x3] %vm1839_vm2, %v10392_v38  ;;  %v1925_v36 = vld [vmem:[#allocation2] sm:$0xff] }
 0x150   : > { %1850 = vst.msk [vmem:[#allocation2 + $0x60] sm:$0xff] %vm582_vm1, %v10392_v38  ;;  %1851 = vst.msk [vmem:[#allocation2 + $0x68] sm:$0xff] %vm582_vm1, %v10392_v38  ;;  %8940 = vmatprep.mubr.msk.f32.mxu0 %vm582_vm1, %v1925_v36 }
 0x151   : > { %1853 = vst.msk [vmem:[#allocation2 + $0x78] sm:$0xff] %vm582_vm1, %v10392_v38  ;;  %1854 = vst.msk [vmem:[#allocation2 + $0x80] sm:$0xff] %vm582_vm1, %v10392_v38  ;;  %v1958_v25 = vld [vmem:[#allocation2 + $0x1] sm:$0xff] }
 0x152   : > { %1855 = vst.msk [vmem:[#allocation2 + $0x88] sm:$0x3] %vm1839_vm2, %v10392_v38  ;;  %1858 = vst.msk [vmem:[#allocation2 + $0xa0] sm:$0x3] %vm1839_vm2, %v10392_v38  ;;  %v1959_v55 = vld [vmem:[#allocation2 + $0x9] sm:$0xff]  ;;  %8890 = vmatprep.mubr.msk.f32.mxu1 %vm582_vm1, %v1958_v25 }
 0x153   : > { %1856 = vst.msk [vmem:[#allocation2 + $0x90] sm:$0xff] %vm582_vm1, %v10392_v38  ;;  %1857 = vst.msk [vmem:[#allocation2 + $0x98] sm:$0xff] %vm582_vm1, %v10392_v38  ;;  %v1926_v24 = vld [vmem:[#allocation2 + $0x8] sm:$0xff]  ;;  %8891 = vmatmul.mubr.msk.f32.vlgmr.msra.gmra.mrb[64].mxu1 %vm582_vm1, %v1959_v55 }
 0x154   : > { %1859 = vst.msk [vmem:[#allocation2 + $0xa8] sm:$0xff] %vm582_vm1, %v10392_v38  ;;  %1860 = vst.msk [vmem:[#allocation2 + $0xb0] sm:$0xff] %vm582_vm1, %v10392_v38  ;;  %8941 = vmatmul.mubr.msk.f32.vlgmr.msra.gmra.mrb[0].mxu0 %vm582_vm1, %v1926_v24  ;;  %9539 = vmatpush3.msk.msra.mxu1 %vm679_vm0, %v1957_v35 }
 0x155   : > { %1861 = vst.msk [vmem:[#allocation2 + $0xb8] sm:$0x3] %vm1839_vm2, %v10392_v38  ;;  %1864 = vst.msk [vmem:[#allocation2 + $0xd0] sm:$0x3] %vm1839_vm2, %v10392_v38  ;;  %8989 = vmatpush3.msk.msra.mxu0 %vm679_vm0, %v7849_v8 }
 0x156   : > { %1862 = vst.msk [vmem:[#allocation2 + $0xc0] sm:$0xff] %vm582_vm1, %v10392_v38  ;;  %1863 = vst.msk [vmem:[#allocation2 + $0xc8] sm:$0xff] %vm582_vm1, %v10392_v38  ;;  %9038 = vmatprep.subr.msk.mxu0 %vm679_vm0, %v10984_v62 }
 0x157   : > { %1865 = vst.msk [vmem:[#allocation2 + $0xd8] sm:$0xff] %vm582_vm1, %v10392_v38  ;;  %1866 = vst.msk [vmem:[#allocation2 + $0xe0] sm:$0xff] %vm582_vm1, %v10392_v38 }
 0x158   : > { %1867 = vst.msk [vmem:[#allocation2 + $0xe8] sm:$0x3] %vm1839_vm2, %v10392_v38  ;;  %1870 = vst.msk [vmem:[#allocation2 + $0x100] sm:$0x3] %vm1839_vm2, %v10392_v38 }
 0x159   : > { %1868 = vst.msk [vmem:[#allocation2 + $0xf0] sm:$0xff] %vm582_vm1, %v10392_v38  ;;  %1869 = vst.msk [vmem:[#allocation2 + $0xf8] sm:$0xff] %vm582_vm1, %v10392_v38 }
 0x15a   : > { %1871 = vst.msk [vmem:[#allocation2 + $0x108] sm:$0xff] %vm582_vm1, %v10392_v38  ;;  %1872 = vst.msk [vmem:[#allocation2 + $0x110] sm:$0xff] %vm582_vm1, %v10392_v38 }
 0x15b   : > { %1873 = vst.msk [vmem:[#allocation2 + $0x118] sm:$0x3] %vm1839_vm2, %v10392_v38  ;;  %1876 = vst.msk [vmem:[#allocation2 + $0x130] sm:$0x3] %vm1839_vm2, %v10392_v38 }
 0x15c   : > { %1874 = vst.msk [vmem:[#allocation2 + $0x120] sm:$0xff] %vm582_vm1, %v10392_v38  ;;  %1875 = vst.msk [vmem:[#allocation2 + $0x128] sm:$0xff] %vm582_vm1, %v10392_v38 }
 0x15d   : > { %1877 = vst.msk [vmem:[#allocation2 + $0x138] sm:$0xff] %vm582_vm1, %v10392_v38  ;;  %1878 = vst.msk [vmem:[#allocation2 + $0x140] sm:$0xff] %vm582_vm1, %v10392_v38 }
 0x15e   : > { %1879 = vst.msk [vmem:[#allocation2 + $0x148] sm:$0x3] %vm1839_vm2, %v10392_v38  ;;  %1882 = vst.msk [vmem:[#allocation2 + $0x160] sm:$0x3] %vm1839_vm2, %v10392_v38 }
 0x15f   : > { %1880 = vst.msk [vmem:[#allocation2 + $0x150] sm:$0xff] %vm582_vm1, %v10392_v38  ;;  %1881 = vst.msk [vmem:[#allocation2 + $0x158] sm:$0xff] %vm582_vm1, %v10392_v38 }
 0x160   : > { %1883 = vst.msk [vmem:[#allocation2 + $0x168] sm:$0xff] %vm582_vm1, %v10392_v38  ;;  %1884 = vst.msk [vmem:[#allocation2 + $0x170] sm:$0xff] %vm582_vm1, %v10392_v38 }
 0x161   : > { %1885 = vst.msk [vmem:[#allocation2 + $0x178] sm:$0x3] %vm1839_vm2, %v10392_v38  ;;  %1888 = vst.msk [vmem:[#allocation2 + $0x190] sm:$0x3] %vm1839_vm2, %v10392_v38 }
 0x162   : > { %1886 = vst.msk [vmem:[#allocation2 + $0x180] sm:$0xff] %vm582_vm1, %v10392_v38  ;;  %1887 = vst.msk [vmem:[#allocation2 + $0x188] sm:$0xff] %vm582_vm1, %v10392_v38 }
 0x163   : > { %1889 = vst.msk [vmem:[#allocation2 + $0x198] sm:$0xff] %vm582_vm1, %v10392_v38  ;;  %1890 = vst.msk [vmem:[#allocation2 + $0x1a0] sm:$0xff] %vm582_vm1, %v10392_v38 }
 0x164   : > { %1891 = vst.msk [vmem:[#allocation2 + $0x1a8] sm:$0x3] %vm1839_vm2, %v10392_v38 }
 0x1e2   : > { %v8842_v3 = vpop.f32.mrb[32].mxu1 }
 0x1e3   : > { %v1543_v1 = vmul.f32 %v8842_v3, %v10991_v2  ;;  %v1376_v9 = vpop.f32.mrb[33].mxu1 }
 0x1e4   : > { %v1542_v0 = vmul.f32 %v10991_v2, %v1376_v9 }
 0x1e5   : > { %v11001_v30 = vadd.f32 %v10996_v41, %v1543_v1 }
 0x1e6   : > { %v11004_v16 = vadd.f32 %v10996_v41, %v1542_v0  ;;  %v8845_v17 = vpop.f32.mrb[34].mxu1 }
 0x1e7   : > { %v7751_v50 = vmul.f32 -1.442695, %v11001_v30  ;;  %v1545_v21 = vmul.f32 %v8845_v17, %v10991_v2  ;;  %v1386_v22 = vpop.f32.mrb[35].mxu1 }
 0x1e8   : > { %v7750_v23 = vmul.f32 -1.442695, %v11004_v16  ;;  %v1544_v27 = vmul.f32 %v10991_v2, %v1386_v22 }
 0x1e9   : > { %9966 = vpow2.f32 %v7751_v50  ;;  %v11011_v32 = vadd.f32 %v10996_v41, %v1545_v21 }
 0x1ea   : > { %9968 = vpow2.f32 %v7750_v23  ;;  %v11014_v33 = vadd.f32 %v10996_v41, %v1544_v27  ;;  %v8848_v6 = vpop.f32.mrb[36].mxu1 }
 0x1eb   : > { %v7753_v54 = vmul.f32 -1.442695, %v11011_v32  ;;  %v1547_v37 = vmul.f32 %v8848_v6, %v10991_v2  ;;  %v1396_v31 = vpop.f32.mrb[37].mxu1 }
 0x1ec   : > { %v7752_v56 = vmul.f32 -1.442695, %v11014_v33  ;;  %v1546_v44 = vmul.f32 %v10991_v2, %v1396_v31 }
 0x1ed   : > { %9970 = vpow2.f32 %v7753_v54  ;;  %v11021_v52 = vadd.f32 %v10996_v41, %v1547_v37 }
 0x1ee   : > { %9972 = vpow2.f32 %v7752_v56  ;;  %v11024_v38 = vadd.f32 %v10996_v41, %v1546_v44 }
 0x1ef   : > { %v7755_v35 = vmul.f32 -1.442695, %v11021_v52 }
 0x1f0   : > { %v7754_v60 = vmul.f32 -1.442695, %v11024_v38  ;;  %v8851_v25 = vpop.f32.mrb[38].mxu1 }
 0x1f1   : > { %9974 = vpow2.f32 %v7755_v35  ;;  %v1549_v36 = vmul.f32 %v8851_v25, %v10991_v2  ;;  %v1406_v55 = vpop.f32.mrb[39].mxu1 }
 0x1f2   : > { %9976 = vpow2.f32 %v7754_v60  ;;  %v1548_v24 = vmul.f32 %v10991_v2, %v1406_v55 }
 0x1f3   : > { %v9967_v8 = vpop.eup %9966  ;;  %v11031_v3 = vadd.f32 %v10996_v41, %v1549_v36 }
 0x1f4   : > { %v9969_v1 = vpop.eup %9968  ;;  %v1710_v9 = vadd.f32 1.0, %v9967_v8  ;;  %v11034_v0 = vadd.f32 %v10996_v41, %v1548_v24  ;;  %v8854_v17 = vpop.f32.mrb[40].mxu1 }
 0x1f5   : > { %v1709_v50 = vadd.f32 1.0, %v9969_v1  ;;  %v7757_v21 = vmul.f32 -1.442695, %v11031_v3  ;;  %v1551_v22 = vmul.f32 %v8854_v17, %v10991_v2  ;;  %v1416_v23 = vpop.f32.mrb[41].mxu1 }
 0x1f6   : > { %9978 = vrcp.f32 %v1710_v9  ;;  %v7756_v27 = vmul.f32 -1.442695, %v11034_v0  ;;  %v1550_v6 = vmul.f32 %v10991_v2, %v1416_v23 }
 0x1f7   : > { %v9971_v54 = vpop.eup %9970  ;;  %9980 = vrcp.f32 %v1709_v50  ;;  %v11041_v37 = vadd.f32 %v10996_v41, %v1551_v22 }
 0x1f8   : > { %v9973_v31 = vpop.eup %9972  ;;  %v1712_v56 = vadd.f32 1.0, %v9971_v54  ;;  %9982 = vpow2.f32 %v7757_v21  ;;  %v11044_v44 = vadd.f32 %v10996_v41, %v1550_v6  ;;  %v8857_v35 = vpop.f32.mrb[42].mxu1 }
 0x1f9   : > { %v1711_v60 = vadd.f32 1.0, %v9973_v31  ;;  %9984 = vpow2.f32 %v7756_v27  ;;  %v7759_v25 = vmul.f32 -1.442695, %v11041_v37  ;;  %v1553_v36 = vmul.f32 %v8857_v35, %v10991_v2  ;;  %v1426_v55 = vpop.f32.mrb[43].mxu1 }
 0x1fa   : > { %9986 = vrcp.f32 %v1712_v56  ;;  %v7758_v24 = vmul.f32 -1.442695, %v11044_v44  ;;  %v1552_v8 = vmul.f32 %v10991_v2, %v1426_v55 }
 0x1fb   : > { %v9975_v1 = vpop.eup %9974  ;;  %9988 = vrcp.f32 %v1711_v60  ;;  %v11051_v9 = vadd.f32 %v10996_v41, %v1553_v36 }
 0x1fc   : > { %v9977_v17 = vpop.eup %9976  ;;  %v1714_v50 = vadd.f32 1.0, %v9975_v1  ;;  %9990 = vpow2.f32 %v7759_v25  ;;  %v11054_v21 = vadd.f32 %v10996_v41, %v1552_v8  ;;  %v8860_v22 = vpop.f32.mrb[44].mxu1 }
 0x1fd   : > { %v1713_v23 = vadd.f32 1.0, %v9977_v17  ;;  %9992 = vpow2.f32 %v7758_v24  ;;  %v7761_v27 = vmul.f32 -1.442695, %v11051_v9  ;;  %v1555_v6 = vmul.f32 %v8860_v22, %v10991_v2  ;;  %v1436_v54 = vpop.f32.mrb[45].mxu1 }
 0x1fe   : > { %9994 = vrcp.f32 %v1714_v50  ;;  %v7760_v31 = vmul.f32 -1.442695, %v11054_v21  ;;  %v1554_v56 = vmul.f32 %v10991_v2, %v1436_v54 }
 0x1ff   : > { %9996 = vrcp.f32 %v1713_v23  ;;  %v11061_v35 = vadd.f32 %v10996_v41, %v1555_v6 }
 0x200   : > { %v9979_v60 = vpop.eup %9978  ;;  %9998 = vpow2.f32 %v7761_v27  ;;  %v11064_v25 = vadd.f32 %v10996_v41, %v1554_v56  ;;  %v8863_v36 = vpop.f32.mrb[46].mxu1 }
 0x201   : > { %v9981_v55 = vpop.eup %9980  ;;  %v1806_v24 = vmul.f32 %v9979_v60, %v11001_v30  ;;  %10000 = vpow2.f32 %v7760_v31  ;;  %v7763_v8 = vmul.f32 -1.442695, %v11061_v35  ;;  %v1557_v1 = vmul.f32 %v8863_v36, %v10991_v2  ;;  %v1446_v17 = vpop.f32.mrb[47].mxu1 }
 0x202   : > { %v9983_v50 = vpop.eup %9982  ;;  %v1805_v22 = vmul.f32 %v9981_v55, %v11004_v16  ;;  %v7762_v23 = vmul.f32 -1.442695, %v11064_v25  ;;  %v1556_v27 = vmul.f32 %v10991_v2, %v1446_v17 }
 0x203   : > { %v9985_v6 = vpop.eup %9984  ;;  %1894 = vst.msk [vmem:[#allocation2 + $0x21] sm:$0xff] %vm582_vm1, %v1806_v24  ;;  %v1716_v54 = vadd.f32 1.0, %v9983_v50  ;;  %10002 = vpow2.f32 %v7763_v8  ;;  %v11074_v30 = vadd.f32 %v10996_v41, %v1557_v1 }
 0x204   : > { %v9987_v31 = vpop.eup %9986  ;;  %1893 = vst.msk [vmem:[#allocation2 + $0x19] sm:$0xff] %vm582_vm1, %v1805_v22  ;;  %v1715_v56 = vadd.f32 1.0, %v9985_v6  ;;  %10004 = vpow2.f32 %v7762_v23  ;;  %v11078_v60 = vadd.f32 %v10996_v41, %v1556_v27  ;;  %v8866_v16 = vpop.f32.mrb[48].mxu1 }
 0x205   : > { %v9989_v36 = vpop.eup %9988  ;;  %v1808_v55 = vmul.f32 %v9987_v31, %v11011_v32  ;;  %10006 = vrcp.f32 %v1716_v54  ;;  %v7765_v24 = vmul.f32 -1.442695, %v11074_v30  ;;  %v1559_v8 = vmul.f32 %v8866_v16, %v10991_v2  ;;  %v1456_v17 = vpop.f32.mrb[49].mxu1 }
 0x206   : > { %v9991_v1 = vpop.eup %9990  ;;  %v1807_v50 = vmul.f32 %v9989_v36, %v11014_v33  ;;  %10008 = vrcp.f32 %v1715_v56  ;;  %v7764_v22 = vmul.f32 -1.442695, %v11078_v60  ;;  %v1558_v23 = vmul.f32 %v10991_v2, %v1456_v17 }
 0x207   : > { %v9993_v27 = vpop.eup %9992  ;;  %1896 = vst.msk [vmem:[#allocation2 + $0x39] sm:$0xff] %vm582_vm1, %v1808_v55  ;;  %v1718_v6 = vadd.f32 1.0, %v9991_v1  ;;  %10010 = vpow2.f32 %v7765_v24  ;;  %v11088_v32 = vadd.f32 %v10996_v41, %v1559_v8 }
 0x208   : > { %v9995_v54 = vpop.eup %9994  ;;  %1895 = vst.msk [vmem:[#allocation2 + $0x31] sm:$0xff] %vm582_vm1, %v1807_v50  ;;  %v1717_v31 = vadd.f32 1.0, %v9993_v27  ;;  %10012 = vpow2.f32 %v7764_v22  ;;  %v11092_v33 = vadd.f32 %v10996_v41, %v1558_v23 }
 0x209   : > { %v9997_v56 = vpop.eup %9996  ;;  %v1810_v16 = vmul.f32 %v9995_v54, %v11021_v52  ;;  %10014 = vrcp.f32 %v1718_v6  ;;  %v7767_v36 = vmul.f32 -1.442695, %v11088_v32  ;;  %v8869_v55 = vpop.f32.mrb[50].mxu1 }
 0x20a   : > { %v9999_v17 = vpop.eup %9998  ;;  %v1809_v24 = vmul.f32 %v9997_v56, %v11024_v38  ;;  %10016 = vrcp.f32 %v1717_v31  ;;  %v7766_v8 = vmul.f32 -1.442695, %v11092_v33  ;;  %v1561_v1 = vmul.f32 %v8869_v55, %v10991_v2  ;;  %v1466_v50 = vpop.f32.mrb[51].mxu1  ;;  %v11115_v56 = vld [vmem:[#allocation2 + $0x21] sm:$0xff] }
 0x20b   : > { %v10001_v22 = vpop.eup %10000  ;;  %1898 = vst.msk [vmem:[#allocation2 + $0x51] sm:$0xff] %vm582_vm1, %v1810_v16  ;;  %v1720_v23 = vadd.f32 1.0, %v9999_v17  ;;  %10018 = vpow2.f32 %v7767_v36  ;;  %v1560_v52 = vmul.f32 %v10991_v2, %v1466_v50  ;;  %v11101_v27 = vld [vmem:[#allocation2 + $0x19] sm:$0xff] }
 0x20c   : > { %v11103_v6 = vld [vmem:[#allocation2 + $0x18] sm:$0xff]  ;;  %v11105_v54 = vld [vmem:[#allocation2 + $0x20] sm:$0xff]  ;;  %1897 = vst.msk [vmem:[#allocation2 + $0x49] sm:$0xff] %vm582_vm1, %v1809_v24  ;;  %v1719_v38 = vadd.f32 1.0, %v10001_v22  ;;  %10020 = vpow2.f32 %v7766_v8  ;;  %v11109_v31 = vadd.f32 %v10996_v41, %v1561_v1  ;;  %8893 = vmatprep.mubr.msk.f32.mxu1 %vm582_vm1, %v11101_v27 }
 0x20d   : > { %8943 = vmatprep.mubr.msk.f32.mxu0 %vm582_vm1, %v11103_v6  ;;  %v10003_v16 = vpop.eup %10002  ;;  %10022 = vrcp.f32 %v1720_v23  ;;  %v11118_v36 = vadd.f32 %v10996_v41, %v1560_v52  ;;  %v8872_v55 = vpop.f32.mrb[52].mxu1  ;;  %8894 = vmatmul.mubr.msk.f32.gmra.mrb[66].mxu1 %vm582_vm1, %v11115_v56 }
 0x20e   : > { %8944 = vmatmul.mubr.msk.f32.gmra.mrb[2].mxu0 %vm582_vm1, %v11105_v54  ;;  %v10005_v17 = vpop.eup %10004  ;;  %10024 = vrcp.f32 %v1719_v38  ;;  %v1722_v24 = vadd.f32 1.0, %v10003_v16  ;;  %v7769_v8 = vmul.f32 -1.442695, %v11109_v31  ;;  %v1563_v1 = vmul.f32 %v8872_v55, %v10991_v2  ;;  %v1476_v50 = vpop.f32.mrb[53].mxu1  ;;  %v11142_v55 = vld [vmem:[#allocation2 + $0x39] sm:$0xff] }
 0x20f   : > { %v10007_v22 = vpop.eup %10006  ;;  %v1721_v23 = vadd.f32 1.0, %v10005_v17  ;;  %v7768_v52 = vmul.f32 -1.442695, %v11118_v36  ;;  %v1562_v53 = vmul.f32 %v10991_v2, %v1476_v50  ;;  %v11128_v57 = vld [vmem:[#allocation2 + $0x31] sm:$0xff] }
 0x210   : > { %v11130_v15 = vld [vmem:[#allocation2 + $0x30] sm:$0xff]  ;;  %v11132_v42 = vld [vmem:[#allocation2 + $0x38] sm:$0xff]  ;;  %v10009_v47 = vpop.eup %10008  ;;  %v1812_v38 = vmul.f32 %v10007_v22, %v11031_v3  ;;  %10026 = vrcp.f32 %v1722_v24  ;;  %v11136_v16 = vadd.f32 %v10996_v41, %v1563_v1  ;;  %8896 = vmatprep.mubr.msk.f32.mxu1 %vm582_vm1, %v11128_v57 }
 0x211   : > { %8946 = vmatprep.mubr.msk.f32.mxu0 %vm582_vm1, %v11130_v15  ;;  %v10011_v17 = vpop.eup %10010  ;;  %v1811_v50 = vmul.f32 %v10009_v47, %v11034_v0  ;;  %10028 = vrcp.f32 %v1721_v23  ;;  %v11146_v12 = vadd.f32 %v10996_v41, %v1562_v53  ;;  %v8875_v3 = vpop.f32.mrb[54].mxu1  ;;  %8897 = vmatmul.mubr.msk.f32.gmra.mrb[68].mxu1 %vm582_vm1, %v11142_v55 }
 0x212   : > { %8947 = vmatmul.mubr.msk.f32.gmra.mrb[4].mxu0 %vm582_vm1, %v11132_v42  ;;  %v10013_v24 = vpop.eup %10012  ;;  %1900 = vst.msk [vmem:[#allocation2 + $0x69] sm:$0xff] %vm582_vm1, %v1812_v38  ;;  %v1724_v1 = vadd.f32 1.0, %v10011_v17  ;;  %10030 = vpow2.f32 %v7769_v8  ;;  %v7771_v22 = vmul.f32 -1.442695, %v11136_v16  ;;  %v1565_v47 = vmul.f32 %v8875_v3, %v10991_v2  ;;  %v1486_v0 = vpop.f32.mrb[55].mxu1 }
 0x213   : > { %v10015_v23 = vpop.eup %10014  ;;  %1899 = vst.msk [vmem:[#allocation2 + $0x61] sm:$0xff] %vm582_vm1, %v1811_v50  ;;  %v1723_v53 = vadd.f32 1.0, %v10013_v24  ;;  %10032 = vpow2.f32 %v7768_v52  ;;  %v7770_v49 = vmul.f32 -1.442695, %v11146_v12  ;;  %v1564_v7 = vmul.f32 %v10991_v2, %v1486_v0  ;;  %v11158_v45 = vld [vmem:[#allocation2 + $0x49] sm:$0xff]  ;;  %v11172_v52 = vld [vmem:[#allocation2 + $0x51] sm:$0xff] }
 0x214   : > { %v11160_v26 = vld [vmem:[#allocation2 + $0x48] sm:$0xff]  ;;  %v11162_v38 = vld [vmem:[#allocation2 + $0x50] sm:$0xff]  ;;  %v10017_v8 = vpop.eup %10016  ;;  %v1814_v17 = vmul.f32 %v10015_v23, %v11041_v37  ;;  %10034 = vrcp.f32 %v1724_v1  ;;  %v11166_v3 = vadd.f32 %v10996_v41, %v1565_v47  ;;  %8899 = vmatprep.mubr.msk.f32.mxu1 %vm582_vm1, %v11158_v45 }
 0x215   : > { %8949 = vmatprep.mubr.msk.f32.mxu0 %vm582_vm1, %v11160_v26  ;;  %v10019_v50 = vpop.eup %10018  ;;  %v1813_v24 = vmul.f32 %v10017_v8, %v11044_v44  ;;  %10036 = vrcp.f32 %v1723_v53  ;;  %v11176_v0 = vadd.f32 %v10996_v41, %v1564_v7  ;;  %v8878_v37 = vpop.f32.mrb[56].mxu1  ;;  %8900 = vmatmul.mubr.msk.f32.gmra.mrb[70].mxu1 %vm582_vm1, %v11172_v52 }
 0x216   : > { %8950 = vmatmul.mubr.msk.f32.gmra.mrb[6].mxu0 %vm582_vm1, %v11162_v38  ;;  %v10021_v1 = vpop.eup %10020  ;;  %1902 = vst.msk [vmem:[#allocation2 + $0x81] sm:$0xff] %vm582_vm1, %v1814_v17  ;;  %v1726_v47 = vadd.f32 1.0, %v10019_v50  ;;  %10038 = vpow2.f32 %v7771_v22  ;;  %v7773_v23 = vmul.f32 -1.442695, %v11166_v3  ;;  %v1567_v44 = vmul.f32 %v8878_v37, %v10991_v2  ;;  %v1496_v53 = vpop.f32.mrb[57].mxu1 }
 0x217   : > { %v10023_v8 = vpop.eup %10022  ;;  %1901 = vst.msk [vmem:[#allocation2 + $0x79] sm:$0xff] %vm582_vm1, %v1813_v24  ;;  %v1725_v7 = vadd.f32 1.0, %v10021_v1  ;;  %10040 = vpow2.f32 %v7770_v49  ;;  %v7772_v18 = vmul.f32 -1.442695, %v11176_v0  ;;  %v1566_v14 = vmul.f32 %v10991_v2, %v1496_v53 }
 0x218   : > { %v10025_v39 = vpop.eup %10024  ;;  %v1816_v34 = vmul.f32 %v10023_v8, %v11051_v9  ;;  %10042 = vrcp.f32 %v1726_v47  ;;  %v11190_v22 = vadd.f32 %v10996_v41, %v1567_v44 }
 0x219   : > { %v1815_v17 = vmul.f32 %v10025_v39, %v11054_v21  ;;  %10044 = vrcp.f32 %v1725_v7  ;;  %v11194_v50 = vadd.f32 %v10996_v41, %v1566_v14  ;;  %v8881_v24 = vpop.f32.mrb[58].mxu1 }
 0x21a   : > { %v10027_v37 = vpop.eup %10026  ;;  %1904 = vst.msk [vmem:[#allocation2 + $0x99] sm:$0xff] %vm582_vm1, %v1816_v34  ;;  %10046 = vpow2.f32 %v7773_v23  ;;  %v7775_v49 = vmul.f32 -1.442695, %v11190_v22  ;;  %v1569_v1 = vmul.f32 %v8881_v24, %v10991_v2  ;;  %v1506_v9 = vpop.f32.mrb[59].mxu1  ;;  %v11199_v47 = vld [vmem:[#allocation2 + $0x61] sm:$0xff]  ;;  %v11213_v23 = vld [vmem:[#allocation2 + $0x69] sm:$0xff] }
 0x21b   : > { %v11201_v44 = vld [vmem:[#allocation2 + $0x60] sm:$0xff]  ;;  %v11203_v53 = vld [vmem:[#allocation2 + $0x68] sm:$0xff]  ;;  %v10029_v39 = vpop.eup %10028  ;;  %1903 = vst.msk [vmem:[#allocation2 + $0x91] sm:$0xff] %vm582_vm1, %v1815_v17  ;;  %v1818_v14 = vmul.f32 %v10027_v37, %v11061_v35  ;;  %10048 = vpow2.f32 %v7772_v18  ;;  %v7774_v34 = vmul.f32 -1.442695, %v11194_v50  ;;  %v1568_v21 = vmul.f32 %v10991_v2, %v1506_v9  ;;  %8902 = vmatprep.mubr.msk.f32.mxu1 %vm582_vm1, %v11199_v47 }
 0x21c   : > { %8952 = vmatprep.mubr.msk.f32.mxu0 %vm582_vm1, %v11201_v44  ;;  %v10031_v8 = vpop.eup %10030  ;;  %v1817_v7 = vmul.f32 %v10029_v39, %v11064_v25  ;;  %10050 = vpow2.f32 %v7775_v49  ;;  %v11217_v17 = vadd.f32 %v10996_v41, %v1569_v1  ;;  %8903 = vmatmul.mubr.msk.f32.gmra.mrb[72].mxu1 %vm582_vm1, %v11213_v23 }
 0x21d   : > { %8953 = vmatmul.mubr.msk.f32.gmra.mrb[8].mxu0 %vm582_vm1, %v11203_v53  ;;  %v10033_v18 = vpop.eup %10032  ;;  %1906 = vst.msk [vmem:[#allocation2 + $0xb1] sm:$0xff] %vm582_vm1, %v1818_v14  ;;  %v1728_v35 = vadd.f32 1.0, %v10031_v8  ;;  %10052 = vpow2.f32 %v7774_v34  ;;  %v11225_v24 = vadd.f32 %v10996_v41, %v1568_v21  ;;  %v8884_v37 = vpop.f32.mrb[60].mxu1 }
 0x21e   : > { %v10035_v25 = vpop.eup %10034  ;;  %1905 = vst.msk [vmem:[#allocation2 + $0xa9] sm:$0xff] %vm582_vm1, %v1817_v7  ;;  %v1727_v49 = vadd.f32 1.0, %v10033_v18  ;;  %v7777_v1 = vmul.f32 -1.442695, %v11217_v17  ;;  %v1571_v9 = vmul.f32 %v8884_v37, %v10991_v2  ;;  %v1516_v39 = vpop.f32.mrb[61].mxu1  ;;  %v11230_v40 = vld [vmem:[#allocation2 + $0x79] sm:$0xff] }
 0x21f   : > { %v11232_v20 = vld [vmem:[#allocation2 + $0x78] sm:$0xff]  ;;  %v10037_v14 = vpop.eup %10036  ;;  %v1820_v34 = vmul.f32 %v10035_v25, %v11074_v30  ;;  %10054 = vrcp.f32 %v1728_v35  ;;  %v7776_v21 = vmul.f32 -1.442695, %v11225_v24  ;;  %v1570_v8 = vmul.f32 %v10991_v2, %v1516_v39  ;;  %8905 = vmatprep.mubr.msk.f32.mxu1 %vm582_vm1, %v11230_v40  ;;  %v11241_v7 = vld [vmem:[#allocation2 + $0x81] sm:$0xff] }
 0x220   : > { %8955 = vmatprep.mubr.msk.f32.mxu0 %vm582_vm1, %v11232_v20  ;;  %v11243_v18 = vld [vmem:[#allocation2 + $0x80] sm:$0xff]  ;;  %v10039_v37 = vpop.eup %10038  ;;  %v1819_v51 = vmul.f32 %v10037_v14, %v11078_v60  ;;  %10056 = vrcp.f32 %v1727_v49  ;;  %v11247_v30 = vadd.f32 %v10996_v41, %v1571_v9  ;;  %8906 = vmatmul.mubr.msk.f32.gmra.mrb[74].mxu1 %vm582_vm1, %v11241_v7 }
 0x221   : > { %8956 = vmatmul.mubr.msk.f32.gmra.mrb[10].mxu0 %vm582_vm1, %v11243_v18  ;;  %v10041_v35 = vpop.eup %10040  ;;  %1908 = vst.msk [vmem:[#allocation2 + $0xc9] sm:$0xff] %vm582_vm1, %v1820_v34  ;;  %v1730_v25 = vadd.f32 1.0, %v10039_v37  ;;  %10058 = vpow2.f32 %v7777_v1  ;;  %v11255_v39 = vadd.f32 %v10996_v41, %v1570_v8  ;;  %v8887_v13 = vpop.f32.mrb[62].mxu1  ;;  %v11435_v28 = vld [vmem:[#allocation2 + $0x9a] sm:$0xff] }
 0x222   : > { %v10043_v60 = vpop.eup %10042  ;;  %1907 = vst.msk [vmem:[#allocation2 + $0xc1] sm:$0xff] %vm582_vm1, %v1819_v51  ;;  %v1729_v49 = vadd.f32 1.0, %v10041_v35  ;;  %10060 = vpow2.f32 %v7776_v21  ;;  %v7779_v9 = vmul.f32 -1.442695, %v11247_v30  ;;  %v11259_v14 = vld [vmem:[#allocation2 + $0x91] sm:$0xff]  ;;  %v1573_v34 = vmul.f32 %v8887_v13, %v10991_v2  ;;  %v11272_v51 = vld [vmem:[#allocation2 + $0x99] sm:$0xff] }
 0x223   : > { %v11261_v4 = vld [vmem:[#allocation2 + $0x90] sm:$0xff]  ;;  %v11263_v61 = vld [vmem:[#allocation2 + $0x98] sm:$0xff]  ;;  %v10045_v1 = vpop.eup %10044  ;;  %v1822_v8 = vmul.f32 %v10043_v60, %v11088_v32  ;;  %10062 = vrcp.f32 %v1730_v25  ;;  %v7778_v37 = vmul.f32 -1.442695, %v11255_v39  ;;  %8908 = vmatprep.mubr.msk.f32.mxu1 %vm582_vm1, %v11259_v14  ;;  %v1526_v21 = vpop.f32.mrb[63].mxu1  ;;  %13201 = vst [vmem:[#allocation46_spill] sm:$0xff] %v11435_v28 }
 0x224   : > { %8958 = vmatprep.mubr.msk.f32.mxu0 %vm582_vm1, %v11261_v4  ;;  %v10047_v35 = vpop.eup %10046  ;;  %v1821_v46 = vmul.f32 %v10045_v1, %v11092_v33  ;;  %10064 = vrcp.f32 %v1729_v49  ;;  %8909 = vmatmul.mubr.msk.f32.gmra.mrb[76].mxu1 %vm582_vm1, %v11272_v51  ;;  %v11280_v13 = vadd.f32 %v10996_v41, %v1573_v34  ;;  %v1572_v32 = vmul.f32 %v10991_v2, %v1526_v21  ;;  %v2640_v2 = vld [vmem:[#allocation2 + $0x2] sm:$0xff]  ;;  %v11298_v21 = vld [vmem:[#allocation2 + $0xb1] sm:$0xff] }
 0x225   : > { %8959 = vmatmul.mubr.msk.f32.gmra.mrb[12].mxu0 %vm582_vm1, %v11263_v61  ;;  %v10049_v25 = vpop.eup %10048  ;;  %1910 = vst.msk [vmem:[#allocation2 + $0xe1] sm:$0xff] %vm582_vm1, %v1822_v8  ;;  %v1732_v60 = vadd.f32 1.0, %v10047_v35  ;;  %10066 = vpow2.f32 %v7779_v9  ;;  %v11284_v43 = vld [vmem:[#allocation2 + $0xa9] sm:$0xff] }
 0x226   : > { %v11286_v33 = vld [vmem:[#allocation2 + $0xa8] sm:$0xff]  ;;  %v11288_v49 = vld [vmem:[#allocation2 + $0xb0] sm:$0xff]  ;;  %v10051_v1 = vpop.eup %10050  ;;  %1909 = vst.msk [vmem:[#allocation2 + $0xd9] sm:$0xff] %vm582_vm1, %v1821_v46  ;;  %v1731_v48 = vadd.f32 1.0, %v10049_v25  ;;  %10068 = vpow2.f32 %v7778_v37  ;;  %8911 = vmatprep.mubr.msk.f32.mxu1 %vm582_vm1, %v11284_v43  ;;  %v11296_v9 = vadd.f32 %v10996_v41, %v1572_v32  ;;  %v7781_v35 = vmul.f32 -1.442695, %v11280_v13 }
 0x227   : > { %8961 = vmatprep.mubr.msk.f32.mxu0 %vm582_vm1, %v11286_v33  ;;  %v10053_v34 = vpop.eup %10052  ;;  %10070 = vrcp.f32 %v1732_v60  ;;  %v1734_v8 = vadd.f32 1.0, %v10051_v1  ;;  %v2641_v32 = vld [vmem:[#allocation2 + $0xa] sm:$0xff] }
 0x228   : > { %10072 = vrcp.f32 %v1731_v48  ;;  %v1733_v46 = vadd.f32 1.0, %v10053_v34  ;;  %8912 = vmatmul.mubr.msk.f32.gmra.mrb[78].mxu1 %vm582_vm1, %v11298_v21  ;;  %v7780_v37 = vmul.f32 -1.442695, %v11296_v9  ;;  %v11313_v19 = vld [vmem:[#allocation2 + $0xc9] sm:$0xff] }
 0x229   : > { %8962 = vmatmul.mubr.msk.f32.gmra.mrb[14].mxu0 %vm582_vm1, %v11288_v49  ;;  %v10055_v25 = vpop.eup %10054  ;;  %10074 = vrcp.f32 %v1734_v8  ;;  %v11306_v41 = vld [vmem:[#allocation2 + $0xc1] sm:$0xff]  ;;  %v11318_v8 = vld [vmem:[%s13052_s7 + $0x10] sm:$0xf] }
 0x22a   : > { %8990 = vmatprep.mubr.msk.f32.mxu0 %vm582_vm1, %v2640_v2  ;;  %v10057_v60 = vpop.eup %10056  ;;  %v1824_v1 = vmul.f32 %v10055_v25, %v11109_v31  ;;  %10076 = vrcp.f32 %v1733_v46  ;;  %8914 = vmatprep.mubr.msk.f32.mxu1 %vm582_vm1, %v11306_v41  ;;  %v11324_v31 = vld [vmem:[#allocation2 + $0x1a] sm:$0xff]  ;;  %v11442_v29 = vld [vmem:[#allocation2 + $0xaa] sm:$0xff] }
 0x22b   : > { %v10059_v48 = vpop.eup %10058  ;;  %v1823_v34 = vmul.f32 %v10057_v60, %v11118_v36  ;;  %10078 = vpow2.f32 %v7781_v35  ;;  %13190 = vst [vmem:[#allocation35_spill] sm:$0xff] %v11324_v31  ;;  %13202 = vst [vmem:[#allocation47_spill] sm:$0xff] %v11442_v29  ;;  %v11479_v58 = vld [vmem:[#allocation2 + $0xc8] sm:$0xff] }
 0x22c   : > { %v10061_v2 = vpop.eup %10060  ;;  %1912 = vst.msk [vmem:[#allocation2 + $0xf9] sm:$0xff] %vm582_vm1, %v1824_v1  ;;  %v1736_v5 = vadd.f32 1.0, %v10059_v48  ;;  %8915 = vmatmul.mubr.msk.f32.gmra.mrb[80].mxu1 %vm582_vm1, %v11313_v19  ;;  %10080 = vpow2.f32 %v7780_v37  ;;  %v11341_v1 = vld [vmem:[#allocation2 + $0x22] sm:$0xff] }
 0x22d   : > { %8991 = vmatmul.mubr.msk.f32.vlgmr.msra.gmra.mrb[0].mxu0 %vm582_vm1, %v2641_v32  ;;  %v10063_v36 = vpop.eup %10062  ;;  %1911 = vst.msk [vmem:[#allocation2 + $0xf1] sm:$0xff] %vm582_vm1, %v1823_v34  ;;  %v1735_v35 = vadd.f32 1.0, %v10061_v2  ;;  %v11331_v46 = vld [vmem:[#allocation2 + $0xd9] sm:$0xff]  ;;  %13191 = vst [vmem:[#allocation36_spill] sm:$0xff] %v11341_v1 }
 0x22e   : > { %9039 = vmatpush3.msk.msra.mxu0 %vm679_vm0, %v10984_v62  ;;  %8993 = vmatprep.mubr.msk.f32.mxu0 %vm582_vm1, %v11324_v31  ;;  %v10065_v25 = vpop.eup %10064  ;;  %v1826_v60 = vmul.f32 %v10063_v36, %v11136_v16  ;;  %10082 = vrcp.f32 %v1736_v5  ;;  %v11339_v62 = vld [vmem:[#allocation2 + $0xe1] sm:$0xff]  ;;  %v11348_v5 = vld [vmem:[#allocation2 + $0x32] sm:$0xff] }
 0x22f   : > { %8917 = vmatprep.mubr.msk.f32.mxu1 %vm582_vm1, %v11331_v46  ;;  %9088 = vmatprep.subr.msk.mxu0 %vm679_vm0, %v11318_v8  ;;  %v10067_v37 = vpop.eup %10066  ;;  %v1825_v32 = vmul.f32 %v10065_v25, %v11146_v12  ;;  %10084 = vrcp.f32 %v1735_v35  ;;  %13192 = vst [vmem:[#allocation37_spill] sm:$0xff] %v11348_v5  ;;  %v11477_v59 = vld [vmem:[#allocation2 + $0xda] sm:$0xff] }
 0x230   : > { %v10069_v48 = vpop.eup %10068  ;;  %1914 = vst.msk [vmem:[#allocation2 + $0x111] sm:$0xff] %vm582_vm1, %v1826_v60  ;;  %v1738_v34 = vadd.f32 1.0, %v10067_v37  ;;  %8918 = vmatmul.mubr.msk.f32.gmra.mrb[82].mxu1 %vm582_vm1, %v11339_v62  ;;  %v11355_v60 = vld [vmem:[#allocation2 + $0x3a] sm:$0xff]  ;;  %13208 = vst [vmem:[#allocation53_spill] sm:$0xff] %v11477_v59 }
 0x231   : > { %8994 = vmatmul.mubr.msk.f32.gmra.mrb[2].mxu0 %vm582_vm1, %v11341_v1  ;;  %v10071_v16 = vpop.eup %10070  ;;  %1913 = vst.msk [vmem:[#allocation2 + $0x109] sm:$0xff] %vm582_vm1, %v1825_v32  ;;  %v1737_v12 = vadd.f32 1.0, %v10069_v48  ;;  %13193 = vst [vmem:[#allocation38_spill] sm:$0xff] %v11355_v60  ;;  %v11363_v48 = vld [vmem:[#allocation2 + $0x4a] sm:$0xff] }
 0x232   : > { %8996 = vmatprep.mubr.msk.f32.mxu0 %vm582_vm1, %v11348_v5  ;;  %v10073_v2 = vpop.eup %10072  ;;  %v1828_v36 = vmul.f32 %v10071_v16, %v11166_v3  ;;  %10086 = vrcp.f32 %v1738_v34  ;;  %13194 = vst [vmem:[#allocation39_spill] sm:$0xff] %v11363_v48 }
 0x233   : > { %v10075_v35 = vpop.eup %10074  ;;  %v1827_v25 = vmul.f32 %v10073_v2, %v11176_v0  ;;  %10088 = vrcp.f32 %v1737_v12  ;;  %v11369_v34 = vld [vmem:[#allocation2 + $0xf9] sm:$0xff] }
 0x234   : > { %v10077_v37 = vpop.eup %10076  ;;  %1916 = vst.msk [vmem:[#allocation2 + $0x129] sm:$0xff] %vm582_vm1, %v1828_v36  ;;  %v1830_v63 = vmul.f32 %v10075_v35, %v11190_v22  ;;  %v11359_v32 = vld [vmem:[#allocation2 + $0xf1] sm:$0xff]  ;;  %v11383_v35 = vld [vmem:[#allocation2 + $0x62] sm:$0xff] }
 0x235   : > { %8997 = vmatmul.mubr.msk.f32.gmra.mrb[4].mxu0 %vm582_vm1, %v11355_v60  ;;  %v10079_v3 = vpop.eup %10078  ;;  %1915 = vst.msk [vmem:[#allocation2 + $0x121] sm:$0xff] %vm582_vm1, %v1827_v25  ;;  %v1829_v0 = vmul.f32 %v10077_v37, %v11194_v50  ;;  %8920 = vmatprep.mubr.msk.f32.mxu1 %vm582_vm1, %v11359_v32  ;;  %v11377_v12 = vld [vmem:[#allocation2 + $0x52] sm:$0xff]  ;;  %13196 = vst [vmem:[#allocation41_spill] sm:$0xff] %v11383_v35  ;;  %v11567_v60 = vpop.f32.mrb[64].mxu1 }
 0x236   : > { %8999 = vmatprep.mubr.msk.f32.mxu0 %vm582_vm1, %v11363_v48  ;;  %v10081_v22 = vpop.eup %10080  ;;  %1918 = vst.msk [vmem:[#allocation2 + $0x141] sm:$0xff] %vm582_vm1, %v1830_v63  ;;  %8921 = vmatmul.mubr.msk.f32.gmra.mrb[84].mxu1 %vm582_vm1, %v11369_v34  ;;  %v1740_v16 = vadd.f32 1.0, %v10079_v3  ;;  %13195 = vst [vmem:[#allocation40_spill] sm:$0xff] %v11377_v12 }
 0x237   : > { %1917 = vst.msk [vmem:[#allocation2 + $0x139] sm:$0xff] %vm582_vm1, %v1829_v0  ;;  %v1739_v50 = vadd.f32 1.0, %v10081_v22  ;;  %v11388_v37 = vld [vmem:[#allocation2 + $0x111] sm:$0xff]  ;;  %13219 = vst [vmem:[#allocation64_spill] sm:$0xff] %v11567_v60 }
 0x238   : > { %v10083_v2 = vpop.eup %10082  ;;  %v11379_v36 = vld [vmem:[#allocation2 + $0x109] sm:$0xff]  ;;  %10090 = vrcp.f32 %v1740_v16  ;;  %v11403_v16 = vld [vmem:[#allocation2 + $0x7a] sm:$0xff] }
 0x239   : > { %9000 = vmatmul.mubr.msk.f32.gmra.mrb[6].mxu0 %vm582_vm1, %v11377_v12  ;;  %v10085_v25 = vpop.eup %10084  ;;  %v1832_v63 = vmul.f32 %v10083_v2, %v11217_v17  ;;  %8923 = vmatprep.mubr.msk.f32.mxu1 %vm582_vm1, %v11379_v36  ;;  %10092 = vrcp.f32 %v1739_v50  ;;  %v11396_v0 = vld [vmem:[#allocation2 + $0x6a] sm:$0xff]  ;;  %13198 = vst [vmem:[#allocation43_spill] sm:$0xff] %v11403_v16 }
 0x23a   : > { %9002 = vmatprep.mubr.msk.f32.mxu0 %vm582_vm1, %v11383_v35  ;;  %v1831_v3 = vmul.f32 %v10085_v25, %v11225_v24  ;;  %8924 = vmatmul.mubr.msk.f32.gmra.mrb[86].mxu1 %vm582_vm1, %v11388_v37  ;;  %13197 = vst [vmem:[#allocation42_spill] sm:$0xff] %v11396_v0 }
 0x23b   : > { %1920 = vst.msk [vmem:[#allocation2 + $0x159] sm:$0xff] %vm582_vm1, %v1832_v63  ;;  %v11408_v2 = vld [vmem:[#allocation2 + $0x129] sm:$0xff] }
 0x23c   : > { %v10087_v22 = vpop.eup %10086  ;;  %1919 = vst.msk [vmem:[#allocation2 + $0x151] sm:$0xff] %vm582_vm1, %v1831_v3  ;;  %v11399_v17 = vld [vmem:[#allocation2 + $0x121] sm:$0xff]  ;;  %v11425_v3 = vld [vmem:[#allocation2 + $0x92] sm:$0xff] }
 0x23d   : > { %9003 = vmatmul.mubr.msk.f32.gmra.mrb[8].mxu0 %vm582_vm1, %v11396_v0  ;;  %v10089_v50 = vpop.eup %10088  ;;  %v1834_v24 = vmul.f32 %v10087_v22, %v11247_v30  ;;  %8926 = vmatprep.mubr.msk.f32.mxu1 %vm582_vm1, %v11399_v17  ;;  %v11420_v30 = vld [vmem:[#allocation2 + $0x82] sm:$0xff]  ;;  %13200 = vst [vmem:[#allocation45_spill] sm:$0xff] %v11425_v3  ;;  %v11537_v0 = vld [vmem:[#allocation2 + $0x12a] sm:$0xff] }
 0x23e   : > { %9005 = vmatprep.mubr.msk.f32.mxu0 %vm582_vm1, %v11403_v16  ;;  %v1833_v25 = vmul.f32 %v10089_v50, %v11255_v39  ;;  %8927 = vmatmul.mubr.msk.f32.gmra.mrb[88].mxu1 %vm582_vm1, %v11408_v2  ;;  %v11415_v63 = vld [vmem:[#allocation2 + $0x139] sm:$0xff]  ;;  %13199 = vst [vmem:[#allocation44_spill] sm:$0xff] %v11420_v30  ;;  %v11427_v39 = vld [vmem:[#allocation2 + $0x141] sm:$0xff]  ;;  %v11527_v16 = vld [vmem:[#allocation2 + $0x110] sm:$0xff] }
 0x23f   : > { %1922 = vst.msk [vmem:[#allocation2 + $0x171] sm:$0xff] %vm582_vm1, %v1834_v24  ;;  %8929 = vmatprep.mubr.msk.f32.mxu1 %vm582_vm1, %v11415_v63  ;;  %13215 = vst [vmem:[#allocation60_spill] sm:$0xff] %v11537_v0  ;;  %v11543_v35 = vld [vmem:[#allocation2 + $0x128] sm:$0xff]  ;;  %v11559_v48 = vld [vmem:[#allocation2 + $0x140] sm:$0xff] }
 0x240   : > { %1921 = vst.msk [vmem:[#allocation2 + $0x169] sm:$0xff] %vm582_vm1, %v1833_v25  ;;  %v11553_v12 = vld [vmem:[#allocation2 + $0x142] sm:$0xff] }
 0x241   : > { %9006 = vmatmul.mubr.msk.f32.gmra.mrb[10].mxu0 %vm582_vm1, %v11420_v30  ;;  %v11521_v30 = vld [vmem:[#allocation2 + $0x112] sm:$0xff]  ;;  %13217 = vst [vmem:[#allocation62_spill] sm:$0xff] %v11553_v12 }
 0x242   : > { %9008 = vmatprep.mubr.msk.f32.mxu0 %vm582_vm1, %v11425_v3  ;;  %v10091_v22 = vpop.eup %10090  ;;  %8930 = vmatmul.mubr.msk.f32.gmra.mrb[90].mxu1 %vm582_vm1, %v11427_v39  ;;  %v11445_v11 = vld [vmem:[#allocation2 + $0x159] sm:$0xff]  ;;  %13213 = vst [vmem:[#allocation58_spill] sm:$0xff] %v11521_v30 }
 0x243   : > { %v10093_v50 = vpop.eup %10092  ;;  %v11433_v24 = vld [vmem:[#allocation2 + $0x151] sm:$0xff]  ;;  %v1836_v25 = vmul.f32 %v10091_v22, %v11280_v13  ;;  %v11571_v5 = vld [vmem:[#allocation2 + $0x15a] sm:$0xff] }
 0x244   : > { %8932 = vmatprep.mubr.msk.f32.mxu1 %vm582_vm1, %v11433_v24  ;;  %v1835_v10 = vmul.f32 %v10093_v50, %v11296_v9  ;;  %v11455_v22 = vld [vmem:[#allocation2 + $0xb2] sm:$0xff]  ;;  %v11461_v9 = vld [vmem:[#allocation2 + $0xc2] sm:$0xff]  ;;  %13220 = vst [vmem:[#allocation65_spill] sm:$0xff] %v11571_v5 }
 0x245   : > { %9009 = vmatmul.mubr.msk.f32.gmra.mrb[12].mxu0 %vm582_vm1, %v11435_v28  ;;  %1924 = vst.msk [vmem:[#allocation2 + $0x189] sm:$0xff] %vm582_vm1, %v1836_v25  ;;  %13204 = vst [vmem:[#allocation49_spill] sm:$0xff] %v11455_v22  ;;  %v11473_v25 = vld [vmem:[#allocation2 + $0xca] sm:$0xff]  ;;  %v11505_v28 = vld [vmem:[#allocation2 + $0xfa] sm:$0xff] }
 0x246   : > { %9011 = vmatprep.mubr.msk.f32.mxu0 %vm582_vm1, %v11442_v29  ;;  %8933 = vmatmul.mubr.msk.f32.gmra.mrb[92].mxu1 %vm582_vm1, %v11445_v11  ;;  %1923 = vst.msk [vmem:[#allocation2 + $0x181] sm:$0xff] %vm582_vm1, %v1835_v10  ;;  %13205 = vst [vmem:[#allocation50_spill] sm:$0xff] %v11461_v9  ;;  %v11463_v50 = vld [vmem:[#allocation2 + $0x171] sm:$0xff]  ;;  %v11469_v10 = vld [vmem:[#allocation2 + $0xc0] sm:$0xff] }
 0x247   : > { %v11453_v13 = vld [vmem:[#allocation2 + $0x169] sm:$0xff]  ;;  %13206 = vst [vmem:[#allocation51_spill] sm:$0xff] %v11463_v50  ;;  %13207 = vst [vmem:[#allocation52_spill] sm:$0xff] %v11473_v25  ;;  %v11495_v29 = vld [vmem:[#allocation2 + $0xe0] sm:$0xff] }
 0x248   : > { %13203 = vst [vmem:[#allocation48_spill] sm:$0xff] %v11453_v13  ;;  %8935 = vmatprep.mubr.msk.f32.mxu1 %vm582_vm1, %v11453_v13  ;;  %13211 = vst [vmem:[#allocation56_spill] sm:$0xff] %v11505_v28  ;;  %v11511_v3 = vld [vmem:[#allocation2 + $0xf8] sm:$0xff]  ;;  %v11577_v1 = vld [vmem:[#allocation2 + $0x16a] sm:$0xff] }
 0x249   : > { %9012 = vmatmul.mubr.msk.f32.gmra.mrb[14].mxu0 %vm582_vm1, %v11455_v22  ;;  %v11489_v22 = vld [vmem:[#allocation2 + $0xe2] sm:$0xff]  ;;  %13222 = vst [vmem:[#allocation67_spill] sm:$0xff] %v11577_v1  ;;  %v11589_v31 = vld [vmem:[#allocation2 + $0x172] sm:$0xff] }
 0x24a   : > { %9014 = vmatprep.mubr.msk.f32.mxu0 %vm582_vm1, %v11461_v9  ;;  %8936 = vmatmul.mubr.msk.f32.gmra.mrb[94].mxu1 %vm582_vm1, %v11463_v50  ;;  %v11485_v9 = vld [vmem:[#allocation2 + $0xd8] sm:$0xff]  ;;  %13209 = vst [vmem:[#allocation54_spill] sm:$0xff] %v11489_v22  ;;  %v11585_v60 = vld [vmem:[#allocation2 + $0x168] sm:$0xff] }
 0x24b   : > { %8964 = vmatprep.mubr.msk.f32.mxu1 %vm582_vm1, %v11469_v10 }
 0x24d   : > { %9015 = vmatmul.mubr.msk.f32.gmra.mrb[16].mxu0 %vm582_vm1, %v11473_v25  ;;  %v11493_v25 = vld [vmem:[#allocation2 + $0xf2] sm:$0xff] }
 0x24e   : > { %9017 = vmatprep.mubr.msk.f32.mxu0 %vm582_vm1, %v11477_v59  ;;  %8965 = vmatmul.mubr.msk.f32.vlgmr.msra.gmra.mrb[80].mxu1 %vm582_vm1, %v11479_v58  ;;  %13210 = vst [vmem:[#allocation55_spill] sm:$0xff] %v11493_v25  ;;  %v11501_v59 = vld [vmem:[#allocation2 + $0xf0] sm:$0xff] }
 0x24f   : > { %8967 = vmatprep.mubr.msk.f32.mxu1 %vm582_vm1, %v11485_v9 }
 0x251   : > { %9018 = vmatmul.mubr.msk.f32.gmra.mrb[18].mxu0 %vm582_vm1, %v11489_v22  ;;  %v11509_v22 = vld [vmem:[#allocation2 + $0x10a] sm:$0xff] }
 0x252   : > { %9020 = vmatprep.mubr.msk.f32.mxu0 %vm582_vm1, %v11493_v25  ;;  %8968 = vmatmul.mubr.msk.f32.gmra.mrb[82].mxu1 %vm582_vm1, %v11495_v29  ;;  %13212 = vst [vmem:[#allocation57_spill] sm:$0xff] %v11509_v22  ;;  %v11517_v25 = vld [vmem:[#allocation2 + $0x108] sm:$0xff] }
 0x253   : > { %8970 = vmatprep.mubr.msk.f32.mxu1 %vm582_vm1, %v11501_v59 }
 0x255   : > { %9021 = vmatmul.mubr.msk.f32.gmra.mrb[20].mxu0 %vm582_vm1, %v11505_v28  ;;  %v11525_v28 = vld [vmem:[#allocation2 + $0x122] sm:$0xff] }
 0x256   : > { %9023 = vmatprep.mubr.msk.f32.mxu0 %vm582_vm1, %v11509_v22  ;;  %8971 = vmatmul.mubr.msk.f32.gmra.mrb[84].mxu1 %vm582_vm1, %v11511_v3  ;;  %13214 = vst [vmem:[#allocation59_spill] sm:$0xff] %v11525_v28  ;;  %v11533_v22 = vld [vmem:[#allocation2 + $0x120] sm:$0xff] }
 0x257   : > { %8973 = vmatprep.mubr.msk.f32.mxu1 %vm582_vm1, %v11517_v25 }
 0x259   : > { %9024 = vmatmul.mubr.msk.f32.gmra.mrb[22].mxu0 %vm582_vm1, %v11521_v30  ;;  %v11541_v30 = vld [vmem:[#allocation2 + $0x13a] sm:$0xff] }
 0x25a   : > { %9026 = vmatprep.mubr.msk.f32.mxu0 %vm582_vm1, %v11525_v28  ;;  %8974 = vmatmul.mubr.msk.f32.gmra.mrb[86].mxu1 %vm582_vm1, %v11527_v16  ;;  %13216 = vst [vmem:[#allocation61_spill] sm:$0xff] %v11541_v30  ;;  %v11549_v28 = vld [vmem:[#allocation2 + $0x138] sm:$0xff] }
 0x25b   : > { %8976 = vmatprep.mubr.msk.f32.mxu1 %vm582_vm1, %v11533_v22 }
 0x25d   : > { %9027 = vmatmul.mubr.msk.f32.gmra.mrb[24].mxu0 %vm582_vm1, %v11537_v0  ;;  %v11557_v0 = vld [vmem:[#allocation2 + $0x152] sm:$0xff] }
 0x25e   : > { %9029 = vmatprep.mubr.msk.f32.mxu0 %vm582_vm1, %v11541_v30  ;;  %8977 = vmatmul.mubr.msk.f32.gmra.mrb[88].mxu1 %vm582_vm1, %v11543_v35  ;;  %13218 = vst [vmem:[#allocation63_spill] sm:$0xff] %v11557_v0  ;;  %v11565_v30 = vld [vmem:[#allocation2 + $0x150] sm:$0xff] }
 0x25f   : > { %8979 = vmatprep.mubr.msk.f32.mxu1 %vm582_vm1, %v11549_v28 }
 0x261   : > { %9030 = vmatmul.mubr.msk.f32.gmra.mrb[26].mxu0 %vm582_vm1, %v11553_v12  ;;  %v11573_v12 = vpop.f32.mrb[65].mxu1 }
 0x262   : > { %9032 = vmatprep.mubr.msk.f32.mxu0 %vm582_vm1, %v11557_v0  ;;  %8980 = vmatmul.mubr.msk.f32.gmra.mrb[90].mxu1 %vm582_vm1, %v11559_v48  ;;  %13221 = vst [vmem:[#allocation66_spill] sm:$0xff] %v11573_v12  ;;  %v11579_v0 = vld [vmem:[#allocation2 + $0x158] sm:$0xff]  ;;  %v11593_v12 = vld [vmem:[#allocation2 + $0x170] sm:$0xff] }
 0x263   : > { %8982 = vmatprep.mubr.msk.f32.mxu1 %vm582_vm1, %v11565_v30 }
 0x265   : > { %9033 = vmatmul.mubr.msk.f32.gmra.mrb[28].mxu0 %vm582_vm1, %v11571_v5 }
 0x266   : > { %9035 = vmatprep.mubr.msk.f32.mxu0 %vm582_vm1, %v11577_v1  ;;  %8983 = vmatmul.mubr.msk.f32.gmra.mrb[92].mxu1 %vm582_vm1, %v11579_v0  ;;  %v7951_v1 = vld [vmem:[%s13052_s7 + $0x14] sm:$0xf] }
 0x267   : > { %8985 = vmatprep.mubr.msk.f32.mxu1 %vm582_vm1, %v11585_v60 }
 0x269   : > { %9036 = vmatmul.mubr.msk.f32.gmra.mrb[30].mxu0 %vm582_vm1, %v11589_v31 }
 0x26a   : > { %9040 = vmatprep.mubr.msk.f32.mxu0 %vm582_vm1, %v11103_v6  ;;  %8986 = vmatmul.mubr.msk.f32.gmra.mrb[94].mxu1 %vm582_vm1, %v11593_v12  ;;  %v11663_v6 = vld [vmem:[#allocation2 + $0x180] sm:$0xff] }
 0x26d   : > { %9041 = vmatmul.mubr.msk.f32.vlgmr.msra.gmra.mrb[0].mxu0 %vm582_vm1, %v11105_v54  ;;  %v11667_v54 = vld [vmem:[#allocation2 + $0x188] sm:$0xff] }
 0x26e   : > { %9089 = vmatpush3.msk.msra.mxu0 %vm679_vm0, %v11318_v8  ;;  %9043 = vmatprep.mubr.msk.f32.mxu0 %vm582_vm1, %v11130_v15  ;;  %v7985_v8 = vld [vmem:[%s13052_s7 + $0x18] sm:$0xf] }
 0x26f   : > { %9138 = vmatprep.subr.msk.mxu0 %vm679_vm0, %v7951_v1 }
 0x271   : > { %9044 = vmatmul.mubr.msk.f32.gmra.mrb[2].mxu0 %vm582_vm1, %v11132_v42 }
 0x272   : > { %9046 = vmatprep.mubr.msk.f32.mxu0 %vm582_vm1, %v11160_v26 }
 0x275   : > { %9047 = vmatmul.mubr.msk.f32.gmra.mrb[4].mxu0 %vm582_vm1, %v11162_v38 }
 0x276   : > { %9049 = vmatprep.mubr.msk.f32.mxu0 %vm582_vm1, %v11201_v44 }
 0x279   : > { %9050 = vmatmul.mubr.msk.f32.gmra.mrb[6].mxu0 %vm582_vm1, %v11203_v53 }
 0x27a   : > { %9052 = vmatprep.mubr.msk.f32.mxu0 %vm582_vm1, %v11232_v20 }
 0x27d   : > { %9053 = vmatmul.mubr.msk.f32.gmra.mrb[8].mxu0 %vm582_vm1, %v11243_v18 }
 0x27e   : > { %9055 = vmatprep.mubr.msk.f32.mxu0 %vm582_vm1, %v11261_v4 }
 0x281   : > { %9056 = vmatmul.mubr.msk.f32.gmra.mrb[10].mxu0 %vm582_vm1, %v11263_v61 }
 0x282   : > { %9058 = vmatprep.mubr.msk.f32.mxu0 %vm582_vm1, %v11286_v33 }
 0x285   : > { %9059 = vmatmul.mubr.msk.f32.gmra.mrb[12].mxu0 %vm582_vm1, %v11288_v49 }
 0x286   : > { %9061 = vmatprep.mubr.msk.f32.mxu0 %vm582_vm1, %v11469_v10 }
 0x289   : > { %9062 = vmatmul.mubr.msk.f32.gmra.mrb[14].mxu0 %vm582_vm1, %v11479_v58 }
 0x28a   : > { %9064 = vmatprep.mubr.msk.f32.mxu0 %vm582_vm1, %v11485_v9 }
 0x28d   : > { %9065 = vmatmul.mubr.msk.f32.gmra.mrb[16].mxu0 %vm582_vm1, %v11495_v29 }
 0x28e   : > { %9067 = vmatprep.mubr.msk.f32.mxu0 %vm582_vm1, %v11501_v59 }
 0x291   : > { %9068 = vmatmul.mubr.msk.f32.gmra.mrb[18].mxu0 %vm582_vm1, %v11511_v3 }
 0x292   : > { %9070 = vmatprep.mubr.msk.f32.mxu0 %vm582_vm1, %v11517_v25 }
 0x295   : > { %9071 = vmatmul.mubr.msk.f32.gmra.mrb[20].mxu0 %vm582_vm1, %v11527_v16 }
 0x296   : > { %9073 = vmatprep.mubr.msk.f32.mxu0 %vm582_vm1, %v11533_v22 }
 0x299   : > { %9074 = vmatmul.mubr.msk.f32.gmra.mrb[22].mxu0 %vm582_vm1, %v11543_v35 }
 0x29a   : > { %9076 = vmatprep.mubr.msk.f32.mxu0 %vm582_vm1, %v11549_v28 }
 0x29d   : > { %9077 = vmatmul.mubr.msk.f32.gmra.mrb[24].mxu0 %vm582_vm1, %v11559_v48 }
 0x29e   : > { %9079 = vmatprep.mubr.msk.f32.mxu0 %vm582_vm1, %v11565_v30 }
 0x2a1   : > { %9080 = vmatmul.mubr.msk.f32.gmra.mrb[26].mxu0 %vm582_vm1, %v11579_v0 }
 0x2a2   : > { %9082 = vmatprep.mubr.msk.f32.mxu0 %vm582_vm1, %v11585_v60 }
 0x2a5   : > { %9083 = vmatmul.mubr.msk.f32.gmra.mrb[28].mxu0 %vm582_vm1, %v11593_v12 }
 0x2a6   : > { %9085 = vmatprep.mubr.msk.f32.mxu0 %vm582_vm1, %v11663_v6 }
 0x2a9   : > { %9086 = vmatmul.mubr.msk.f32.gmra.mrb[30].mxu0 %vm582_vm1, %v11667_v54 }
 0x2aa   : > { %9090 = vmatprep.mubr.msk.f32.mxu0 %vm582_vm1, %v11101_v27  ;;  %v11740_v27 = vld [vmem:[#allocation2 + $0x181] sm:$0xff] }
 0x2ab   : > { %13225 = vst [vmem:[#allocation70_spill] sm:$0xff] %v11740_v27 }
 0x2ad   : > { %9091 = vmatmul.mubr.msk.f32.vlgmr.msra.gmra.mrb[0].mxu0 %vm582_vm1, %v11115_v56 }
 0x2ae   : > { %9139 = vmatpush3.msk.msra.mxu0 %vm679_vm0, %v7951_v1  ;;  %9093 = vmatprep.mubr.msk.f32.mxu0 %vm582_vm1, %v11128_v57 }
 0x2af   : > { %9188 = vmatprep.subr.msk.mxu0 %vm679_vm0, %v7985_v8 }
 0x2b1   : > { %9094 = vmatmul.mubr.msk.f32.gmra.mrb[2].mxu0 %vm582_vm1, %v11142_v55 }
 0x2b2   : > { %9096 = vmatprep.mubr.msk.f32.mxu0 %vm582_vm1, %v11158_v45 }
 0x2b5   : > { %9097 = vmatmul.mubr.msk.f32.gmra.mrb[4].mxu0 %vm582_vm1, %v11172_v52  ;;  %v11748_v52 = vld [vmem:[#allocation2 + $0x189] sm:$0xff] }
 0x2b6   : > { %9099 = vmatprep.mubr.msk.f32.mxu0 %vm582_vm1, %v11199_v47  ;;  %13228 = vst [vmem:[#allocation73_spill] sm:$0xff] %v11748_v52 }
 0x2b9   : > { %9100 = vmatmul.mubr.msk.f32.gmra.mrb[6].mxu0 %vm582_vm1, %v11213_v23 }
 0x2ba   : > { %9102 = vmatprep.mubr.msk.f32.mxu0 %vm582_vm1, %v11230_v40 }
 0x2bd   : > { %9103 = vmatmul.mubr.msk.f32.gmra.mrb[8].mxu0 %vm582_vm1, %v11241_v7 }
 0x2be   : > { %9105 = vmatprep.mubr.msk.f32.mxu0 %vm582_vm1, %v11259_v14 }
 0x2c1   : > { %9106 = vmatmul.mubr.msk.f32.gmra.mrb[10].mxu0 %vm582_vm1, %v11272_v51 }
 0x2c2   : > { %9108 = vmatprep.mubr.msk.f32.mxu0 %vm582_vm1, %v11284_v43 }
 0x2c5   : > { %9109 = vmatmul.mubr.msk.f32.gmra.mrb[12].mxu0 %vm582_vm1, %v11298_v21 }
 0x2c6   : > { %9111 = vmatprep.mubr.msk.f32.mxu0 %vm582_vm1, %v11306_v41 }
 0x2c9   : > { %9112 = vmatmul.mubr.msk.f32.gmra.mrb[14].mxu0 %vm582_vm1, %v11313_v19 }
 0x2ca   : > { %9114 = vmatprep.mubr.msk.f32.mxu0 %vm582_vm1, %v11331_v46 }
 0x2cd   : > { %9115 = vmatmul.mubr.msk.f32.gmra.mrb[16].mxu0 %vm582_vm1, %v11339_v62 }
 0x2ce   : > { %9117 = vmatprep.mubr.msk.f32.mxu0 %vm582_vm1, %v11359_v32 }
 0x2d1   : > { %9118 = vmatmul.mubr.msk.f32.gmra.mrb[18].mxu0 %vm582_vm1, %v11369_v34 }
 0x2d2   : > { %9120 = vmatprep.mubr.msk.f32.mxu0 %vm582_vm1, %v11379_v36 }
 0x2d5   : > { %9121 = vmatmul.mubr.msk.f32.gmra.mrb[20].mxu0 %vm582_vm1, %v11388_v37 }
 0x2d6   : > { %9123 = vmatprep.mubr.msk.f32.mxu0 %vm582_vm1, %v11399_v17 }
 0x2d9   : > { %9124 = vmatmul.mubr.msk.f32.gmra.mrb[22].mxu0 %vm582_vm1, %v11408_v2 }
 0x2da   : > { %9126 = vmatprep.mubr.msk.f32.mxu0 %vm582_vm1, %v11415_v63 }
 0x2dd   : > { %9127 = vmatmul.mubr.msk.f32.gmra.mrb[24].mxu0 %vm582_vm1, %v11427_v39 }
 0x2de   : > { %9129 = vmatprep.mubr.msk.f32.mxu0 %vm582_vm1, %v11433_v24 }
 0x2e0   : > { %v11732_v45 = vpop.f32.mrb[66].mxu1 }
 0x2e1   : > { %9130 = vmatmul.mubr.msk.f32.gmra.mrb[26].mxu0 %vm582_vm1, %v11445_v11  ;;  %13223 = vst [vmem:[#allocation68_spill] sm:$0xff] %v11732_v45  ;;  %v11736_v57 = vpop.f32.mrb[67].mxu1 }
 0x2e2   : > { %9132 = vmatprep.mubr.msk.f32.mxu0 %vm582_vm1, %v11453_v13  ;;  %13224 = vst [vmem:[#allocation69_spill] sm:$0xff] %v11736_v57  ;;  %v13230_v57 = vld [vmem:[#allocation35_spill] sm:$0xff] }
 0x2e4   : > { %v11742_v56 = vpop.f32.mrb[68].mxu1 }
 0x2e5   : > { %9133 = vmatmul.mubr.msk.f32.gmra.mrb[28].mxu0 %vm582_vm1, %v11463_v50  ;;  %13226 = vst [vmem:[#allocation71_spill] sm:$0xff] %v11742_v56  ;;  %v11746_v55 = vpop.f32.mrb[69].mxu1  ;;  %v8019_v56 = vld [vmem:[%s13052_s7 + $0x1c] sm:$0xf] }
 0x2e6   : > { %9135 = vmatprep.mubr.msk.f32.mxu0 %vm582_vm1, %v11740_v27  ;;  %13227 = vst [vmem:[#allocation72_spill] sm:$0xff] %v11746_v55  ;;  %v13232_v50 = vld [vmem:[#allocation36_spill] sm:$0xff]  ;;  %v13233_v55 = vld [vmem:[#allocation37_spill] sm:$0xff] }
 0x2e8   : > { %v11752_v1 = vpop.f32.mrb[70].mxu1 }
 0x2e9   : > { %9136 = vmatmul.mubr.msk.f32.gmra.mrb[30].mxu0 %vm582_vm1, %v11748_v52  ;;  %13229 = vst [vmem:[#allocation74_spill] sm:$0xff] %v11752_v1  ;;  %v11756_v45 = vpop.f32.mrb[71].mxu1 }
 0x2ea   : > { %9140 = vmatprep.mubr.msk.f32.mxu0 %vm582_vm1, %v13230_v57  ;;  %13231 = vst [vmem:[#allocation35_spill] sm:$0xff] %v11756_v45  ;;  %v13236_v57 = vld [vmem:[#allocation38_spill] sm:$0xff]  ;;  %v13237_v45 = vld [vmem:[#allocation39_spill] sm:$0xff] }
 0x2ed   : > { %9141 = vmatmul.mubr.msk.f32.vlgmr.msra.gmra.mrb[0].mxu0 %vm582_vm1, %v13232_v50 }
 0x2ee   : > { %9189 = vmatpush3.msk.msra.mxu0 %vm679_vm0, %v7985_v8  ;;  %9143 = vmatprep.mubr.msk.f32.mxu0 %vm582_vm1, %v13233_v55  ;;  %v13240_v8 = vld [vmem:[#allocation40_spill] sm:$0xff]  ;;  %v13241_v55 = vld [vmem:[#allocation41_spill] sm:$0xff] }
 0x2ef   : > { %9238 = vmatprep.subr.msk.mxu0 %vm679_vm0, %v8019_v56  ;;  %v11767_v1 = vpop.f32.mrb[72].mxu1 }
 0x2f0   : > { %13234 = vst [vmem:[#allocation36_spill] sm:$0xff] %v11767_v1  ;;  %v11769_v52 = vpop.f32.mrb[73].mxu1 }
 0x2f1   : > { %13235 = vst [vmem:[#allocation75_spill] sm:$0xff] %v11769_v52  ;;  %9144 = vmatmul.mubr.msk.f32.gmra.mrb[2].mxu0 %vm582_vm1, %v13236_v57  ;;  %v13244_v52 = vld [vmem:[#allocation42_spill] sm:$0xff]  ;;  %v13245_v57 = vld [vmem:[#allocation43_spill] sm:$0xff] }
 0x2f2   : > { %9146 = vmatprep.mubr.msk.f32.mxu0 %vm582_vm1, %v13237_v45 }
 0x2f3   : > { %v11775_v27 = vpop.f32.mrb[74].mxu1 }
 0x2f4   : > { %13238 = vst [vmem:[#allocation76_spill] sm:$0xff] %v11775_v27  ;;  %v11777_v50 = vpop.f32.mrb[75].mxu1 }
 0x2f5   : > { %13239 = vst [vmem:[#allocation77_spill] sm:$0xff] %v11777_v50  ;;  %9147 = vmatmul.mubr.msk.f32.gmra.mrb[4].mxu0 %vm582_vm1, %v13240_v8  ;;  %v13248_v50 = vld [vmem:[#allocation44_spill] sm:$0xff]  ;;  %v13249_v8 = vld [vmem:[#allocation45_spill] sm:$0xff] }
 0x2f6   : > { %9149 = vmatprep.mubr.msk.f32.mxu0 %vm582_vm1, %v13241_v55  ;;  %v13250_v55 = vld [vmem:[#allocation46_spill] sm:$0xff] }
 0x2f7   : > { %v11783_v13 = vpop.f32.mrb[76].mxu1 }
 0x2f8   : > { %13242 = vst [vmem:[#allocation78_spill] sm:$0xff] %v11783_v13  ;;  %v11785_v1 = vpop.f32.mrb[77].mxu1  ;;  %v13252_v13 = vld [vmem:[#allocation49_spill] sm:$0xff] }
 0x2f9   : > { %13243 = vst [vmem:[#allocation79_spill] sm:$0xff] %v11785_v1  ;;  %9150 = vmatmul.mubr.msk.f32.gmra.mrb[6].mxu0 %vm582_vm1, %v13244_v52  ;;  %v13251_v1 = vld [vmem:[#allocation47_spill] sm:$0xff] }
 0x2fa   : > { %9152 = vmatprep.mubr.msk.f32.mxu0 %vm582_vm1, %v13245_v57  ;;  %v13253_v57 = vld [vmem:[#allocation50_spill] sm:$0xff] }
 0x2fb   : > { %v11791_v45 = vpop.f32.mrb[78].mxu1 }
 0x2fc   : > { %13246 = vst [vmem:[#allocation42_spill] sm:$0xff] %v11791_v45  ;;  %v11793_v27 = vpop.f32.mrb[79].mxu1  ;;  %v13254_v45 = vld [vmem:[#allocation52_spill] sm:$0xff] }
 0x2fd   : > { %13247 = vst [vmem:[#allocation80_spill] sm:$0xff] %v11793_v27  ;;  %9153 = vmatmul.mubr.msk.f32.gmra.mrb[8].mxu0 %vm582_vm1, %v13248_v50  ;;  %v13255_v27 = vld [vmem:[#allocation53_spill] sm:$0xff]  ;;  %v13256_v50 = vld [vmem:[#allocation54_spill] sm:$0xff] }
 0x2fe   : > { %9155 = vmatprep.mubr.msk.f32.mxu0 %vm582_vm1, %v13249_v8  ;;  %v13257_v8 = vld [vmem:[#allocation55_spill] sm:$0xff] }
 0x301   : > { %9156 = vmatmul.mubr.msk.f32.gmra.mrb[10].mxu0 %vm582_vm1, %v13250_v55  ;;  %v13258_v55 = vld [vmem:[#allocation56_spill] sm:$0xff] }
 0x302   : > { %9158 = vmatprep.mubr.msk.f32.mxu0 %vm582_vm1, %v13251_v1  ;;  %v13259_v1 = vld [vmem:[#allocation57_spill] sm:$0xff] }
 0x305   : > { %9159 = vmatmul.mubr.msk.f32.gmra.mrb[12].mxu0 %vm582_vm1, %v13252_v13  ;;  %v13260_v13 = vld [vmem:[#allocation58_spill] sm:$0xff] }
 0x306   : > { %9161 = vmatprep.mubr.msk.f32.mxu0 %vm582_vm1, %v13253_v57  ;;  %v13261_v57 = vld [vmem:[#allocation59_spill] sm:$0xff] }
 0x309   : > { %9162 = vmatmul.mubr.msk.f32.gmra.mrb[14].mxu0 %vm582_vm1, %v13254_v45  ;;  %v13262_v45 = vld [vmem:[#allocation60_spill] sm:$0xff] }
 0x30a   : > { %9164 = vmatprep.mubr.msk.f32.mxu0 %vm582_vm1, %v13255_v27  ;;  %v13263_v27 = vld [vmem:[#allocation61_spill] sm:$0xff] }
 0x30d   : > { %9165 = vmatmul.mubr.msk.f32.gmra.mrb[16].mxu0 %vm582_vm1, %v13256_v50  ;;  %v13264_v50 = vld [vmem:[#allocation62_spill] sm:$0xff] }
 0x30e   : > { %9167 = vmatprep.mubr.msk.f32.mxu0 %vm582_vm1, %v13257_v8  ;;  %v13265_v8 = vld [vmem:[#allocation63_spill] sm:$0xff] }
 0x311   : > { %9168 = vmatmul.mubr.msk.f32.gmra.mrb[18].mxu0 %vm582_vm1, %v13258_v55 }
 0x312   : > { %9170 = vmatprep.mubr.msk.f32.mxu0 %vm582_vm1, %v13259_v1 }
 0x315   : > { %9171 = vmatmul.mubr.msk.f32.gmra.mrb[20].mxu0 %vm582_vm1, %v13260_v13  ;;  %v13267_v13 = vld [vmem:[#allocation67_spill] sm:$0xff] }
 0x316   : > { %9173 = vmatprep.mubr.msk.f32.mxu0 %vm582_vm1, %v13261_v57 }
 0x319   : > { %9174 = vmatmul.mubr.msk.f32.gmra.mrb[22].mxu0 %vm582_vm1, %v13262_v45 }
 0x31a   : > { %9176 = vmatprep.mubr.msk.f32.mxu0 %vm582_vm1, %v13263_v27  ;;  %v11841_v27 = vld [vmem:[#allocation2 + $0x182] sm:$0xff] }
 0x31d   : > { %9177 = vmatmul.mubr.msk.f32.gmra.mrb[24].mxu0 %vm582_vm1, %v13264_v50 }
 0x31e   : > { %9179 = vmatprep.mubr.msk.f32.mxu0 %vm582_vm1, %v13265_v8 }
 0x321   : > { %9180 = vmatmul.mubr.msk.f32.gmra.mrb[26].mxu0 %vm582_vm1, %v11571_v5  ;;  %v11833_v1 = vpop.f32.mrb[80].mxu1  ;;  %v11849_v5 = vld [vmem:[#allocation2 + $0x18a] sm:$0xff] }
 0x322   : > { %13266 = vst [vmem:[#allocation56_spill] sm:$0xff] %v11833_v1  ;;  %9182 = vmatprep.mubr.msk.f32.mxu0 %vm582_vm1, %v13267_v13  ;;  %v11837_v57 = vpop.f32.mrb[81].mxu1 }
 0x323   : > { %13268 = vst [vmem:[#allocation62_spill] sm:$0xff] %v11837_v57 }
 0x325   : > { %9183 = vmatmul.mubr.msk.f32.gmra.mrb[28].mxu0 %vm582_vm1, %v11589_v31  ;;  %v11843_v45 = vpop.f32.mrb[82].mxu1 }
 0x326   : > { %13269 = vst [vmem:[#allocation67_spill] sm:$0xff] %v11843_v45  ;;  %9185 = vmatprep.mubr.msk.f32.mxu0 %vm582_vm1, %v11841_v27  ;;  %v11847_v8 = vpop.f32.mrb[83].mxu1  ;;  %v8053_v45 = vld [vmem:[%s13052_s7 + $0x20] sm:$0xf] }
 0x327   : > { %13270 = vst [vmem:[#allocation81_spill] sm:$0xff] %v11847_v8 }
 0x329   : > { %9186 = vmatmul.mubr.msk.f32.gmra.mrb[30].mxu0 %vm582_vm1, %v11849_v5  ;;  %v11853_v1 = vpop.f32.mrb[84].mxu1 }
 0x32a   : > { %13271 = vst [vmem:[#allocation82_spill] sm:$0xff] %v11853_v1  ;;  %9190 = vmatprep.mubr.msk.f32.mxu0 %vm582_vm1, %v11130_v15  ;;  %v11857_v57 = vpop.f32.mrb[85].mxu1 }
 0x32d   : > { %9191 = vmatmul.mubr.msk.f32.vlgmr.msra.gmra.mrb[0].mxu0 %vm582_vm1, %v11132_v42  ;;  %v11864_v8 = vpop.f32.mrb[86].mxu1 }
 0x32e   : > { %9239 = vmatpush3.msk.msra.mxu0 %vm679_vm0, %v8019_v56  ;;  %9193 = vmatprep.mubr.msk.f32.mxu0 %vm582_vm1, %v11160_v26  ;;  %v11869_v1 = vpop.f32.mrb[87].mxu1 }
 0x32f   : > { %9288 = vmatprep.subr.msk.mxu0 %vm679_vm0, %v8053_v45 }
 0x331   : > { %9194 = vmatmul.mubr.msk.f32.gmra.mrb[2].mxu0 %vm582_vm1, %v11162_v38  ;;  %v11874_v15 = vpop.f32.mrb[88].mxu1 }
 0x332   : > { %9196 = vmatprep.mubr.msk.f32.mxu0 %vm582_vm1, %v11201_v44  ;;  %v11878_v42 = vpop.f32.mrb[89].mxu1 }
 0x335   : > { %9197 = vmatmul.mubr.msk.f32.gmra.mrb[4].mxu0 %vm582_vm1, %v11203_v53  ;;  %v11882_v56 = vpop.f32.mrb[90].mxu1 }
 0x336   : > { %9199 = vmatprep.mubr.msk.f32.mxu0 %vm582_vm1, %v11232_v20  ;;  %v11886_v26 = vpop.f32.mrb[91].mxu1 }
 0x339   : > { %9200 = vmatmul.mubr.msk.f32.gmra.mrb[6].mxu0 %vm582_vm1, %v11243_v18  ;;  %v11890_v38 = vpop.f32.mrb[92].mxu1  ;;  %v13276_v18 = vld [vmem:[#allocation37_spill] sm:$0xff] }
 0x33a   : > { %9202 = vmatprep.mubr.msk.f32.mxu0 %vm582_vm1, %v11261_v4  ;;  %v11894_v44 = vpop.f32.mrb[93].mxu1  ;;  %v4594_v4 = vld [vmem:[#allocation2 + $0x51] sm:$0xff] }
 0x33d   : > { %9203 = vmatmul.mubr.msk.f32.gmra.mrb[8].mxu0 %vm582_vm1, %v11263_v61  ;;  %v11898_v53 = vpop.f32.mrb[94].mxu1  ;;  %v4593_v61 = vld [vmem:[#allocation2 + $0x49] sm:$0xff] }
 0x33e   : > { %9205 = vmatprep.mubr.msk.f32.mxu0 %vm582_vm1, %v11286_v33  ;;  %v11902_v20 = vpop.f32.mrb[95].mxu1  ;;  %v13280_v33 = vld [vmem:[#allocation41_spill] sm:$0xff] }
 0x341   : > { %9206 = vmatmul.mubr.msk.f32.gmra.mrb[10].mxu0 %vm582_vm1, %v11288_v49  ;;  %v13281_v49 = vld [vmem:[#allocation43_spill] sm:$0xff] }
 0x342   : > { %9208 = vmatprep.mubr.msk.f32.mxu0 %vm582_vm1, %v11469_v10  ;;  %v12086_v10 = vld [vmem:[%s13054_s9] ss:$0 sm:$0xff] }
 0x345   : > { %9209 = vmatmul.mubr.msk.f32.gmra.mrb[12].mxu0 %vm582_vm1, %v11479_v58  ;;  %v4231_v58 = vld [vmem:[#allocation2 + $0x198] sm:$0xff] }
 0x346   : > { %9211 = vmatprep.mubr.msk.f32.mxu0 %vm582_vm1, %v11485_v9 }
 0x349   : > { %9212 = vmatmul.mubr.msk.f32.gmra.mrb[14].mxu0 %vm582_vm1, %v11495_v29  ;;  %v4592_v29 = vld [vmem:[#allocation2 + $0x39] sm:$0xff] }
 0x34a   : > { %9214 = vmatprep.mubr.msk.f32.mxu0 %vm582_vm1, %v11501_v59  ;;  %v4232_v59 = vld [vmem:[#allocation2 + $0x1a0] sm:$0xff] }
 0x34d   : > { %9215 = vmatmul.mubr.msk.f32.gmra.mrb[16].mxu0 %vm582_vm1, %v11511_v3  ;;  %v5012_v3 = vld [vmem:[#allocation2 + $0x1a2] sm:$0xff] }
 0x34e   : > { %9217 = vmatprep.mubr.msk.f32.mxu0 %vm582_vm1, %v11517_v25  ;;  %v13300_v25 = vld [vmem:[#allocation66_spill] sm:$0xff] }
 0x351   : > { %9218 = vmatmul.mubr.msk.f32.gmra.mrb[18].mxu0 %vm582_vm1, %v11527_v16  ;;  %v13296_v16 = vld [vmem:[#allocation61_spill] sm:$0xff] }
 0x352   : > { %9220 = vmatprep.mubr.msk.f32.mxu0 %vm582_vm1, %v11533_v22 }
 0x355   : > { %9221 = vmatmul.mubr.msk.f32.gmra.mrb[20].mxu0 %vm582_vm1, %v11543_v35  ;;  %v13292_v35 = vld [vmem:[#allocation57_spill] sm:$0xff] }
 0x356   : > { %9223 = vmatprep.mubr.msk.f32.mxu0 %vm582_vm1, %v11549_v28  ;;  %v4591_v28 = vld [vmem:[#allocation2 + $0x31] sm:$0xff] }
 0x359   : > { %9224 = vmatmul.mubr.msk.f32.gmra.mrb[22].mxu0 %vm582_vm1, %v11559_v48  ;;  %v13288_v48 = vld [vmem:[#allocation52_spill] sm:$0xff] }
 0x35a   : > { %9226 = vmatprep.mubr.msk.f32.mxu0 %vm582_vm1, %v11565_v30  ;;  %v5011_v30 = vld [vmem:[#allocation2 + $0x19a] sm:$0xff] }
 0x35d   : > { %9227 = vmatmul.mubr.msk.f32.gmra.mrb[24].mxu0 %vm582_vm1, %v11579_v0  ;;  %v13294_v0 = vld [vmem:[#allocation59_spill] sm:$0xff] }
 0x35e   : > { %9229 = vmatprep.mubr.msk.f32.mxu0 %vm582_vm1, %v11585_v60  ;;  %v13286_v60 = vld [vmem:[#allocation49_spill] sm:$0xff] }
 0x361   : > { %9230 = vmatmul.mubr.msk.f32.gmra.mrb[26].mxu0 %vm582_vm1, %v11593_v12  ;;  %v13290_v12 = vld [vmem:[#allocation54_spill] sm:$0xff] }
 0x362   : > { %9232 = vmatprep.mubr.msk.f32.mxu0 %vm582_vm1, %v11663_v6 }
 0x365   : > { %9233 = vmatmul.mubr.msk.f32.gmra.mrb[28].mxu0 %vm582_vm1, %v11667_v54 }
 0x366   : > { %9235 = vmatprep.mubr.msk.f32.mxu0 %vm582_vm1, %v4231_v58 }
 0x369   : > { %9236 = vmatmul.mubr.msk.f32.gmra.mrb[30].mxu0 %vm582_vm1, %v4232_v59 }
 0x36a   : > { %9240 = vmatprep.mubr.msk.f32.mxu0 %vm582_vm1, %v4591_v28  ;;  %v13302_v28 = vld [vmem:[#allocation69_spill] sm:$0xff] }
 0x36d   : > { %9241 = vmatmul.mubr.msk.f32.vlgmr.msra.gmra.mrb[0].mxu0 %vm582_vm1, %v4592_v29 }
 0x36e   : > { %9289 = vmatpush3.msk.msra.mxu0 %vm679_vm0, %v8053_v45  ;;  %9243 = vmatprep.mubr.msk.f32.mxu0 %vm582_vm1, %v4593_v61 }
 0x371   : > { %9244 = vmatmul.mubr.msk.f32.gmra.mrb[2].mxu0 %vm582_vm1, %v4594_v4 }
 0x372   : > { %9246 = vmatprep.mubr.msk.f32.mxu0 %vm582_vm1, %v11199_v47  ;;  %v4621_v47 = vld [vmem:[#allocation2 + $0x199] sm:$0xff] }
 0x375   : > { %9247 = vmatmul.mubr.msk.f32.gmra.mrb[4].mxu0 %vm582_vm1, %v11213_v23  ;;  %v13275_v23 = vld [vmem:[#allocation73_spill] sm:$0xff] }
 0x376   : > { %9249 = vmatprep.mubr.msk.f32.mxu0 %vm582_vm1, %v11230_v40  ;;  %v13274_v40 = vld [vmem:[#allocation70_spill] sm:$0xff] }
 0x379   : > { %9250 = vmatmul.mubr.msk.f32.gmra.mrb[6].mxu0 %vm582_vm1, %v11241_v7  ;;  %v4622_v7 = vld [vmem:[#allocation2 + $0x1a1] sm:$0xff] }
 0x37a   : > { %9252 = vmatprep.mubr.msk.f32.mxu0 %vm582_vm1, %v11259_v14  ;;  %v13278_v14 = vld [vmem:[#allocation39_spill] sm:$0xff] }
 0x37d   : > { %9253 = vmatmul.mubr.msk.f32.gmra.mrb[8].mxu0 %vm582_vm1, %v11272_v51  ;;  %v13279_v51 = vld [vmem:[#allocation40_spill] sm:$0xff] }
 0x37e   : > { %9255 = vmatprep.mubr.msk.f32.mxu0 %vm582_vm1, %v11284_v43  ;;  %v13273_v43 = vld [vmem:[#allocation51_spill] sm:$0xff] }
 0x381   : > { %9256 = vmatmul.mubr.msk.f32.gmra.mrb[10].mxu0 %vm582_vm1, %v11298_v21  ;;  %v13282_v21 = vld [vmem:[#allocation44_spill] sm:$0xff] }
 0x382   : > { %9258 = vmatprep.mubr.msk.f32.mxu0 %vm582_vm1, %v11306_v41  ;;  %v13283_v41 = vld [vmem:[#allocation45_spill] sm:$0xff] }
 0x385   : > { %9259 = vmatmul.mubr.msk.f32.gmra.mrb[12].mxu0 %vm582_vm1, %v11313_v19  ;;  %v13272_v19 = vld [vmem:[#allocation48_spill] sm:$0xff] }
 0x386   : > { %9261 = vmatprep.mubr.msk.f32.mxu0 %vm582_vm1, %v11331_v46  ;;  %v13284_v46 = vld [vmem:[#allocation46_spill] sm:$0xff] }
 0x389   : > { %9262 = vmatmul.mubr.msk.f32.gmra.mrb[14].mxu0 %vm582_vm1, %v11339_v62  ;;  %v13285_v62 = vld [vmem:[#allocation47_spill] sm:$0xff] }
 0x38a   : > { %9264 = vmatprep.mubr.msk.f32.mxu0 %vm582_vm1, %v11359_v32  ;;  %v13287_v32 = vld [vmem:[#allocation50_spill] sm:$0xff] }
 0x38d   : > { %9265 = vmatmul.mubr.msk.f32.gmra.mrb[16].mxu0 %vm582_vm1, %v11369_v34  ;;  %v13289_v34 = vld [vmem:[#allocation53_spill] sm:$0xff] }
 0x38e   : > { %9267 = vmatprep.mubr.msk.f32.mxu0 %vm582_vm1, %v11379_v36  ;;  %v13291_v36 = vld [vmem:[#allocation55_spill] sm:$0xff] }
 0x391   : > { %9268 = vmatmul.mubr.msk.f32.gmra.mrb[18].mxu0 %vm582_vm1, %v11388_v37  ;;  %v13293_v37 = vld [vmem:[#allocation58_spill] sm:$0xff] }
 0x392   : > { %9270 = vmatprep.mubr.msk.f32.mxu0 %vm582_vm1, %v11399_v17  ;;  %v13295_v17 = vld [vmem:[#allocation60_spill] sm:$0xff] }
 0x395   : > { %9271 = vmatmul.mubr.msk.f32.gmra.mrb[20].mxu0 %vm582_vm1, %v11408_v2  ;;  %v13297_v2 = vld [vmem:[#allocation63_spill] sm:$0xff] }
 0x396   : > { %9273 = vmatprep.mubr.msk.f32.mxu0 %vm582_vm1, %v11415_v63  ;;  %v13298_v63 = vld [vmem:[#allocation65_spill] sm:$0xff] }
 0x399   : > { %9274 = vmatmul.mubr.msk.f32.gmra.mrb[22].mxu0 %vm582_vm1, %v11427_v39  ;;  %v5705_v39 = vld [vmem:[%s13055_s10] sm:$0xf] }
 0x39a   : > { %9276 = vmatprep.mubr.msk.f32.mxu0 %vm582_vm1, %v11433_v24  ;;  %9338 = vmatprep.subr.msk.mxu1 %vm679_vm0, %v5705_v39  ;;  %v12080_v24 = vld [vmem:[%s13053_s8] ss:$0 sm:$0xff] }
 0x39b   : > { %9339 = vmatpush3.msk.msra.mxu1 %vm679_vm0, %v5705_v39 }
 0x39d   : > { %9277 = vmatmul.mubr.msk.f32.gmra.mrb[24].mxu0 %vm582_vm1, %v11445_v11  ;;  %v13277_v11 = vld [vmem:[#allocation38_spill] sm:$0xff] }
 0x39e   : > { %9279 = vmatprep.mubr.msk.f32.mxu0 %vm582_vm1, %v13272_v19 }
 0x3a1   : > { %9280 = vmatmul.mubr.msk.f32.gmra.mrb[26].mxu0 %vm582_vm1, %v13273_v43 }
 0x3a2   : > { %9282 = vmatprep.mubr.msk.f32.mxu0 %vm582_vm1, %v13274_v40 }
 0x3a5   : > { %9283 = vmatmul.mubr.msk.f32.gmra.mrb[28].mxu0 %vm582_vm1, %v13275_v23  ;;  %v13303_v23 = vld [vmem:[#allocation71_spill] sm:$0xff] }
 0x3a6   : > { %9285 = vmatprep.mubr.msk.f32.mxu0 %vm582_vm1, %v4621_v47 }
 0x3a9   : > { %9286 = vmatmul.mubr.msk.f32.gmra.mrb[30].mxu0 %vm582_vm1, %v4622_v7 }
 0x3aa   : > { %9290 = vmatprep.mubr.msk.f32.mxu0 %vm582_vm1, %v13276_v18 }
 0x3ad   : > { %9291 = vmatmul.mubr.msk.f32.vlgmr.msra.gmra.mrb[0].mxu0 %vm582_vm1, %v13277_v11 }
 0x3ae   : > { %9293 = vmatprep.mubr.msk.f32.mxu0 %vm582_vm1, %v13278_v14  ;;  %v13304_v14 = vld [vmem:[#allocation72_spill] sm:$0xff] }
 0x3b1   : > { %9294 = vmatmul.mubr.msk.f32.gmra.mrb[2].mxu0 %vm582_vm1, %v13279_v51 }
 0x3b2   : > { %9296 = vmatprep.mubr.msk.f32.mxu0 %vm582_vm1, %v13280_v33 }
 0x3b5   : > { %9297 = vmatmul.mubr.msk.f32.gmra.mrb[4].mxu0 %vm582_vm1, %v13244_v52  ;;  %v13301_v52 = vld [vmem:[#allocation68_spill] sm:$0xff] }
 0x3b6   : > { %9299 = vmatprep.mubr.msk.f32.mxu0 %vm582_vm1, %v13281_v49 }
 0x3b9   : > { %9300 = vmatmul.mubr.msk.f32.gmra.mrb[6].mxu0 %vm582_vm1, %v13282_v21 }
 0x3ba   : > { %9302 = vmatprep.mubr.msk.f32.mxu0 %vm582_vm1, %v13283_v41 }
 0x3bd   : > { %9303 = vmatmul.mubr.msk.f32.gmra.mrb[8].mxu0 %vm582_vm1, %v13284_v46 }
 0x3be   : > { %9305 = vmatprep.mubr.msk.f32.mxu0 %vm582_vm1, %v13285_v62 }
 0x3c1   : > { %9306 = vmatmul.mubr.msk.f32.gmra.mrb[10].mxu0 %vm582_vm1, %v13286_v60  ;;  %v13305_v60 = vld [vmem:[#allocation74_spill] sm:$0xff] }
 0x3c2   : > { %9308 = vmatprep.mubr.msk.f32.mxu0 %vm582_vm1, %v13287_v32 }
 0x3c5   : > { %9309 = vmatmul.mubr.msk.f32.gmra.mrb[12].mxu0 %vm582_vm1, %v13288_v48 }
 0x3c6   : > { %9311 = vmatprep.mubr.msk.f32.mxu0 %vm582_vm1, %v13289_v34 }
 0x3c9   : > { %9312 = vmatmul.mubr.msk.f32.gmra.mrb[14].mxu0 %vm582_vm1, %v13290_v12  ;;  %v13306_v12 = vld [vmem:[#allocation35_spill] sm:$0xff] }
 0x3ca   : > { %9314 = vmatprep.mubr.msk.f32.mxu0 %vm582_vm1, %v13291_v36 }
 0x3cd   : > { %9315 = vmatmul.mubr.msk.f32.gmra.mrb[16].mxu0 %vm582_vm1, %v13258_v55 }
 0x3ce   : > { %9317 = vmatprep.mubr.msk.f32.mxu0 %vm582_vm1, %v13292_v35 }
 0x3d1   : > { %9318 = vmatmul.mubr.msk.f32.gmra.mrb[18].mxu0 %vm582_vm1, %v13293_v37 }
 0x3d2   : > { %9320 = vmatprep.mubr.msk.f32.mxu0 %vm582_vm1, %v13294_v0 }
 0x3d5   : > { %9321 = vmatmul.mubr.msk.f32.gmra.mrb[20].mxu0 %vm582_vm1, %v13295_v17 }
 0x3d6   : > { %9323 = vmatprep.mubr.msk.f32.mxu0 %vm582_vm1, %v13296_v16 }
 0x3d9   : > { %9324 = vmatmul.mubr.msk.f32.gmra.mrb[22].mxu0 %vm582_vm1, %v13264_v50 }
 0x3da   : > { %9326 = vmatprep.mubr.msk.f32.mxu0 %vm582_vm1, %v13297_v2 }
 0x3dd   : > { %9327 = vmatmul.mubr.msk.f32.gmra.mrb[24].mxu0 %vm582_vm1, %v13298_v63  ;;  %v13307_v63 = vld [vmem:[#allocation36_spill] sm:$0xff] }
 0x3de   : > { %9329 = vmatprep.mubr.msk.f32.mxu0 %vm582_vm1, %v13267_v13  ;;  %v13299_v13 = vld [vmem:[#allocation64_spill] sm:$0xff] }
 0x3e1   : > { %9330 = vmatmul.mubr.msk.f32.gmra.mrb[26].mxu0 %vm582_vm1, %v11589_v31  ;;  %v12073_v31 = vld [vmem:[%s13056_s11] sm:$0xf] }
 0x3e2   : > { %9332 = vmatprep.mubr.msk.f32.mxu0 %vm582_vm1, %v11841_v27  ;;  %9388 = vmatprep.subr.msk.mxu1 %vm679_vm0, %v12073_v31 }
 0x3e5   : > { %9333 = vmatmul.mubr.msk.f32.gmra.mrb[28].mxu0 %vm582_vm1, %v11849_v5 }
 0x3e6   : > { %9335 = vmatprep.mubr.msk.f32.mxu0 %vm582_vm1, %v5011_v30 }
 0x3e9   : > { %9336 = vmatmul.mubr.msk.f32.gmra.mrb[30].mxu0 %vm582_vm1, %v5012_v3 }
 0x480   : > { %v9292_v5 = vpop.f32.mrb[0].mxu0 }
 0x481   : > { %v9540_v22 = vadd.f32 %v9292_v5, %v13299_v13  ;;  %v5180_v9 = vpop.f32.mrb[1].mxu0  ;;  %v13308_v5 = vld [vmem:[#allocation75_spill] sm:$0xff] }
 0x482   : > { %v9541_v6 = vadd.f32 %v5180_v9, %v13300_v25 }
 0x483   : > { %v5379_v54 = vmul.f32 %v9540_v22, %v12080_v24 }
 0x484   : > { %v5378_v45 = vmul.f32 %v9541_v6, %v12080_v24  ;;  %v9295_v27 = vpop.f32.mrb[2].mxu0 }
 0x485   : > { %v12092_v55 = vadd.f32 %v12086_v10, %v5379_v54  ;;  %v9542_v50 = vadd.f32 %v9295_v27, %v13301_v52  ;;  %v5190_v58 = vpop.f32.mrb[3].mxu0 }
 0x486   : > { %v12096_v59 = vadd.f32 %v12086_v10, %v5378_v45  ;;  %v9543_v29 = vadd.f32 %v5190_v58, %v13302_v28  ;;  %v13309_v28 = vld [vmem:[#allocation76_spill] sm:$0xff] }
 0x487   : > { %v8090_v61 = vmul.f32 -1.442695, %v12092_v55  ;;  %v5381_v4 = vmul.f32 %v9542_v50, %v12080_v24 }
 0x488   : > { %v8089_v19 = vmul.f32 -1.442695, %v12096_v59  ;;  %v5380_v43 = vmul.f32 %v9543_v29, %v12080_v24  ;;  %v9298_v40 = vpop.f32.mrb[4].mxu0 }
 0x489   : > { %10094 = vpow2.f32 %v8090_v61  ;;  %v12104_v47 = vadd.f32 %v12086_v10, %v5381_v4  ;;  %v9544_v7 = vadd.f32 %v9298_v40, %v13303_v23  ;;  %v5200_v18 = vpop.f32.mrb[5].mxu0 }
 0x48a   : > { %10096 = vpow2.f32 %v8089_v19  ;;  %v12108_v11 = vadd.f32 %v12086_v10, %v5380_v43  ;;  %v9545_v51 = vadd.f32 %v5200_v18, %v13304_v14  ;;  %v13310_v19 = vld [vmem:[#allocation77_spill] sm:$0xff] }
 0x48b   : > { %v8092_v33 = vmul.f32 -1.442695, %v12104_v47  ;;  %v5383_v49 = vmul.f32 %v9544_v7, %v12080_v24 }
 0x48c   : > { %v8091_v21 = vmul.f32 -1.442695, %v12108_v11  ;;  %v5382_v41 = vmul.f32 %v9545_v51, %v12080_v24  ;;  %v9301_v46 = vpop.f32.mrb[6].mxu0 }
 0x48d   : > { %10098 = vpow2.f32 %v8092_v33  ;;  %v12116_v62 = vadd.f32 %v12086_v10, %v5383_v49  ;;  %v9546_v32 = vadd.f32 %v9301_v46, %v13305_v60  ;;  %v5210_v48 = vpop.f32.mrb[7].mxu0  ;;  %v13311_v46 = vld [vmem:[#allocation78_spill] sm:$0xff] }
 0x48e   : > { %10100 = vpow2.f32 %v8091_v21  ;;  %v12120_v34 = vadd.f32 %v12086_v10, %v5382_v41  ;;  %v9547_v36 = vadd.f32 %v5210_v48, %v13306_v12  ;;  %v13312_v12 = vld [vmem:[#allocation79_spill] sm:$0xff] }
 0x48f   : > { %v8094_v35 = vmul.f32 -1.442695, %v12116_v62  ;;  %v5385_v37 = vmul.f32 %v9546_v32, %v12080_v24 }
 0x490   : > { %v8093_v0 = vmul.f32 -1.442695, %v12120_v34  ;;  %v5384_v17 = vmul.f32 %v9547_v36, %v12080_v24  ;;  %v9304_v16 = vpop.f32.mrb[8].mxu0 }
 0x491   : > { %10102 = vpow2.f32 %v8094_v35  ;;  %v12128_v2 = vadd.f32 %v12086_v10, %v5385_v37  ;;  %v9548_v30 = vadd.f32 %v9304_v16, %v13307_v63  ;;  %v5220_v3 = vpop.f32.mrb[9].mxu0 }
 0x492   : > { %10104 = vpow2.f32 %v8093_v0  ;;  %v12132_v39 = vadd.f32 %v12086_v10, %v5384_v17  ;;  %v9549_v13 = vadd.f32 %v5220_v3, %v13308_v5 }
 0x493   : > { %v10095_v22 = vpop.eup %10094  ;;  %v8096_v9 = vmul.f32 -1.442695, %v12128_v2  ;;  %v5387_v25 = vmul.f32 %v9548_v30, %v12080_v24 }
 0x494   : > { %v10097_v6 = vpop.eup %10096  ;;  %v5546_v54 = vadd.f32 1.0, %v10095_v22  ;;  %v8095_v45 = vmul.f32 -1.442695, %v12132_v39  ;;  %v5386_v27 = vmul.f32 %v9549_v13, %v12080_v24  ;;  %v9307_v52 = vpop.f32.mrb[10].mxu0  ;;  %v13313_v22 = vld [vmem:[#allocation42_spill] sm:$0xff] }
 0x495   : > { %v5545_v50 = vadd.f32 1.0, %v10097_v6  ;;  %10106 = vpow2.f32 %v8096_v9  ;;  %v12140_v58 = vadd.f32 %v12086_v10, %v5387_v25  ;;  %v9550_v29 = vadd.f32 %v9307_v52, %v13309_v28  ;;  %v5230_v61 = vpop.f32.mrb[11].mxu0 }
 0x496   : > { %10108 = vrcp.f32 %v5546_v54  ;;  %v12144_v4 = vadd.f32 %v12086_v10, %v5386_v27  ;;  %v9551_v43 = vadd.f32 %v5230_v61, %v13310_v19  ;;  %v13314_v54 = vld [vmem:[#allocation80_spill] sm:$0xff] }
 0x497   : > { %v10099_v40 = vpop.eup %10098  ;;  %10110 = vrcp.f32 %v5545_v50  ;;  %v8098_v23 = vmul.f32 -1.442695, %v12140_v58  ;;  %v5389_v7 = vmul.f32 %v9550_v29, %v12080_v24 }
 0x498   : > { %v10101_v18 = vpop.eup %10100  ;;  %v5548_v14 = vadd.f32 1.0, %v10099_v40  ;;  %10112 = vpow2.f32 %v8095_v45  ;;  %v8097_v51 = vmul.f32 -1.442695, %v12144_v4  ;;  %v5388_v33 = vmul.f32 %v9551_v43, %v12080_v24  ;;  %v9310_v49 = vpop.f32.mrb[12].mxu0 }
 0x499   : > { %v5547_v21 = vadd.f32 1.0, %v10101_v18  ;;  %10114 = vpow2.f32 %v8098_v23  ;;  %v12152_v41 = vadd.f32 %v12086_v10, %v5389_v7  ;;  %v9552_v60 = vadd.f32 %v9310_v49, %v13311_v46  ;;  %v5240_v32 = vpop.f32.mrb[13].mxu0  ;;  %v13315_v18 = vld [vmem:[#allocation56_spill] sm:$0xff]  ;;  %v13316_v46 = vld [vmem:[#allocation62_spill] sm:$0xff] }
 0x49a   : > { %10116 = vrcp.f32 %v5548_v14  ;;  %v12156_v48 = vadd.f32 %v12086_v10, %v5388_v33  ;;  %v9553_v36 = vadd.f32 %v5240_v32, %v13312_v12 }
 0x49b   : > { %v10103_v35 = vpop.eup %10102  ;;  %10118 = vrcp.f32 %v5547_v21  ;;  %v8100_v37 = vmul.f32 -1.442695, %v12152_v41  ;;  %v5391_v0 = vmul.f32 %v9552_v60, %v12080_v24 }
 0x49c   : > { %v10105_v17 = vpop.eup %10104  ;;  %v5550_v16 = vadd.f32 1.0, %v10103_v35  ;;  %10120 = vpow2.f32 %v8097_v51  ;;  %v8099_v63 = vmul.f32 -1.442695, %v12156_v48  ;;  %v5390_v30 = vmul.f32 %v9553_v36, %v12080_v24  ;;  %v9313_v3 = vpop.f32.mrb[14].mxu0 }
 0x49d   : > { %v5549_v5 = vadd.f32 1.0, %v10105_v17  ;;  %10122 = vpow2.f32 %v8100_v37  ;;  %v12164_v13 = vadd.f32 %v12086_v10, %v5391_v0  ;;  %v9554_v9 = vadd.f32 %v9313_v3, %v13313_v22  ;;  %v5250_v25 = vpop.f32.mrb[15].mxu0  ;;  %v13318_v3 = vld [vmem:[#allocation67_spill] sm:$0xff] }
 0x49e   : > { %10124 = vrcp.f32 %v5550_v16  ;;  %v12168_v6 = vadd.f32 %v12086_v10, %v5390_v30  ;;  %v9555_v45 = vadd.f32 %v5250_v25, %v13314_v54 }
 0x49f   : > { %v10107_v27 = vpop.eup %10106  ;;  %10126 = vrcp.f32 %v5549_v5  ;;  %v8102_v52 = vmul.f32 -1.442695, %v12164_v13  ;;  %v5393_v50 = vmul.f32 %v9554_v9, %v12080_v24  ;;  %v13319_v9 = vld [vmem:[#allocation4_spill] sm:$0xff] }
 0x4a0   : > { %v10109_v28 = vpop.eup %10108  ;;  %v5552_v29 = vadd.f32 1.0, %v10107_v27  ;;  %10128 = vpow2.f32 %v8099_v63  ;;  %v8101_v61 = vmul.f32 -1.442695, %v12168_v6  ;;  %v5392_v19 = vmul.f32 %v9555_v45, %v12080_v24  ;;  %v9316_v43 = vpop.f32.mrb[16].mxu0  ;;  %v13317_v63 = vld [vmem:[#allocation3_spill] sm:$0xff] }
 0x4a1   : > { %v10111_v40 = vpop.eup %10110  ;;  %v5642_v23 = vmul.f32 %v10109_v28, %v12092_v55  ;;  %10130 = vpow2.f32 %v8102_v52  ;;  %v12177_v7 = vadd.f32 %v12086_v10, %v5393_v50  ;;  %v9556_v14 = vadd.f32 %v9316_v43, %v13315_v18  ;;  %v5260_v51 = vpop.f32.mrb[17].mxu0 }
 0x4a2   : > { %v10113_v33 = vpop.eup %10112  ;;  %v5641_v49 = vmul.f32 %v10111_v40, %v12096_v59  ;;  %10132 = vrcp.f32 %v5552_v29  ;;  %v12182_v21 = vadd.f32 %v12086_v10, %v5392_v19  ;;  %v9557_v60 = vadd.f32 %v5260_v51, %v13316_v46 }
 0x4a3   : > { %v10115_v32 = vpop.eup %10114  ;;  %v5551_v12 = vadd.f32 1.0, %v10113_v33  ;;  %10134 = vpow2.f32 %v8101_v61  ;;  %v8104_v55 = vmul.f32 -1.442695, %v12177_v7  ;;  %v5395_v0 = vmul.f32 %v9556_v14, %v12080_v24  ;;  %v13320_v61 = vld [vmem:[#allocation81_spill] sm:$0xff] }
 0x4a4   : > { %v10117_v36 = vpop.eup %10116  ;;  %v5554_v35 = vadd.f32 1.0, %v10115_v32  ;;  %v8103_v37 = vmul.f32 -1.442695, %v12182_v21  ;;  %v5394_v17 = vmul.f32 %v9557_v60, %v12080_v24  ;;  %v9319_v59 = vpop.f32.mrb[18].mxu0  ;;  %v5674_v30 = vadd.f32 %v5642_v23, %v13317_v63 }
 0x4a5   : > { %v10119_v16 = vpop.eup %10118  ;;  %10136 = vrcp.f32 %v5551_v12  ;;  %v9558_v5 = vadd.f32 %v9319_v59, %v13318_v3  ;;  %v5270_v22 = vpop.f32.mrb[19].mxu0  ;;  %v5673_v25 = vadd.f32 %v5641_v49, %v13319_v9  ;;  %v5644_v45 = vmul.f32 %v10117_v36, %v12104_v47  ;;  %v13321_v12 = vld [vmem:[#allocation82_spill] sm:$0xff] }
 0x4a6   : > { %v10121_v54 = vpop.eup %10120  ;;  %10138 = vrcp.f32 %v5554_v35  ;;  %v12194_v27 = vadd.f32 %v12086_v10, %v5395_v0  ;;  %v12197_v52 = vadd.f32 %v12086_v10, %v5394_v17  ;;  %v9559_v19 = vadd.f32 %v5270_v22, %v13320_v61 }
 0x4a7   : > { %v10123_v50 = vpop.eup %10122  ;;  %v5553_v28 = vadd.f32 1.0, %v10121_v54  ;;  %10140 = vpow2.f32 %v8104_v55  ;;  %v5397_v29 = vmul.f32 %v9558_v5, %v12080_v24  ;;  %9340 = vmatprep.mubr.msk.f32.mxu1 %vm582_vm1, %v5673_v25  ;;  %v5643_v51 = vmul.f32 %v10119_v16, %v12108_v11  ;;  %v13322_v5 = vld [vmem:[#allocation6_spill] sm:$0xff] }
 0x4a8   : > { %v10125_v43 = vpop.eup %10124  ;;  %v5556_v40 = vadd.f32 1.0, %v10123_v50  ;;  %10142 = vpow2.f32 %v8103_v37  ;;  %v8106_v47 = vmul.f32 -1.442695, %v12194_v27  ;;  %v8105_v23 = vmul.f32 -1.442695, %v12197_v52  ;;  %9341 = vmatmul.mubr.msk.f32.vlgmr.msra.gmra.mrb[96].mxu1 %vm582_vm1, %v5674_v30  ;;  %v9322_v18 = vpop.f32.mrb[20].mxu0 }
 0x4a9   : > { %v10127_v14 = vpop.eup %10126  ;;  %10144 = vrcp.f32 %v5553_v28  ;;  %v12207_v33 = vadd.f32 %v12086_v10, %v5397_v29  ;;  %v5396_v49 = vmul.f32 %v9559_v19, %v12080_v24  ;;  %9389 = vmatpush3.msk.msra.mxu1 %vm679_vm0, %v12073_v31  ;;  %v5280_v46 = vpop.f32.mrb[21].mxu0  ;;  %v5646_v32 = vmul.f32 %v10125_v43, %v12116_v62  ;;  %v13323_v29 = vld [vmem:[#allocation5_spill] sm:$0xff] }
 0x4aa   : > { %v10129_v60 = vpop.eup %10128  ;;  %10146 = vrcp.f32 %v5556_v40  ;;  %v9560_v55 = vadd.f32 %v9322_v18, %v13321_v12  ;;  %v9561_v36 = vadd.f32 %v5280_v46, %v11857_v57  ;;  %v12224_v57 = vld [vmem:[%s13057_s12] ss:$0 sm:$0xff]  ;;  %v5645_v30 = vmul.f32 %v10127_v14, %v12120_v34 }
 0x4ab   : > { %v10131_v35 = vpop.eup %10130  ;;  %v5555_v11 = vadd.f32 1.0, %v10129_v60  ;;  %10148 = vpow2.f32 %v8106_v47  ;;  %v8108_v37 = vmul.f32 -1.442695, %v12207_v33  ;;  %v12217_v0 = vadd.f32 %v12086_v10, %v5396_v49  ;;  %6337 = vrot.lane.b32.xlu0 %v12224_v57, %s10393_s26  ;;  %v12239_v34 = vld [vmem:[%s13058_s13] ss:$0 sm:$0xff]  ;;  %v13324_v60 = vld [vmem:[#allocation8_spill] sm:$0xff] }
 0x4ac   : > { %v10133_v17 = vpop.eup %10132  ;;  %v5558_v59 = vadd.f32 1.0, %v10131_v35  ;;  %10150 = vpow2.f32 %v8105_v23  ;;  %v5399_v31 = vmul.f32 %v9560_v55, %v12080_v24  ;;  %v5398_v62 = vmul.f32 %v9561_v36, %v12080_v24  ;;  %v9325_v16 = vpop.f32.mrb[22].mxu0  ;;  %v13325_v55 = vld [vmem:[#allocation7_spill] sm:$0xff] }
 0x4ad   : > { %v10135_v63 = vpop.eup %10134  ;;  %10152 = vrcp.f32 %v5555_v11  ;;  %v8107_v3 = vmul.f32 -1.442695, %v12217_v0  ;;  %v5675_v22 = vadd.f32 %v5643_v51, %v13322_v5  ;;  %v5290_v9 = vpop.f32.mrb[23].mxu0  ;;  %v5676_v61 = vadd.f32 %v5644_v45, %v13323_v29 }
 0x4ae   : > { %10154 = vrcp.f32 %v5558_v59  ;;  %v5557_v25 = vadd.f32 1.0, %v10135_v63  ;;  %v12231_v54 = vadd.f32 %v12086_v10, %v5399_v31  ;;  %v12234_v50 = vadd.f32 %v12086_v10, %v5398_v62 }
 0x4af   : > { %v10137_v28 = vpop.eup %10136  ;;  %10156 = vpow2.f32 %v8108_v37  ;;  %9343 = vmatprep.mubr.msk.f32.mxu1 %vm582_vm1, %v5675_v22  ;;  %v9562_v19 = vadd.f32 %v9325_v16, %v11864_v8  ;;  %v9563_v43 = vadd.f32 %v5290_v9, %v11869_v1  ;;  %v5648_v47 = vmul.f32 %v10133_v17, %v12128_v2  ;;  %6372 = vrot.lane.b32.xlu0 %v12239_v34, %s10393_s26 }
 0x4b0   : > { %v10139_v40 = vpop.eup %10138  ;;  %10158 = vrcp.f32 %v5557_v25  ;;  %v8110_v23 = vmul.f32 -1.442695, %v12231_v54  ;;  %v8109_v18 = vmul.f32 -1.442695, %v12234_v50  ;;  %v9328_v14 = vpop.f32.mrb[24].mxu0  ;;  %v5647_v49 = vmul.f32 %v10137_v28, %v12132_v39  ;;  %9344 = vmatmul.mubr.msk.f32.gmra.mrb[98].mxu1 %vm582_vm1, %v5676_v61  ;;  %v13326_v25 = vld [vmem:[#allocation9_spill] sm:$0xff] }
 0x4b1   : > { %v10141_v51 = vpop.eup %10140  ;;  %10160 = vpow2.f32 %v8107_v3  ;;  %v5401_v45 = vmul.f32 %v9562_v19, %v12080_v24  ;;  %v5400_v8 = vmul.f32 %v9563_v43, %v12080_v24  ;;  %v5300_v1 = vpop.f32.mrb[25].mxu0  ;;  %v5677_v12 = vadd.f32 %v5645_v30, %v13324_v60 }
 0x4b2   : > { %v10143_v2 = vpop.eup %10142  ;;  %v5560_v46 = vadd.f32 1.0, %v10141_v51  ;;  %10162 = vpow2.f32 %v8110_v23  ;;  %v5678_v36 = vadd.f32 %v5646_v32, %v13325_v55  ;;  %v9564_v59 = vadd.f32 %v9328_v14, %v11874_v15  ;;  %v13328_v55 = vld [vmem:[#allocation11_spill] sm:$0xff] }
 0x4b3   : > { %v10145_v35 = vpop.eup %10144  ;;  %v5559_v11 = vadd.f32 1.0, %v10143_v2  ;;  %10164 = vpow2.f32 %v8109_v18  ;;  %v12256_v39 = vadd.f32 %v12086_v10, %v5401_v45  ;;  %v12259_v37 = vadd.f32 %v12086_v10, %v5400_v8  ;;  %9346 = vmatprep.mubr.msk.f32.mxu1 %vm582_vm1, %v5677_v12 }
 0x4b4   : > { %v10147_v17 = vpop.eup %10146  ;;  %10166 = vrcp.f32 %v5560_v46  ;;  %v9565_v31 = vadd.f32 %v5300_v1, %v11878_v42  ;;  %v9331_v62 = vpop.f32.mrb[26].mxu0  ;;  %v5649_v32 = vmul.f32 %v10145_v35, %v12144_v4  ;;  %9347 = vmatmul.mubr.msk.f32.gmra.mrb[100].mxu1 %vm582_vm1, %v5678_v36  ;;  %v5403_v9 = vmul.f32 %v9564_v59, %v12080_v24  ;;  %v13327_v4 = vld [vmem:[#allocation10_spill] sm:$0xff] }
 0x4b5   : > { %v10149_v16 = vpop.eup %10148  ;;  %10168 = vrcp.f32 %v5559_v11  ;;  %v8112_v63 = vmul.f32 -1.442695, %v12256_v39  ;;  %v8111_v30 = vmul.f32 -1.442695, %v12259_v37  ;;  %v5310_v3 = vpop.f32.mrb[27].mxu0  ;;  %v5679_v42 = vadd.f32 %v5647_v49, %v13326_v25  ;;  %v13329_v11 = vld [vmem:[#allocation12_spill] sm:$0xff] }
 0x4b6   : > { %v10151_v5 = vpop.eup %10150  ;;  %v5562_v22 = vadd.f32 1.0, %v10149_v16  ;;  %v5402_v15 = vmul.f32 %v9565_v31, %v12080_v24  ;;  %v5680_v61 = vadd.f32 %v5648_v47, %v13327_v4  ;;  %v9566_v19 = vadd.f32 %v9331_v62, %v11882_v56  ;;  %v13330_v25 = vld [vmem:[#allocation13_spill] sm:$0xff] }
 0x4b7   : > { %v10153_v28 = vpop.eup %10152  ;;  %v5561_v29 = vadd.f32 1.0, %v10151_v5  ;;  %10170 = vpow2.f32 %v8112_v63  ;;  %v5650_v23 = vmul.f32 %v10139_v40, %v12140_v58  ;;  %v12275_v18 = vadd.f32 %v12086_v10, %v5403_v9  ;;  %9349 = vmatprep.mubr.msk.f32.mxu1 %vm582_vm1, %v5679_v42 }
 0x4b8   : > { %v10155_v43 = vpop.eup %10154  ;;  %10172 = vrcp.f32 %v5562_v22  ;;  %v12278_v14 = vadd.f32 %v12086_v10, %v5402_v15  ;;  %v9334_v51 = vpop.f32.mrb[28].mxu0  ;;  %v5652_v45 = vmul.f32 %v10147_v17, %v12152_v41  ;;  %9350 = vmatmul.mubr.msk.f32.gmra.mrb[102].mxu1 %vm582_vm1, %v5680_v61  ;;  %v5405_v56 = vmul.f32 %v9566_v19, %v12080_v24 }
 0x4b9   : > { %v10157_v49 = vpop.eup %10156  ;;  %10174 = vrcp.f32 %v5561_v29  ;;  %v9567_v58 = vadd.f32 %v5310_v3, %v11886_v26  ;;  %v5320_v40 = vpop.f32.mrb[29].mxu0  ;;  %v5651_v8 = vmul.f32 %v10153_v28, %v12156_v48  ;;  %v8114_v2 = vmul.f32 -1.442695, %v12275_v18 }
 0x4ba   : > { %v10159_v47 = vpop.eup %10158  ;;  %v5564_v1 = vadd.f32 1.0, %v10157_v49  ;;  %10176 = vpow2.f32 %v8111_v30  ;;  %v8113_v60 = vmul.f32 -1.442695, %v12278_v14  ;;  %v12289_v41 = vadd.f32 %v12086_v10, %v5405_v56 }
 0x4bb   : > { %v10161_v46 = vpop.eup %10160  ;;  %v5404_v12 = vmul.f32 %v9567_v58, %v12080_v24  ;;  %v5681_v36 = vadd.f32 %v5649_v32, %v13328_v55  ;;  %v5682_v17 = vadd.f32 %v5650_v23, %v13329_v11  ;;  %v9568_v48 = vadd.f32 %v9334_v51, %v11890_v38  ;;  %v13334_v55 = vld [vmem:[#allocation18_spill] sm:$0xff] }
 0x4bc   : > { %v10163_v35 = vpop.eup %10162  ;;  %10178 = vrcp.f32 %v5564_v1  ;;  %v5563_v26 = vadd.f32 1.0, %v10161_v46  ;;  %v9337_v59 = vpop.f32.mrb[30].mxu0  ;;  %v8116_v16 = vmul.f32 -1.442695, %v12289_v41  ;;  %v9569_v38 = vadd.f32 %v5320_v40, %v11894_v44  ;;  %v13331_v44 = vld [vmem:[#allocation14_spill] sm:$0xff] }
 0x4bd   : > { %v10165_v31 = vpop.eup %10164  ;;  %v5566_v62 = vadd.f32 1.0, %v10163_v35  ;;  %10180 = vpow2.f32 %v8114_v2  ;;  %v12297_v63 = vadd.f32 %v12086_v10, %v5404_v12  ;;  %9352 = vmatprep.mubr.msk.f32.mxu1 %vm582_vm1, %v5681_v36  ;;  %v5330_v30 = vpop.f32.mrb[31].mxu0  ;;  %v5407_v5 = vmul.f32 %v9568_v48, %v12080_v24 }
 0x4be   : > { %v10167_v32 = vpop.eup %10166  ;;  %10182 = vrcp.f32 %v5563_v26  ;;  %v5565_v3 = vadd.f32 1.0, %v10165_v31  ;;  %9353 = vmatmul.mubr.msk.f32.gmra.mrb[104].mxu1 %vm582_vm1, %v5682_v17  ;;  %v5654_v9 = vmul.f32 %v10155_v43, %v12164_v13  ;;  %v5683_v42 = vadd.f32 %v5651_v8, %v13330_v25 }
 0x4bf   : > { %v10169_v22 = vpop.eup %10168  ;;  %10184 = vrcp.f32 %v5566_v62  ;;  %v8115_v15 = vmul.f32 -1.442695, %v12297_v63  ;;  %v5653_v28 = vmul.f32 %v10159_v47, %v12168_v6  ;;  %v12308_v29 = vadd.f32 %v12086_v10, %v5407_v5  ;;  %v13332_v47 = vld [vmem:[#allocation15_spill] sm:$0xff] }
 0x4c0   : > { %10186 = vrcp.f32 %v5565_v3  ;;  %v5406_v4 = vmul.f32 %v9569_v38, %v12080_v24  ;;  %9355 = vmatprep.mubr.msk.f32.mxu1 %vm582_vm1, %v5683_v42  ;;  %v5684_v19 = vadd.f32 %v5652_v45, %v13331_v44  ;;  %v9570_v13 = vadd.f32 %v9337_v59, %v11898_v53  ;;  %v13335_v59 = vld [vmem:[#allocation20_spill] sm:$0xff] }
 0x4c1   : > { %v10171_v61 = vpop.eup %10170  ;;  %10188 = vpow2.f32 %v8113_v60  ;;  %v9571_v43 = vadd.f32 %v5330_v30, %v11902_v20  ;;  %v5655_v51 = vmul.f32 %v10169_v22, %v12182_v21  ;;  %v8118_v6 = vmul.f32 -1.442695, %v12308_v29  ;;  %v13336_v30 = vld [vmem:[#allocation17_spill] sm:$0xff] }
 0x4c2   : > { %v10173_v23 = vpop.eup %10172  ;;  %10190 = vpow2.f32 %v8116_v16  ;;  %v12318_v49 = vadd.f32 %v12086_v10, %v5406_v4  ;;  %9356 = vmatmul.mubr.msk.f32.gmra.mrb[106].mxu1 %vm582_vm1, %v5684_v19  ;;  %v5409_v58 = vmul.f32 %v9570_v13, %v12080_v24  ;;  %v5568_v40 = vadd.f32 1.0, %v10171_v61 }
 0x4c3   : > { %v10175_v56 = vpop.eup %10174  ;;  %10192 = vpow2.f32 %v8115_v15  ;;  %v5408_v45 = vmul.f32 %v9571_v43, %v12080_v24  ;;  %v5685_v8 = vadd.f32 %v5653_v28, %v13332_v47  ;;  %v5656_v12 = vmul.f32 %v10167_v32, %v12177_v7  ;;  %v13333_v24 = vld [vmem:[#allocation16_spill] sm:$0xff]  ;;  %v13337_v15 = vld [vmem:[#allocation22_spill] sm:$0xff]  ;;  %v13338_v28 = vld [vmem:[#allocation19_spill] sm:$0xff] }
 0x4c4   : > { %v10177_v53 = vpop.eup %10176  ;;  %v5657_v20 = vmul.f32 %v10175_v56, %v12197_v52  ;;  %v8117_v21 = vmul.f32 -1.442695, %v12318_v49  ;;  %10194 = vpow2.f32 %v8118_v6  ;;  %v12327_v2 = vadd.f32 %v12086_v10, %v5409_v58  ;;  %v13339_v43 = vld [vmem:[#allocation23_spill] sm:$0xff]  ;;  %v13340_v56 = vld [vmem:[#allocation21_spill] sm:$0xff] }
 0x4c5   : > { %v5567_v1 = vadd.f32 1.0, %v10177_v53  ;;  %v12330_v46 = vadd.f32 %v12086_v10, %v5408_v45  ;;  %9358 = vmatprep.mubr.msk.f32.mxu1 %vm582_vm1, %v5685_v8  ;;  %v5686_v52 = vadd.f32 %v5654_v9, %v13333_v24  ;;  %v5687_v36 = vadd.f32 %v5655_v51, %v13334_v55  ;;  %v13343_v55 = vld [vmem:[#allocation26_spill] sm:$0xff] }
 0x4c6   : > { %v10179_v60 = vpop.eup %10178  ;;  %10196 = vpow2.f32 %v8117_v21  ;;  %v8120_v26 = vmul.f32 -1.442695, %v12327_v2  ;;  %v5689_v31 = vadd.f32 %v5657_v20, %v13335_v59  ;;  %v5658_v16 = vmul.f32 %v10173_v23, %v12194_v27  ;;  %v13346_v59 = vld [vmem:[#allocation28_spill] sm:$0xff] }
 0x4c7   : > { %v10181_v35 = vpop.eup %10180  ;;  %10198 = vrcp.f32 %v5567_v1  ;;  %v8119_v11 = vmul.f32 -1.442695, %v12330_v46  ;;  %9359 = vmatmul.mubr.msk.f32.gmra.mrb[108].mxu1 %vm582_vm1, %v5686_v52  ;;  %v5688_v32 = vadd.f32 %v5656_v12, %v13336_v30  ;;  %v5660_v42 = vmul.f32 %v10179_v60, %v12207_v33  ;;  %v13342_v1 = vld [vmem:[#allocation24_spill] sm:$0xff] }
 0x4c8   : > { %v10183_v17 = vpop.eup %10182  ;;  %10200 = vrcp.f32 %v5568_v40  ;;  %v5570_v48 = vadd.f32 1.0, %v10181_v35  ;;  %9361 = vmatprep.mubr.msk.f32.mxu1 %vm582_vm1, %v5687_v36  ;;  %v5690_v4 = vadd.f32 %v5658_v16, %v13338_v28  ;;  %v13341_v40 = vld [vmem:[#allocation25_spill] sm:$0xff]  ;;  %v10355_v28 = vld [vmem:[%s10509_s20 + $0x28] sm:$0xff] }
 0x4c9   : > { %v10185_v10 = vpop.eup %10184  ;;  %v5659_v7 = vmul.f32 %v10183_v17, %v12217_v0  ;;  %10202 = vpow2.f32 %v8120_v26  ;;  %v5692_v58 = vadd.f32 %v5660_v42, %v13340_v56  ;;  %v13344_v26 = vld [vmem:[#allocation27_spill] sm:$0xff]  ;;  %v10353_v42 = vld [vmem:[%s10509_s20 + $0x18] sm:$0xff]  ;;  %v6600_v56 = vld [vmem:[%s13059_s14 + $0x4] sm:$0xf] }
 0x4ca   : > { %v10187_v62 = vpop.eup %10186  ;;  %10204 = vpow2.f32 %v8119_v11  ;;  %v5662_v33 = vmul.f32 %v10185_v10, %v12231_v54  ;;  %v13345_v10 = vld [vmem:[#allocation30_spill] sm:$0xff]  ;;  %9438 = vmatprep.subr.msk.mxu1 %vm679_vm0, %v6600_v56 }
 0x4cb   : > { %v10189_v3 = vpop.eup %10188  ;;  %9362 = vmatmul.mubr.msk.f32.gmra.mrb[110].mxu1 %vm582_vm1, %v5688_v32  ;;  %v5661_v0 = vmul.f32 %v10187_v62, %v12234_v50  ;;  %10206 = vrcp.f32 %v5570_v48  ;;  %v5691_v25 = vadd.f32 %v5659_v7, %v13337_v15  ;;  %v13348_v32 = vld [vmem:[#allocation29_spill] sm:$0xff] }
 0x4cc   : > { %v10191_v5 = vpop.eup %10190  ;;  %v5569_v38 = vadd.f32 1.0, %v10189_v3  ;;  %9364 = vmatprep.mubr.msk.f32.mxu1 %vm582_vm1, %v5689_v31  ;;  %v5694_v54 = vadd.f32 %v5662_v33, %v13342_v1  ;;  %v10350_v15 = vld [vmem:[%s10509_s20] sm:$0xff]  ;;  %v10365_v33 = vld [vmem:[%s10509_s20 + $0x78] sm:$0xff]  ;;  %v10375_v1 = vld [vmem:[%s10509_s20 + $0xc8] sm:$0xff] }
 0x4cd   : > { %v10193_v22 = vpop.eup %10192  ;;  %v5572_v9 = vadd.f32 1.0, %v10191_v5  ;;  %v5693_v23 = vadd.f32 %v5661_v0, %v13339_v43  ;;  %v13349_v5 = vld [vmem:[#allocation34_spill] sm:$0xff]  ;;  %v13350_v0 = vld [vmem:[#allocation31_spill] sm:$0xff]  ;;  %v10362_v43 = vld [vmem:[%s10509_s20 + $0x60] sm:$0xff] }
 0x4ce   : > { %10208 = vrcp.f32 %v5569_v38  ;;  %v5571_v27 = vadd.f32 1.0, %v10193_v22  ;;  %v10195_v61 = vpop.eup %10194 }
 0x4cf   : > { %9365 = vmatmul.mubr.msk.f32.gmra.mrb[112].mxu1 %vm582_vm1, %v5690_v4  ;;  %v5574_v50 = vadd.f32 1.0, %v10195_v61  ;;  %v10356_v4 = vld [vmem:[%s10509_s20 + $0x30] sm:$0xff]  ;;  %v10357_v61 = vld [vmem:[%s10509_s20 + $0x38] sm:$0xff] }
 0x4d0   : > { %v10197_v44 = vpop.eup %10196  ;;  %10210 = vrcp.f32 %v5571_v27  ;;  %9367 = vmatprep.mubr.msk.f32.mxu1 %vm582_vm1, %v5691_v25  ;;  %v10351_v25 = vld [vmem:[%s10509_s20 + $0x8] sm:$0xff]  ;;  %v10354_v27 = vld [vmem:[%s10509_s20 + $0x20] sm:$0xff] }
 0x4d1   : > { %v10199_v19 = vpop.eup %10198  ;;  %10212 = vrcp.f32 %v5572_v9  ;;  %v5573_v13 = vadd.f32 1.0, %v10197_v44  ;;  %v10358_v44 = vld [vmem:[%s10509_s20 + $0x40] sm:$0xff] }
 0x4d2   : > { %v10201_v51 = vpop.eup %10200  ;;  %v5663_v6 = vmul.f32 %v10199_v19, %v12259_v37  ;;  %v10359_v19 = vld [vmem:[%s10509_s20 + $0x48] sm:$0xff] }
 0x4d3   : > { %v10203_v45 = vpop.eup %10202  ;;  %10214 = vrcp.f32 %v5573_v13  ;;  %9368 = vmatmul.mubr.msk.f32.gmra.mrb[114].mxu1 %vm582_vm1, %v5692_v58  ;;  %v5664_v47 = vmul.f32 %v10201_v51, %v12256_v39  ;;  %v10361_v13 = vld [vmem:[%s10509_s20 + $0x58] sm:$0xff]  ;;  %v10364_v51 = vld [vmem:[%s10509_s20 + $0x70] sm:$0xff]  ;;  %v10367_v58 = vld [vmem:[%s10509_s20 + $0x88] sm:$0xff] }
 0x4d4   : > { %v10205_v53 = vpop.eup %10204  ;;  %10216 = vrcp.f32 %v5574_v50  ;;  %v5576_v20 = vadd.f32 1.0, %v10203_v45  ;;  %9370 = vmatprep.mubr.msk.f32.mxu1 %vm582_vm1, %v5693_v23  ;;  %v5695_v21 = vadd.f32 %v5663_v6, %v13341_v40  ;;  %v10360_v50 = vld [vmem:[%s10509_s20 + $0x50] sm:$0xff]  ;;  %v10363_v23 = vld [vmem:[%s10509_s20 + $0x68] sm:$0xff]  ;;  %v10366_v6 = vld [vmem:[%s10509_s20 + $0x80] sm:$0xff] }
 0x4d5   : > { %v5575_v8 = vadd.f32 1.0, %v10205_v53  ;;  %v10207_v60 = vpop.eup %10206  ;;  %v5696_v36 = vadd.f32 %v5664_v47, %v13343_v55  ;;  %v10368_v45 = vld [vmem:[%s10509_s20 + $0x90] sm:$0xff]  ;;  %v10369_v53 = vld [vmem:[%s10509_s20 + $0x98] sm:$0xff]  ;;  %v10371_v40 = vld [vmem:[%s10509_s20 + $0xa8] sm:$0xff] }
 0x4d6   : > { %v5666_v52 = vmul.f32 %v10207_v60, %v12275_v18  ;;  %v10373_v47 = vld [vmem:[%s10509_s20 + $0xb8] sm:$0xff]  ;;  %v12461_v55 = vld [vmem:[%s13059_s14] sm:$0xf] }
 0x4d7   : > { %10218 = vrcp.f32 %v5575_v8  ;;  %9371 = vmatmul.mubr.msk.f32.gmra.mrb[116].mxu1 %vm582_vm1, %v5694_v54  ;;  %v10374_v8 = vld [vmem:[%s10509_s20 + $0xc0] sm:$0xff]  ;;  %v10376_v54 = vld [vmem:[%s10509_s20 + $0xd0] sm:$0xff]  ;;  %v10377_v60 = vld [vmem:[%s10509_s20 + $0xd8] sm:$0xff] }
 0x4d8   : > { %v10209_v37 = vpop.eup %10208  ;;  %10220 = vrcp.f32 %v5576_v20  ;;  %9373 = vmatprep.mubr.msk.f32.mxu1 %vm582_vm1, %v5695_v21  ;;  %v5698_v18 = vadd.f32 %v5666_v52, %v13346_v59  ;;  %v10370_v20 = vld [vmem:[%s10509_s20 + $0xa0] sm:$0xff]  ;;  %v10372_v21 = vld [vmem:[%s10509_s20 + $0xb0] sm:$0xff]  ;;  %v10381_v52 = vld [vmem:[%s10509_s20 + $0xf8] sm:$0xff] }
 0x4d9   : > { %v5665_v12 = vmul.f32 %v10209_v37, %v12278_v14  ;;  %v10378_v37 = vld [vmem:[%s10509_s20 + $0xe0] sm:$0xff] }
 0x4da   : > { %v10211_v24 = vpop.eup %10210 }
 0x4db   : > { %v10213_v35 = vpop.eup %10212  ;;  %v5667_v39 = vmul.f32 %v10211_v24, %v12297_v63  ;;  %v5697_v11 = vadd.f32 %v5665_v12, %v13344_v26  ;;  %9374 = vmatmul.mubr.msk.f32.gmra.mrb[118].mxu1 %vm582_vm1, %v5696_v36  ;;  %v13347_v63 = vld [vmem:[#allocation32_spill] sm:$0xff]  ;;  %v10379_v12 = vld [vmem:[%s10509_s20 + $0xe8] sm:$0xff]  ;;  %v10380_v24 = vld [vmem:[%s10509_s20 + $0xf0] sm:$0xff] }
 0x4dc   : > { %v5668_v7 = vmul.f32 %v10213_v35, %v12289_v41 }
 0x4dd   : > { %v10215_v17 = vpop.eup %10214  ;;  %9376 = vmatprep.mubr.msk.f32.mxu1 %vm582_vm1, %v5697_v11  ;;  %v5699_v14 = vadd.f32 %v5667_v39, %v13345_v10 }
 0x4de   : > { %v5669_v48 = vmul.f32 %v10215_v17, %v12318_v49  ;;  %v10217_v31 = vpop.eup %10216  ;;  %v5700_v3 = vadd.f32 %v5668_v7, %v13348_v32 }
 0x4df   : > { %9377 = vmatmul.mubr.msk.f32.gmra.mrb[120].mxu1 %vm582_vm1, %v5698_v18  ;;  %v5670_v30 = vmul.f32 %v10217_v31, %v12308_v29  ;;  %v13351_v29 = vld [vmem:[#allocation33_spill] sm:$0xff] }
 0x4e0   : > { %9379 = vmatprep.mubr.msk.f32.mxu1 %vm582_vm1, %v5699_v14  ;;  %v5701_v62 = vadd.f32 %v5669_v48, %v13347_v63 }
 0x4e1   : > { %v10219_v16 = vpop.eup %10218  ;;  %v5702_v9 = vadd.f32 %v5670_v30, %v13350_v0 }
 0x4e2   : > { %v10221_v41 = vpop.eup %10220  ;;  %v5671_v49 = vmul.f32 %v10219_v16, %v12330_v46 }
 0x4e3   : > { %9380 = vmatmul.mubr.msk.f32.gmra.mrb[122].mxu1 %vm582_vm1, %v5700_v3  ;;  %v5672_v22 = vmul.f32 %v10221_v41, %v12327_v2  ;;  %v10352_v2 = vld [vmem:[%s10509_s20 + $0x10] sm:$0xff] }
 0x4e4   : > { %9382 = vmatprep.mubr.msk.f32.mxu1 %vm582_vm1, %v5701_v62  ;;  %v5703_v38 = vadd.f32 %v5671_v49, %v13349_v5 }
 0x4e5   : > { %v5704_v46 = vadd.f32 %v5672_v22, %v13351_v29 }
 0x4e7   : > { %9383 = vmatmul.mubr.msk.f32.gmra.mrb[124].mxu1 %vm582_vm1, %v5702_v9 }
 0x4e8   : > { %9385 = vmatprep.mubr.msk.f32.mxu1 %vm582_vm1, %v5703_v38 }
 0x4eb   : > { %9386 = vmatmul.mubr.msk.f32.gmra.mrb[126].mxu1 %vm582_vm1, %v5704_v46 }
 0x4ec   : > { %9390 = vmatprep.mubr.msk.f32.mxu1 %vm582_vm1, %v10350_v15 }
 0x4ef   : > { %9391 = vmatmul.mubr.msk.f32.vlgmr.msra.gmra.mrb[128].mxu1 %vm582_vm1, %v10351_v25 }
 0x4f0   : > { %9393 = vmatprep.mubr.msk.f32.mxu1 %vm582_vm1, %v10352_v2  ;;  %9439 = vmatpush3.msk.msra.mxu1 %vm679_vm0, %v6600_v56 }
 0x4f1   : > { %9488 = vmatprep.subr.msk.mxu1 %vm679_vm0, %v12461_v55 }
 0x4f3   : > { %9394 = vmatmul.mubr.msk.f32.gmra.mrb[130].mxu1 %vm582_vm1, %v10353_v42 }
 0x4f4   : > { %9396 = vmatprep.mubr.msk.f32.mxu1 %vm582_vm1, %v10354_v27 }
 0x4f7   : > { %9397 = vmatmul.mubr.msk.f32.gmra.mrb[132].mxu1 %vm582_vm1, %v10355_v28 }
 0x4f8   : > { %9399 = vmatprep.mubr.msk.f32.mxu1 %vm582_vm1, %v10356_v4 }
 0x4fb   : > { %9400 = vmatmul.mubr.msk.f32.gmra.mrb[134].mxu1 %vm582_vm1, %v10357_v61 }
 0x4fc   : > { %9402 = vmatprep.mubr.msk.f32.mxu1 %vm582_vm1, %v10358_v44 }
 0x4ff   : > { %9403 = vmatmul.mubr.msk.f32.gmra.mrb[136].mxu1 %vm582_vm1, %v10359_v19 }
 0x500   : > { %9405 = vmatprep.mubr.msk.f32.mxu1 %vm582_vm1, %v10360_v50 }
 0x503   : > { %9406 = vmatmul.mubr.msk.f32.gmra.mrb[138].mxu1 %vm582_vm1, %v10361_v13 }
 0x504   : > { %9408 = vmatprep.mubr.msk.f32.mxu1 %vm582_vm1, %v10362_v43 }
 0x507   : > { %9409 = vmatmul.mubr.msk.f32.gmra.mrb[140].mxu1 %vm582_vm1, %v10363_v23 }
 0x508   : > { %9411 = vmatprep.mubr.msk.f32.mxu1 %vm582_vm1, %v10364_v51 }
 0x50b   : > { %9412 = vmatmul.mubr.msk.f32.gmra.mrb[142].mxu1 %vm582_vm1, %v10365_v33 }
 0x50c   : > { %9414 = vmatprep.mubr.msk.f32.mxu1 %vm582_vm1, %v10366_v6 }
 0x50f   : > { %9415 = vmatmul.mubr.msk.f32.gmra.mrb[144].mxu1 %vm582_vm1, %v10367_v58 }
 0x510   : > { %9417 = vmatprep.mubr.msk.f32.mxu1 %vm582_vm1, %v10368_v45 }
 0x513   : > { %9418 = vmatmul.mubr.msk.f32.gmra.mrb[146].mxu1 %vm582_vm1, %v10369_v53 }
 0x514   : > { %9420 = vmatprep.mubr.msk.f32.mxu1 %vm582_vm1, %v10370_v20 }
 0x517   : > { %9421 = vmatmul.mubr.msk.f32.gmra.mrb[148].mxu1 %vm582_vm1, %v10371_v40 }
 0x518   : > { %9423 = vmatprep.mubr.msk.f32.mxu1 %vm582_vm1, %v10372_v21 }
 0x51b   : > { %9424 = vmatmul.mubr.msk.f32.gmra.mrb[150].mxu1 %vm582_vm1, %v10373_v47 }
 0x51c   : > { %9426 = vmatprep.mubr.msk.f32.mxu1 %vm582_vm1, %v10374_v8 }
 0x51d   : > { %v12525_v2 = vpop.permute.xlu0 %6337 }
 0x51f   : > { %9427 = vmatmul.mubr.msk.f32.gmra.mrb[152].mxu1 %vm582_vm1, %v10375_v1 }
 0x520   : > { %9429 = vmatprep.mubr.msk.f32.mxu1 %vm582_vm1, %v10376_v54 }
 0x521   : > { %v12531_v4 = vpop.permute.xlu0 %6372 }
 0x523   : > { %9430 = vmatmul.mubr.msk.f32.gmra.mrb[154].mxu1 %vm582_vm1, %v10377_v60 }
 0x524   : > { %9432 = vmatprep.mubr.msk.f32.mxu1 %vm582_vm1, %v10378_v37 }
 0x527   : > { %9433 = vmatmul.mubr.msk.f32.gmra.mrb[156].mxu1 %vm582_vm1, %v10379_v12 }
 0x528   : > { %9435 = vmatprep.mubr.msk.f32.mxu1 %vm582_vm1, %v10380_v24 }
 0x52b   : > { %9436 = vmatmul.mubr.msk.f32.gmra.mrb[158].mxu1 %vm582_vm1, %v10381_v52 }
 0x57b   : > { %v12465_v36 = vpop.f32.mrb[96].mxu1 }
 0x57c   : > { %v12467_v35 = vpop.f32.mrb[97].mxu1 }
 0x583   : > { %v12469_v39 = vpop.f32.mrb[98].mxu1 }
 0x584   : > { %v12471_v26 = vpop.f32.mrb[99].mxu1 }
 0x587   : > { %v12473_v11 = vpop.f32.mrb[100].mxu1 }
 0x588   : > { %v12475_v17 = vpop.f32.mrb[101].mxu1 }
 0x58b   : > { %v12477_v10 = vpop.f32.mrb[102].mxu1 }
 0x58c   : > { %v12479_v14 = vpop.f32.mrb[103].mxu1 }
 0x591   : > { %v12481_v7 = vpop.f32.mrb[104].mxu1 }
 0x592   : > { %v12483_v48 = vpop.f32.mrb[105].mxu1 }
 0x595   : > { %v12485_v59 = vpop.f32.mrb[106].mxu1 }
 0x596   : > { %v12487_v18 = vpop.f32.mrb[107].mxu1 }
 0x59a   : > { %v12489_v31 = vpop.f32.mrb[108].mxu1 }
 0x59b   : > { %v12491_v63 = vpop.f32.mrb[109].mxu1 }
 0x59e   : > { %v12493_v62 = vpop.f32.mrb[110].mxu1 }
 0x59f   : > { %v12495_v16 = vpop.f32.mrb[111].mxu1 }
 0x5a2   : > { %v12497_v30 = vpop.f32.mrb[112].mxu1 }
 0x5a3   : > { %v12499_v32 = vpop.f32.mrb[113].mxu1 }
 0x5a6   : > { %v12501_v3 = vpop.f32.mrb[114].mxu1 }
 0x5a7   : > { %v12503_v41 = vpop.f32.mrb[115].mxu1 }
 0x5aa   : > { %v12505_v49 = vpop.f32.mrb[116].mxu1 }
 0x5ab   : > { %v12507_v5 = vpop.f32.mrb[117].mxu1 }
 0x5ae   : > { %v12509_v38 = vpop.f32.mrb[118].mxu1 }
 0x5af   : > { %v12511_v22 = vpop.f32.mrb[119].mxu1 }
 0x5b2   : > { %v12513_v0 = vpop.f32.mrb[120].mxu1 }
 0x5b3   : > { %v12515_v9 = vpop.f32.mrb[121].mxu1 }
 0x5b6   : > { %v12517_v29 = vpop.f32.mrb[122].mxu1 }
 0x5b7   : > { %v12519_v46 = vpop.f32.mrb[123].mxu1 }
 0x5ba   : > { %v12521_v15 = vpop.f32.mrb[124].mxu1 }
 0x5bb   : > { %v12523_v25 = vpop.f32.mrb[125].mxu1 }
 0x5be   : > { %v12527_v42 = vpop.f32.mrb[126].mxu1 }
 0x5bf   : > { %v12529_v27 = vpop.f32.mrb[127].mxu1 }
 0x5c2   : > { %v9392_v28 = vpop.f32.mrb[128].mxu1 }
 0x5c3   : > { %v6341_v61 = vmul.f32 %v9392_v28, %v12525_v2  ;;  %v6100_v44 = vpop.f32.mrb[129].mxu1 }
 0x5c4   : > { %v6340_v19 = vmul.f32 %v12525_v2, %v6100_v44 }
 0x5c5   : > { %v6376_v50 = vadd.f32 %v12531_v4, %v6341_v61 }
 0x5c6   : > { %v9395_v13 = vpop.f32.mrb[130].mxu1  ;;  %v6375_v43 = vadd.f32 %v12531_v4, %v6340_v19 }
 0x5c7   : > { %v6343_v23 = vmul.f32 %v9395_v13, %v12525_v2  ;;  %v6110_v51 = vpop.f32.mrb[131].mxu1  ;;  %v6536_v33 = vmul.f32 0.1, %v6376_v50  ;;  %vm6504_vm4 = vcmp.ge.f32.partialorder %v6376_v50, 0.0 }
 0x5c8   : > { %v6342_v6 = vmul.f32 %v12525_v2, %v6110_v51  ;;  %vm6503_vm3 = vcmp.ge.f32.partialorder %v6375_v43, 0.0  ;;  %v6535_v56 = vmul.f32 0.1, %v6375_v43 }
 0x5c9   : > { %v6378_v58 = vadd.f32 %v12531_v4, %v6343_v23  ;;  %v6568_v8 = vsel %vm6504_vm4, %v6376_v50, %v6536_v33 }
 0x5ca   : > { %v6377_v45 = vadd.f32 %v12531_v4, %v6342_v6  ;;  %v9398_v53 = vpop.f32.mrb[132].mxu1  ;;  %v6567_v20 = vsel %vm6503_vm3, %v6375_v43, %v6535_v56 }
 0x5cb   : > { %v6538_v40 = vmul.f32 0.1, %v6378_v58  ;;  %v6345_v21 = vmul.f32 %v9398_v53, %v12525_v2  ;;  %v6120_v47 = vpop.f32.mrb[133].mxu1  ;;  %9440 = vmatprep.mubr.msk.f32.mxu1 %vm582_vm1, %v6567_v20  ;;  %vm6506_vm6 = vcmp.ge.f32.partialorder %v6378_v58, 0.0 }
 0x5cc   : > { %v6537_v1 = vmul.f32 0.1, %v6377_v45  ;;  %v6344_v54 = vmul.f32 %v12525_v2, %v6120_v47  ;;  %9441 = vmatmul.mubr.msk.f32.vlgmr.msra.gmra.mrb[160].mxu1 %vm582_vm1, %v6568_v8  ;;  %vm6505_vm5 = vcmp.ge.f32.partialorder %v6377_v45, 0.0 }
 0x5cd   : > { %v6380_v60 = vadd.f32 %v12531_v4, %v6345_v21  ;;  %9489 = vmatpush3.msk.msra.mxu1 %vm679_vm0, %v12461_v55  ;;  %v6570_v44 = vsel %vm6506_vm6, %v6378_v58, %v6538_v40 }
 0x5ce   : > { %v6379_v37 = vadd.f32 %v12531_v4, %v6344_v54  ;;  %v9401_v12 = vpop.f32.mrb[134].mxu1  ;;  %v6569_v24 = vsel %vm6505_vm5, %v6377_v45, %v6537_v1 }
 0x5cf   : > { %v6540_v52 = vmul.f32 0.1, %v6380_v60  ;;  %v6347_v28 = vmul.f32 %v9401_v12, %v12525_v2  ;;  %v6130_v61 = vpop.f32.mrb[135].mxu1  ;;  %9443 = vmatprep.mubr.msk.f32.mxu1 %vm582_vm1, %v6569_v24  ;;  %vm6508_vm8 = vcmp.ge.f32.partialorder %v6380_v60, 0.0 }
 0x5d0   : > { %v6539_v19 = vmul.f32 0.1, %v6379_v37  ;;  %v6346_v50 = vmul.f32 %v12525_v2, %v6130_v61  ;;  %9444 = vmatmul.mubr.msk.f32.gmra.mrb[162].mxu1 %vm582_vm1, %v6570_v44  ;;  %vm6507_vm7 = vcmp.ge.f32.partialorder %v6379_v37, 0.0 }
 0x5d1   : > { %v6382_v55 = vadd.f32 %v12531_v4, %v6347_v28  ;;  %v6572_v56 = vsel %vm6508_vm8, %v6380_v60, %v6540_v52 }
 0x5d2   : > { %v6381_v13 = vadd.f32 %v12531_v4, %v6346_v50  ;;  %v9404_v43 = vpop.f32.mrb[136].mxu1  ;;  %v6571_v23 = vsel %vm6507_vm7, %v6379_v37, %v6539_v19 }
 0x5d3   : > { %v6542_v51 = vmul.f32 0.1, %v6382_v55  ;;  %v6349_v33 = vmul.f32 %v9404_v43, %v12525_v2  ;;  %v6140_v6 = vpop.f32.mrb[137].mxu1  ;;  %9446 = vmatprep.mubr.msk.f32.mxu1 %vm582_vm1, %v6571_v23  ;;  %vm6510_vm10 = vcmp.ge.f32.partialorder %v6382_v55, 0.0 }
 0x5d4   : > { %v6541_v58 = vmul.f32 0.1, %v6381_v13  ;;  %v6348_v45 = vmul.f32 %v12525_v2, %v6140_v6  ;;  %9447 = vmatmul.mubr.msk.f32.gmra.mrb[164].mxu1 %vm582_vm1, %v6572_v56  ;;  %vm6509_vm9 = vcmp.ge.f32.partialorder %v6381_v13, 0.0 }
 0x5d5   : > { %v6384_v53 = vadd.f32 %v12531_v4, %v6349_v33  ;;  %v6574_v54 = vsel %vm6510_vm10, %v6382_v55, %v6542_v51 }
 0x5d6   : > { %v6383_v20 = vadd.f32 %v12531_v4, %v6348_v45  ;;  %v9407_v40 = vpop.f32.mrb[138].mxu1  ;;  %v6573_v21 = vsel %vm6509_vm9, %v6381_v13, %v6541_v58 }
 0x5d7   : > { %v6544_v47 = vmul.f32 0.1, %v6384_v53  ;;  %v6351_v8 = vmul.f32 %v9407_v40, %v12525_v2  ;;  %v6150_v1 = vpop.f32.mrb[139].mxu1  ;;  %9449 = vmatprep.mubr.msk.f32.mxu1 %vm582_vm1, %v6573_v21  ;;  %vm6512_vm12 = vcmp.ge.f32.partialorder %v6384_v53, 0.0 }
 0x5d8   : > { %v6543_v60 = vmul.f32 0.1, %v6383_v20  ;;  %v6350_v37 = vmul.f32 %v12525_v2, %v6150_v1  ;;  %9450 = vmatmul.mubr.msk.f32.gmra.mrb[166].mxu1 %vm582_vm1, %v6574_v54  ;;  %vm6511_vm11 = vcmp.ge.f32.partialorder %v6383_v20, 0.0 }
 0x5d9   : > { %v6386_v12 = vadd.f32 %v12531_v4, %v6351_v8  ;;  %v6576_v50 = vsel %vm6512_vm12, %v6384_v53, %v6544_v47 }
 0x5da   : > { %v6385_v24 = vadd.f32 %v12531_v4, %v6350_v37  ;;  %v9410_v52 = vpop.f32.mrb[140].mxu1  ;;  %v6575_v28 = vsel %vm6511_vm11, %v6383_v20, %v6543_v60 }
 0x5db   : > { %v6546_v61 = vmul.f32 0.1, %v6386_v12  ;;  %v6353_v44 = vmul.f32 %v9410_v52, %v12525_v2  ;;  %v6160_v19 = vpop.f32.mrb[141].mxu1  ;;  %9452 = vmatprep.mubr.msk.f32.mxu1 %vm582_vm1, %v6575_v28  ;;  %vm6514_vm14 = vcmp.ge.f32.partialorder %v6386_v12, 0.0 }
 0x5dc   : > { %v6545_v55 = vmul.f32 0.1, %v6385_v24  ;;  %v6352_v13 = vmul.f32 %v12525_v2, %v6160_v19  ;;  %9453 = vmatmul.mubr.msk.f32.gmra.mrb[168].mxu1 %vm582_vm1, %v6576_v50  ;;  %vm6513_vm13 = vcmp.ge.f32.partialorder %v6385_v24, 0.0 }
 0x5dd   : > { %v6388_v43 = vadd.f32 %v12531_v4, %v6353_v44  ;;  %v6578_v45 = vsel %vm6514_vm14, %v6386_v12, %v6546_v61 }
 0x5de   : > { %v6387_v23 = vadd.f32 %v12531_v4, %v6352_v13  ;;  %v9413_v51 = vpop.f32.mrb[142].mxu1  ;;  %v6577_v33 = vsel %vm6513_vm13, %v6385_v24, %v6545_v55 }
 0x5df   : > { %v6548_v6 = vmul.f32 0.1, %v6388_v43  ;;  %v6355_v56 = vmul.f32 %v9413_v51, %v12525_v2  ;;  %v6170_v58 = vpop.f32.mrb[143].mxu1  ;;  %9455 = vmatprep.mubr.msk.f32.mxu1 %vm582_vm1, %v6577_v33  ;;  %vm6516_vm0 = vcmp.ge.f32.partialorder %v6388_v43, 0.0 }
 0x5e0   : > { %v6547_v53 = vmul.f32 0.1, %v6387_v23  ;;  %v6354_v20 = vmul.f32 %v12525_v2, %v6170_v58  ;;  %9456 = vmatmul.mubr.msk.f32.gmra.mrb[170].mxu1 %vm582_vm1, %v6578_v45  ;;  %vm6515_vm15 = vcmp.ge.f32.partialorder %v6387_v23, 0.0 }
 0x5e1   : > { %v6390_v40 = vadd.f32 %v12531_v4, %v6355_v56  ;;  %v6580_v37 = vsel %vm6516_vm0, %v6388_v43, %v6548_v6 }
 0x5e2   : > { %v6389_v21 = vadd.f32 %v12531_v4, %v6354_v20  ;;  %v9416_v47 = vpop.f32.mrb[144].mxu1  ;;  %v6579_v8 = vsel %vm6515_vm15, %v6387_v23, %v6547_v53 }
 0x5e3   : > { %v6550_v1 = vmul.f32 0.1, %v6390_v40  ;;  %v6357_v54 = vmul.f32 %v9416_v47, %v12525_v2  ;;  %v6180_v60 = vpop.f32.mrb[145].mxu1  ;;  %9458 = vmatprep.mubr.msk.f32.mxu1 %vm582_vm1, %v6579_v8  ;;  %vm6518_vm3 = vcmp.ge.f32.partialorder %v6390_v40, 0.0 }
 0x5e4   : > { %v6549_v12 = vmul.f32 0.1, %v6389_v21  ;;  %v6356_v24 = vmul.f32 %v12525_v2, %v6180_v60  ;;  %9459 = vmatmul.mubr.msk.f32.gmra.mrb[172].mxu1 %vm582_vm1, %v6580_v37  ;;  %vm6517_vm2 = vcmp.ge.f32.partialorder %v6389_v21, 0.0 }
 0x5e5   : > { %v6392_v52 = vadd.f32 %v12531_v4, %v6357_v54  ;;  %v6582_v13 = vsel %vm6518_vm3, %v6390_v40, %v6550_v1 }
 0x5e6   : > { %v6391_v28 = vadd.f32 %v12531_v4, %v6356_v24  ;;  %v9419_v61 = vpop.f32.mrb[146].mxu1  ;;  %v6581_v44 = vsel %vm6517_vm2, %v6389_v21, %v6549_v12 }
 0x5e7   : > { %v6552_v19 = vmul.f32 0.1, %v6392_v52  ;;  %v6359_v50 = vmul.f32 %v9419_v61, %v12525_v2  ;;  %v6190_v55 = vpop.f32.mrb[147].mxu1  ;;  %9461 = vmatprep.mubr.msk.f32.mxu1 %vm582_vm1, %v6581_v44  ;;  %vm6520_vm5 = vcmp.ge.f32.partialorder %v6392_v52, 0.0 }
 0x5e8   : > { %v6551_v43 = vmul.f32 0.1, %v6391_v28  ;;  %v6358_v23 = vmul.f32 %v12525_v2, %v6190_v55  ;;  %9462 = vmatmul.mubr.msk.f32.gmra.mrb[174].mxu1 %vm582_vm1, %v6582_v13  ;;  %vm6519_vm4 = vcmp.ge.f32.partialorder %v6391_v28, 0.0 }
 0x5e9   : > { %v6394_v51 = vadd.f32 %v12531_v4, %v6359_v50  ;;  %v6584_v20 = vsel %vm6520_vm5, %v6392_v52, %v6552_v19 }
 0x5ea   : > { %v6393_v33 = vadd.f32 %v12531_v4, %v6358_v23  ;;  %v9422_v6 = vpop.f32.mrb[148].mxu1  ;;  %v6583_v56 = vsel %vm6519_vm4, %v6391_v28, %v6551_v43 }
 0x5eb   : > { %v6554_v58 = vmul.f32 0.1, %v6394_v51  ;;  %v6361_v45 = vmul.f32 %v9422_v6, %v12525_v2  ;;  %v6200_v53 = vpop.f32.mrb[149].mxu1  ;;  %9464 = vmatprep.mubr.msk.f32.mxu1 %vm582_vm1, %v6583_v56  ;;  %vm6522_vm7 = vcmp.ge.f32.partialorder %v6394_v51, 0.0 }
 0x5ec   : > { %v6553_v40 = vmul.f32 0.1, %v6393_v33  ;;  %v6360_v21 = vmul.f32 %v12525_v2, %v6200_v53  ;;  %9465 = vmatmul.mubr.msk.f32.gmra.mrb[176].mxu1 %vm582_vm1, %v6584_v20  ;;  %vm6521_vm6 = vcmp.ge.f32.partialorder %v6393_v33, 0.0 }
 0x5ed   : > { %v6396_v47 = vadd.f32 %v12531_v4, %v6361_v45  ;;  %v6586_v24 = vsel %vm6522_vm7, %v6394_v51, %v6554_v58 }
 0x5ee   : > { %v6395_v8 = vadd.f32 %v12531_v4, %v6360_v21  ;;  %v9425_v1 = vpop.f32.mrb[150].mxu1  ;;  %v6585_v54 = vsel %vm6521_vm6, %v6393_v33, %v6553_v40 }
 0x5ef   : > { %v6556_v60 = vmul.f32 0.1, %v6396_v47  ;;  %v6363_v37 = vmul.f32 %v9425_v1, %v12525_v2  ;;  %v6210_v12 = vpop.f32.mrb[151].mxu1  ;;  %9467 = vmatprep.mubr.msk.f32.mxu1 %vm582_vm1, %v6585_v54  ;;  %vm6524_vm9 = vcmp.ge.f32.partialorder %v6396_v47, 0.0  ;;  %v6266_v54 = vmul.f32 %v12224_v57, %v12467_v35  ;;  %v12625_v35 = vld [vmem:[%s13057_s12] ss:$0 sm:$0xff] }
 0x5f0   : > { %v6555_v52 = vmul.f32 0.1, %v6395_v8  ;;  %v6362_v28 = vmul.f32 %v12525_v2, %v6210_v12  ;;  %9468 = vmatmul.mubr.msk.f32.gmra.mrb[178].mxu1 %vm582_vm1, %v6586_v24  ;;  %vm6523_vm8 = vcmp.ge.f32.partialorder %v6395_v8, 0.0 }
 0x5f1   : > { %v6398_v61 = vadd.f32 %v12531_v4, %v6363_v37  ;;  %v6588_v23 = vsel %vm6524_vm9, %v6396_v47, %v6556_v60 }
 0x5f2   : > { %v6397_v44 = vadd.f32 %v12531_v4, %v6362_v28  ;;  %v9428_v19 = vpop.f32.mrb[152].mxu1  ;;  %v6587_v50 = vsel %vm6523_vm8, %v6395_v8, %v6555_v52 }
 0x5f3   : > { %v6558_v55 = vmul.f32 0.1, %v6398_v61  ;;  %v6365_v13 = vmul.f32 %v9428_v19, %v12525_v2  ;;  %v6220_v43 = vpop.f32.mrb[153].mxu1  ;;  %9470 = vmatprep.mubr.msk.f32.mxu1 %vm582_vm1, %v6587_v50  ;;  %vm6526_vm11 = vcmp.ge.f32.partialorder %v6398_v61, 0.0  ;;  %v6267_v50 = vmul.f32 %v12625_v35, %v12465_v36  ;;  %v12641_v36 = vld [vmem:[%s13058_s13] ss:$0 sm:$0xff] }
 0x5f4   : > { %v6557_v51 = vmul.f32 0.1, %v6397_v44  ;;  %v6364_v33 = vmul.f32 %v12525_v2, %v6220_v43  ;;  %9471 = vmatmul.mubr.msk.f32.gmra.mrb[180].mxu1 %vm582_vm1, %v6588_v23  ;;  %vm6525_vm10 = vcmp.ge.f32.partialorder %v6397_v44, 0.0 }
 0x5f5   : > { %v6400_v6 = vadd.f32 %v12531_v4, %v6365_v13  ;;  %v6590_v21 = vsel %vm6526_vm11, %v6398_v61, %v6558_v55  ;;  %v6305_v55 = vadd.f32 %v12239_v34, %v6266_v54  ;;  %v6270_v54 = vmul.f32 %v12625_v35, %v12475_v17 }
 0x5f6   : > { %v6399_v56 = vadd.f32 %v12531_v4, %v6364_v33  ;;  %v9431_v58 = vpop.f32.mrb[154].mxu1  ;;  %v6589_v45 = vsel %vm6525_vm10, %v6397_v44, %v6557_v51  ;;  %v6268_v51 = vmul.f32 %v12625_v35, %v12471_v26  ;;  %v6306_v26 = vadd.f32 %v12641_v36, %v6267_v50 }
 0x5f7   : > { %v6560_v53 = vmul.f32 0.1, %v6400_v6  ;;  %v6367_v20 = vmul.f32 %v9431_v58, %v12525_v2  ;;  %v6230_v40 = vpop.f32.mrb[155].mxu1  ;;  %9473 = vmatprep.mubr.msk.f32.mxu1 %vm582_vm1, %v6589_v45  ;;  %vm6528_vm13 = vcmp.ge.f32.partialorder %v6400_v6, 0.0  ;;  %vm6407_vm5 = vcmp.ge.f32.partialorder %v6305_v55, 0.0 }
 0x5f8   : > { %v6559_v47 = vmul.f32 0.1, %v6399_v56  ;;  %v6366_v8 = vmul.f32 %v12525_v2, %v6230_v40  ;;  %9474 = vmatmul.mubr.msk.f32.gmra.mrb[182].mxu1 %vm582_vm1, %v6590_v21  ;;  %vm6527_vm12 = vcmp.ge.f32.partialorder %v6399_v56, 0.0  ;;  %vm6408_vm6 = vcmp.ge.f32.partialorder %v6306_v26, 0.0 }
 0x5f9   : > { %v6402_v1 = vadd.f32 %v12531_v4, %v6367_v20  ;;  %v6592_v61 = vsel %vm6528_vm13, %v6400_v6, %v6560_v53  ;;  %v6439_v20 = vmul.f32 0.1, %v6305_v55  ;;  %v6309_v17 = vadd.f32 %v12641_v36, %v6270_v54 }
 0x5fa   : > { %v6401_v60 = vadd.f32 %v12531_v4, %v6366_v8  ;;  %v9434_v37 = vpop.f32.mrb[156].mxu1  ;;  %v6591_v12 = vsel %vm6527_vm12, %v6399_v56, %v6559_v47  ;;  %v6307_v47 = vadd.f32 %v12641_v36, %v6268_v51  ;;  %v6281_v54 = vmul.f32 %v12625_v35, %v12493_v62 }
 0x5fb   : > { %v6562_v24 = vmul.f32 0.1, %v6402_v1  ;;  %v6369_v52 = vmul.f32 %v9434_v37, %v12525_v2  ;;  %v6240_v28 = vpop.f32.mrb[157].mxu1  ;;  %9476 = vmatprep.mubr.msk.f32.mxu1 %vm582_vm1, %v6591_v12  ;;  %vm6530_vm15 = vcmp.ge.f32.partialorder %v6402_v1, 0.0  ;;  %v6440_v37 = vmul.f32 0.1, %v6306_v26 }
 0x5fc   : > { %v6561_v44 = vmul.f32 0.1, %v6401_v60  ;;  %v6368_v19 = vmul.f32 %v12525_v2, %v6240_v28  ;;  %9477 = vmatmul.mubr.msk.f32.gmra.mrb[184].mxu1 %vm582_vm1, %v6592_v61  ;;  %vm6529_vm14 = vcmp.ge.f32.partialorder %v6401_v60, 0.0  ;;  %v6271_v12 = vmul.f32 %v12625_v35, %v12473_v11 }
 0x5fd   : > { %v6404_v57 = vadd.f32 %v12531_v4, %v6369_v52  ;;  %v6594_v58 = vsel %vm6530_vm15, %v6402_v1, %v6562_v24  ;;  %v6441_v52 = vmul.f32 0.1, %v6307_v47  ;;  %v6272_v28 = vmul.f32 %v12625_v35, %v12479_v14 }
 0x5fe   : > { %v6403_v13 = vadd.f32 %v12531_v4, %v6368_v19  ;;  %v9437_v43 = vpop.f32.mrb[158].mxu1  ;;  %v6593_v23 = vsel %vm6529_vm14, %v6401_v60, %v6561_v44  ;;  %v6471_v61 = vsel %vm6407_vm5, %v6305_v55, %v6439_v20  ;;  %vm6409_vm7 = vcmp.ge.f32.partialorder %v6307_v47, 0.0 }
 0x5ff   : > { %v6564_v33 = vmul.f32 0.1, %v6404_v57  ;;  %v6371_v6 = vmul.f32 %v9437_v43, %v12525_v2  ;;  %v6250_v56 = vpop.f32.mrb[159].mxu1  ;;  %9479 = vmatprep.mubr.msk.f32.mxu1 %vm582_vm1, %v6593_v23  ;;  %vm6532_vm2 = vcmp.ge.f32.partialorder %v6404_v57, 0.0  ;;  %v6273_v44 = vmul.f32 %v12625_v35, %v12477_v10 }
 0x600   : > { %v6563_v45 = vmul.f32 0.1, %v6403_v13  ;;  %v6370_v53 = vmul.f32 %v12525_v2, %v6250_v56  ;;  %9480 = vmatmul.mubr.msk.f32.gmra.mrb[186].mxu1 %vm582_vm1, %v6594_v58  ;;  %vm6531_vm0 = vcmp.ge.f32.partialorder %v6403_v13, 0.0  ;;  %v6269_v2 = vmul.f32 %v12625_v35, %v12469_v39 }
 0x601   : > { %v6406_v34 = vadd.f32 %v12531_v4, %v6371_v6  ;;  %v6596_v1 = vsel %vm6532_vm2, %v6404_v57, %v6564_v33  ;;  %v6472_v19 = vsel %vm6408_vm6, %v6306_v26, %v6440_v37  ;;  %v6310_v57 = vadd.f32 %v12641_v36, %v6271_v12 }
 0x602   : > { %v6405_v40 = vadd.f32 %v12531_v4, %v6370_v53  ;;  %v6595_v21 = vsel %vm6531_vm0, %v6403_v13, %v6563_v45  ;;  %v6308_v39 = vadd.f32 %v12641_v36, %v6269_v2  ;;  %v6443_v50 = vmul.f32 0.1, %v6309_v17 }
 0x603   : > { %v6566_v8 = vmul.f32 0.1, %v6406_v34  ;;  %9482 = vmatprep.mubr.msk.f32.mxu1 %vm582_vm1, %v6595_v21  ;;  %vm6534_vm4 = vcmp.ge.f32.partialorder %v6406_v34, 0.0  ;;  %v6311_v13 = vadd.f32 %v12641_v36, %v6272_v28  ;;  %v6274_v14 = vmul.f32 %v12625_v35, %v12483_v48 }
 0x604   : > { %v6565_v60 = vmul.f32 0.1, %v6405_v40  ;;  %9483 = vmatmul.mubr.msk.f32.gmra.mrb[188].mxu1 %vm582_vm1, %v6596_v1  ;;  %vm6533_vm3 = vcmp.ge.f32.partialorder %v6405_v40, 0.0  ;;  %v6442_v11 = vmul.f32 0.1, %v6308_v39  ;;  %vm6410_vm8 = vcmp.ge.f32.partialorder %v6308_v39, 0.0 }
 0x605   : > { %v6598_v24 = vsel %vm6534_vm4, %v6406_v34, %v6566_v8  ;;  %v6473_v55 = vsel %vm6409_vm7, %v6307_v47, %v6441_v52  ;;  %vm6411_vm9 = vcmp.ge.f32.partialorder %v6309_v17, 0.0  ;;  %v6312_v43 = vadd.f32 %v12641_v36, %v6273_v44 }
 0x606   : > { %v6597_v4 = vsel %vm6533_vm3, %v6405_v40, %v6565_v60  ;;  %v6444_v10 = vmul.f32 0.1, %v6310_v57  ;;  %v6275_v23 = vmul.f32 %v12625_v35, %v12481_v7  ;;  %v6474_v51 = vsel %vm6410_vm8, %v6308_v39, %v6442_v11 }
 0x607   : > { %9485 = vmatprep.mubr.msk.f32.mxu1 %vm582_vm1, %v6597_v4  ;;  %vm6412_vm10 = vcmp.ge.f32.partialorder %v6310_v57, 0.0  ;;  %v6445_v33 = vmul.f32 0.1, %v6311_v13  ;;  %v6313_v6 = vadd.f32 %v12641_v36, %v6274_v14  ;;  %v6276_v48 = vmul.f32 %v12625_v35, %v12487_v18 }
 0x608   : > { %9486 = vmatmul.mubr.msk.f32.gmra.mrb[190].mxu1 %vm582_vm1, %v6598_v24  ;;  %v6475_v56 = vsel %vm6411_vm9, %v6309_v17, %v6443_v50  ;;  %vm6413_vm11 = vcmp.ge.f32.partialorder %v6311_v13, 0.0  ;;  %v6446_v58 = vmul.f32 0.1, %v6312_v43  ;;  %v6314_v45 = vadd.f32 %v12641_v36, %v6275_v23 }
 0x609   : > { %9490 = vmatprep.mubr.msk.f32.mxu1 %vm582_vm1, %v6471_v61  ;;  %v6277_v7 = vmul.f32 %v12625_v35, %v12485_v59  ;;  %v6476_v53 = vsel %vm6412_vm10, %v6310_v57, %v6444_v10  ;;  %vm6414_vm12 = vcmp.ge.f32.partialorder %v6312_v43, 0.0  ;;  %v6447_v34 = vmul.f32 0.1, %v6313_v6 }
 0x60a   : > { %v6315_v26 = vadd.f32 %v12641_v36, %v6276_v48  ;;  %v6278_v18 = vmul.f32 %v12625_v35, %v12491_v63  ;;  %v6477_v20 = vsel %vm6413_vm11, %v6311_v13, %v6445_v33  ;;  %vm6415_vm13 = vcmp.ge.f32.partialorder %v6313_v6, 0.0 }
 0x60b   : > { %v6478_v40 = vsel %vm6414_vm12, %v6312_v43, %v6446_v58  ;;  %v6448_v21 = vmul.f32 0.1, %v6314_v45  ;;  %v6316_v2 = vadd.f32 %v12641_v36, %v6277_v7  ;;  %v6279_v59 = vmul.f32 %v12625_v35, %v12489_v31 }
 0x60c   : > { %9491 = vmatmul.mubr.msk.f32.vlgmr.msra.gmra.mrb[160].mxu1 %vm582_vm1, %v6472_v19  ;;  %vm6416_vm14 = vcmp.ge.f32.partialorder %v6314_v45, 0.0  ;;  %v6449_v47 = vmul.f32 0.1, %v6315_v26  ;;  %v6317_v8 = vadd.f32 %v12641_v36, %v6278_v18  ;;  %v6280_v63 = vmul.f32 %v12625_v35, %v12495_v16 }
 0x60d   : > { %9493 = vmatprep.mubr.msk.f32.mxu1 %vm582_vm1, %v6473_v55  ;;  %v6479_v1 = vsel %vm6415_vm13, %v6313_v6, %v6447_v34  ;;  %vm6417_vm15 = vcmp.ge.f32.partialorder %v6315_v26, 0.0  ;;  %v6450_v60 = vmul.f32 0.1, %v6316_v2  ;;  %v6318_v4 = vadd.f32 %v12641_v36, %v6279_v59 }
 0x60e   : > { %v6480_v31 = vsel %vm6416_vm14, %v6314_v45, %v6448_v21  ;;  %vm6418_vm0 = vcmp.ge.f32.partialorder %v6316_v2, 0.0  ;;  %v6451_v37 = vmul.f32 0.1, %v6317_v8  ;;  %v6319_v39 = vadd.f32 %v12641_v36, %v6280_v63 }
 0x60f   : > { %v6282_v16 = vmul.f32 %v12625_v35, %v12499_v32  ;;  %v6481_v12 = vsel %vm6417_vm15, %v6315_v26, %v6449_v47  ;;  %vm6419_vm2 = vcmp.ge.f32.partialorder %v6317_v8, 0.0  ;;  %v6320_v24 = vadd.f32 %v12641_v36, %v6281_v54 }
 0x610   : > { %9494 = vmatmul.mubr.msk.f32.gmra.mrb[162].mxu1 %vm582_vm1, %v6474_v51  ;;  %v6452_v62 = vmul.f32 0.1, %v6318_v4  ;;  %v6283_v52 = vmul.f32 %v12625_v35, %v12497_v30  ;;  %v6482_v17 = vsel %vm6418_vm0, %v6316_v2, %v6450_v60  ;;  %vm6420_vm3 = vcmp.ge.f32.partialorder %v6318_v4, 0.0 }
 0x611   : > { %9496 = vmatprep.mubr.msk.f32.mxu1 %vm582_vm1, %v6475_v56  ;;  %v6453_v28 = vmul.f32 0.1, %v6319_v39  ;;  %v6321_v61 = vadd.f32 %v12641_v36, %v6282_v16  ;;  %v6284_v32 = vmul.f32 %v12625_v35, %v12503_v41  ;;  %v6483_v44 = vsel %vm6419_vm2, %v6317_v8, %v6451_v37 }
 0x612   : > { %vm6421_vm4 = vcmp.ge.f32.partialorder %v6319_v39, 0.0  ;;  %v6454_v19 = vmul.f32 0.1, %v6320_v24  ;;  %v6322_v11 = vadd.f32 %v12641_v36, %v6283_v52  ;;  %v6285_v30 = vmul.f32 %v12625_v35, %v12501_v3 }
 0x613   : > { %v6484_v57 = vsel %vm6420_vm3, %v6318_v4, %v6452_v62  ;;  %vm6422_vm5 = vcmp.ge.f32.partialorder %v6320_v24, 0.0  ;;  %v6455_v50 = vmul.f32 0.1, %v6321_v61  ;;  %v6323_v13 = vadd.f32 %v12641_v36, %v6284_v32 }
 0x614   : > { %9497 = vmatmul.mubr.msk.f32.gmra.mrb[164].mxu1 %vm582_vm1, %v6476_v53  ;;  %v6286_v41 = vmul.f32 %v12625_v35, %v12507_v5  ;;  %v6485_v14 = vsel %vm6421_vm4, %v6319_v39, %v6453_v28  ;;  %vm6423_vm6 = vcmp.ge.f32.partialorder %v6321_v61, 0.0  ;;  %v6486_v55 = vsel %vm6422_vm5, %v6320_v24, %v6454_v19 }
 0x615   : > { %9499 = vmatprep.mubr.msk.f32.mxu1 %vm582_vm1, %v6477_v20  ;;  %v6456_v43 = vmul.f32 0.1, %v6322_v11  ;;  %v6324_v10 = vadd.f32 %v12641_v36, %v6285_v30  ;;  %v6287_v3 = vmul.f32 %v12625_v35, %v12505_v49  ;;  %vm6424_vm7 = vcmp.ge.f32.partialorder %v6322_v11, 0.0  ;;  %v12777_v30 = vld [vmem:[%s13061_s16] ss:$0 sm:$0xff] }
 0x616   : > { %v6457_v23 = vmul.f32 0.1, %v6323_v13  ;;  %v6325_v51 = vadd.f32 %v12641_v36, %v6286_v41  ;;  %v6288_v5 = vmul.f32 %v12625_v35, %v12511_v22  ;;  %v6487_v33 = vsel %vm6423_vm6, %v6321_v61, %v6455_v50 }
 0x617   : > { %vm6425_vm8 = vcmp.ge.f32.partialorder %v6323_v13, 0.0  ;;  %v6289_v6 = vmul.f32 %v12625_v35, %v12509_v38  ;;  %v6458_v48 = vmul.f32 0.1, %v6324_v10  ;;  %v6326_v56 = vadd.f32 %v12641_v36, %v6287_v3 }
 0x618   : > { %9500 = vmatmul.mubr.msk.f32.gmra.mrb[166].mxu1 %vm582_vm1, %v6478_v40  ;;  %v6488_v49 = vsel %vm6424_vm7, %v6322_v11, %v6456_v43  ;;  %vm6426_vm9 = vcmp.ge.f32.partialorder %v6324_v10, 0.0  ;;  %v6459_v58 = vmul.f32 0.1, %v6325_v51  ;;  %v6327_v45 = vadd.f32 %v12641_v36, %v6288_v5 }
 0x619   : > { %9502 = vmatprep.mubr.msk.f32.mxu1 %vm582_vm1, %v6479_v1  ;;  %v6290_v22 = vmul.f32 %v12625_v35, %v12515_v9  ;;  %v6489_v7 = vsel %vm6425_vm8, %v6323_v13, %v6457_v23  ;;  %vm6427_vm10 = vcmp.ge.f32.partialorder %v6325_v51, 0.0  ;;  %v6328_v53 = vadd.f32 %v12641_v36, %v6289_v6 }
 0x61a   : > { %v6460_v38 = vmul.f32 0.1, %v6326_v56  ;;  %v6291_v34 = vmul.f32 %v12625_v35, %v12513_v0  ;;  %v6490_v26 = vsel %vm6426_vm9, %v6324_v10, %v6458_v48  ;;  %vm6428_vm11 = vcmp.ge.f32.partialorder %v6326_v56, 0.0 }
 0x61b   : > { %v6461_v18 = vmul.f32 0.1, %v6327_v45  ;;  %v6329_v20 = vadd.f32 %v12641_v36, %v6290_v22  ;;  %v6292_v9 = vmul.f32 %v12625_v35, %v12519_v46  ;;  %v6491_v40 = vsel %vm6427_vm10, %v6325_v51, %v6459_v58 }
 0x61c   : > { %9503 = vmatmul.mubr.msk.f32.gmra.mrb[168].mxu1 %vm582_vm1, %v6480_v31  ;;  %vm6429_vm12 = vcmp.ge.f32.partialorder %v6327_v45, 0.0  ;;  %v6462_v21 = vmul.f32 0.1, %v6328_v53  ;;  %v6330_v2 = vadd.f32 %v12641_v36, %v6291_v34  ;;  %v6293_v0 = vmul.f32 %v12625_v35, %v12517_v29 }
 0x61d   : > { %9505 = vmatprep.mubr.msk.f32.mxu1 %vm582_vm1, %v6481_v12  ;;  %v6492_v59 = vsel %vm6428_vm11, %v6326_v56, %v6460_v38  ;;  %vm6430_vm13 = vcmp.ge.f32.partialorder %v6328_v53, 0.0  ;;  %v6463_v47 = vmul.f32 0.1, %v6329_v20  ;;  %v6331_v8 = vadd.f32 %v12641_v36, %v6292_v9 }
 0x61e   : > { %v6294_v46 = vmul.f32 %v12625_v35, %v12523_v25  ;;  %v6493_v63 = vsel %vm6429_vm12, %v6327_v45, %v6461_v18  ;;  %vm6431_vm14 = vcmp.ge.f32.partialorder %v6329_v20, 0.0  ;;  %v6494_v1 = vsel %vm6430_vm13, %v6328_v53, %v6462_v21 }
 0x61f   : > { %v6464_v54 = vmul.f32 0.1, %v6330_v2  ;;  %v6332_v60 = vadd.f32 %v12641_v36, %v6293_v0  ;;  %v6295_v29 = vmul.f32 %v12625_v35, %v12521_v15  ;;  %vm6432_vm15 = vcmp.ge.f32.partialorder %v6330_v2, 0.0 }
 0x620   : > { %9506 = vmatmul.mubr.msk.f32.gmra.mrb[170].mxu1 %vm582_vm1, %v6482_v17  ;;  %v6465_v4 = vmul.f32 0.1, %v6331_v8  ;;  %v6333_v31 = vadd.f32 %v12641_v36, %v6294_v46  ;;  %v6296_v25 = vmul.f32 %v12625_v35, %v12529_v27  ;;  %v6495_v37 = vsel %vm6431_vm14, %v6329_v20, %v6463_v47 }
 0x621   : > { %9508 = vmatprep.mubr.msk.f32.mxu1 %vm582_vm1, %v6483_v44  ;;  %vm6433_vm0 = vcmp.ge.f32.partialorder %v6331_v8, 0.0  ;;  %v6466_v39 = vmul.f32 0.1, %v6332_v60  ;;  %v6334_v16 = vadd.f32 %v12641_v36, %v6295_v29  ;;  %v6297_v12 = vmul.f32 %v12625_v35, %v12527_v42 }
 0x622   : > { %v6496_v15 = vsel %vm6432_vm15, %v6330_v2, %v6464_v54  ;;  %v6467_v24 = vmul.f32 0.1, %v6333_v31  ;;  %v6335_v62 = vadd.f32 %v12641_v36, %v6296_v25  ;;  %v6497_v52 = vsel %vm6433_vm0, %v6331_v8, %v6465_v4 }
 0x623   : > { %vm6434_vm2 = vcmp.ge.f32.partialorder %v6332_v60, 0.0  ;;  %vm6435_vm3 = vcmp.ge.f32.partialorder %v6333_v31, 0.0  ;;  %v6468_v27 = vmul.f32 0.1, %v6334_v16  ;;  %v6336_v17 = vadd.f32 %v12641_v36, %v6297_v12  ;;  %v12772_v36 = vld [vmem:[%s13060_s15] ss:$0 sm:$0xff] }
 0x624   : > { %9509 = vmatmul.mubr.msk.f32.gmra.mrb[172].mxu1 %vm582_vm1, %v6484_v57  ;;  %v6498_v28 = vsel %vm6434_vm2, %v6332_v60, %v6466_v39  ;;  %v6469_v61 = vmul.f32 0.1, %v6335_v62  ;;  %v6499_v32 = vsel %vm6435_vm3, %v6333_v31, %v6467_v24  ;;  %vm6436_vm4 = vcmp.ge.f32.partialorder %v6334_v16, 0.0 }
 0x625   : > { %9511 = vmatprep.mubr.msk.f32.mxu1 %vm582_vm1, %v6485_v14  ;;  %vm6437_vm5 = vcmp.ge.f32.partialorder %v6335_v62, 0.0  ;;  %v6470_v42 = vmul.f32 0.1, %v6336_v17  ;;  %v6500_v35 = vsel %vm6436_vm4, %v6334_v16, %v6468_v27  ;;  %vm6438_vm6 = vcmp.ge.f32.partialorder %v6336_v17, 0.0 }
 0x626   : > { %v6501_v44 = vsel %vm6437_vm5, %v6335_v62, %v6469_v61 }
 0x627   : > { %v6502_v19 = vsel %vm6438_vm6, %v6336_v17, %v6470_v42 }
 0x628   : > { %9512 = vmatmul.mubr.msk.f32.gmra.mrb[174].mxu1 %vm582_vm1, %v6486_v55 }
 0x629   : > { %9514 = vmatprep.mubr.msk.f32.mxu1 %vm582_vm1, %v6487_v33 }
 0x62c   : > { %9515 = vmatmul.mubr.msk.f32.gmra.mrb[176].mxu1 %vm582_vm1, %v6488_v49 }
 0x62d   : > { %9517 = vmatprep.mubr.msk.f32.mxu1 %vm582_vm1, %v6489_v7 }
 0x630   : > { %9518 = vmatmul.mubr.msk.f32.gmra.mrb[178].mxu1 %vm582_vm1, %v6490_v26 }
 0x631   : > { %9520 = vmatprep.mubr.msk.f32.mxu1 %vm582_vm1, %v6491_v40 }
 0x634   : > { %9521 = vmatmul.mubr.msk.f32.gmra.mrb[180].mxu1 %vm582_vm1, %v6492_v59 }
 0x635   : > { %9523 = vmatprep.mubr.msk.f32.mxu1 %vm582_vm1, %v6493_v63 }
 0x638   : > { %9524 = vmatmul.mubr.msk.f32.gmra.mrb[182].mxu1 %vm582_vm1, %v6494_v1 }
 0x639   : > { %9526 = vmatprep.mubr.msk.f32.mxu1 %vm582_vm1, %v6495_v37 }
 0x63c   : > { %9527 = vmatmul.mubr.msk.f32.gmra.mrb[184].mxu1 %vm582_vm1, %v6496_v15 }
 0x63d   : > { %9529 = vmatprep.mubr.msk.f32.mxu1 %vm582_vm1, %v6497_v52 }
 0x640   : > { %9530 = vmatmul.mubr.msk.f32.gmra.mrb[186].mxu1 %vm582_vm1, %v6498_v28 }
 0x641   : > { %9532 = vmatprep.mubr.msk.f32.mxu1 %vm582_vm1, %v6499_v32 }
 0x644   : > { %9533 = vmatmul.mubr.msk.f32.gmra.mrb[188].mxu1 %vm582_vm1, %v6500_v35 }
 0x645   : > { %9535 = vmatprep.mubr.msk.f32.mxu1 %vm582_vm1, %v6501_v44 }
 0x648   : > { %9536 = vmatmul.mubr.msk.f32.gmra.mrb[190].mxu1 %vm582_vm1, %v6502_v19  ;;  %vm7551_vm1 = vcmask 64512  }
 0x6df   : > { %v9492_v11 = vpop.f32.mrb[160].mxu1 }
 0x6e0   : > { %v7257_v57 = vmul.f32 %v9492_v11, %v12772_v36  ;;  %v7090_v50 = vpop.f32.mrb[161].mxu1 }
 0x6e1   : > { %v7256_v13 = vmul.f32 %v12772_v36, %v7090_v50 }
 0x6e2   : > { %v12782_v41 = vadd.f32 %v12777_v30, %v7257_v57 }
 0x6e3   : > { %v12785_v14 = vadd.f32 %v12777_v30, %v7256_v13  ;;  %v9495_v55 = vpop.f32.mrb[162].mxu1 }
 0x6e4   : > { %v8258_v43 = vmul.f32 -1.442695, %v12782_v41  ;;  %v7259_v10 = vmul.f32 %v9495_v55, %v12772_v36  ;;  %v7100_v3 = vpop.f32.mrb[163].mxu1 }
 0x6e5   : > { %v8257_v23 = vmul.f32 -1.442695, %v12785_v14  ;;  %v7258_v51 = vmul.f32 %v12772_v36, %v7100_v3 }
 0x6e6   : > { %10222 = vpow2.f32 %v8258_v43  ;;  %v12792_v5 = vadd.f32 %v12777_v30, %v7259_v10 }
 0x6e7   : > { %10224 = vpow2.f32 %v8257_v23  ;;  %v12795_v33 = vadd.f32 %v12777_v30, %v7258_v51  ;;  %v9498_v6 = vpop.f32.mrb[164].mxu1 }
 0x6e8   : > { %v8260_v48 = vmul.f32 -1.442695, %v12792_v5  ;;  %v7261_v56 = vmul.f32 %v9498_v6, %v12772_v36  ;;  %v7110_v49 = vpop.f32.mrb[165].mxu1 }
 0x6e9   : > { %v8259_v58 = vmul.f32 -1.442695, %v12795_v33  ;;  %v7260_v45 = vmul.f32 %v12772_v36, %v7110_v49 }
 0x6ea   : > { %10226 = vpow2.f32 %v8260_v48  ;;  %v12802_v22 = vadd.f32 %v12777_v30, %v7261_v56 }
 0x6eb   : > { %10228 = vpow2.f32 %v8259_v58  ;;  %v12805_v7 = vadd.f32 %v12777_v30, %v7260_v45  ;;  %v9501_v53 = vpop.f32.mrb[166].mxu1 }
 0x6ec   : > { %v8262_v38 = vmul.f32 -1.442695, %v12802_v22  ;;  %v7263_v34 = vmul.f32 %v9501_v53, %v12772_v36  ;;  %v7120_v26 = vpop.f32.mrb[167].mxu1 }
 0x6ed   : > { %v8261_v18 = vmul.f32 -1.442695, %v12805_v7  ;;  %v7262_v20 = vmul.f32 %v12772_v36, %v7120_v26 }
 0x6ee   : > { %10230 = vpow2.f32 %v8262_v38  ;;  %v12812_v9 = vadd.f32 %v12777_v30, %v7263_v34 }
 0x6ef   : > { %10232 = vpow2.f32 %v8261_v18  ;;  %v12815_v40 = vadd.f32 %v12777_v30, %v7262_v20  ;;  %v9504_v21 = vpop.f32.mrb[168].mxu1 }
 0x6f0   : > { %v10223_v2 = vpop.eup %10222  ;;  %v8264_v0 = vmul.f32 -1.442695, %v12812_v9  ;;  %v7265_v59 = vmul.f32 %v9504_v21, %v12772_v36  ;;  %v7130_v47 = vpop.f32.mrb[169].mxu1 }
 0x6f1   : > { %v10225_v8 = vpop.eup %10224  ;;  %v7424_v46 = vadd.f32 1.0, %v10223_v2  ;;  %v8263_v63 = vmul.f32 -1.442695, %v12815_v40  ;;  %v7264_v1 = vmul.f32 %v12772_v36, %v7130_v47 }
 0x6f2   : > { %v7423_v54 = vadd.f32 1.0, %v10225_v8  ;;  %10234 = vpow2.f32 %v8264_v0  ;;  %v12822_v60 = vadd.f32 %v12777_v30, %v7265_v59 }
 0x6f3   : > { %10236 = vrcp.f32 %v7424_v46  ;;  %v12825_v29 = vadd.f32 %v12777_v30, %v7264_v1  ;;  %v9507_v4 = vpop.f32.mrb[170].mxu1 }
 0x6f4   : > { %v10227_v31 = vpop.eup %10226  ;;  %10238 = vrcp.f32 %v7423_v54  ;;  %v8266_v25 = vmul.f32 -1.442695, %v12822_v60  ;;  %v7267_v37 = vmul.f32 %v9507_v4, %v12772_v36  ;;  %v7140_v39 = vpop.f32.mrb[171].mxu1 }
 0x6f5   : > { %v10229_v16 = vpop.eup %10228  ;;  %v7426_v12 = vadd.f32 1.0, %v10227_v31  ;;  %10240 = vpow2.f32 %v8263_v63  ;;  %v8265_v15 = vmul.f32 -1.442695, %v12825_v29  ;;  %v7266_v24 = vmul.f32 %v12772_v36, %v7140_v39 }
 0x6f6   : > { %v7425_v62 = vadd.f32 1.0, %v10229_v16  ;;  %10242 = vpow2.f32 %v8266_v25  ;;  %v12832_v52 = vadd.f32 %v12777_v30, %v7267_v37 }
 0x6f7   : > { %10244 = vrcp.f32 %v7426_v12  ;;  %v12835_v27 = vadd.f32 %v12777_v30, %v7266_v24  ;;  %v9510_v17 = vpop.f32.mrb[172].mxu1 }
 0x6f8   : > { %v10231_v28 = vpop.eup %10230  ;;  %10246 = vrcp.f32 %v7425_v62  ;;  %v8268_v61 = vmul.f32 -1.442695, %v12832_v52  ;;  %v7269_v32 = vmul.f32 %v9510_v17, %v12772_v36  ;;  %v7150_v42 = vpop.f32.mrb[173].mxu1 }
 0x6f9   : > { %v10233_v35 = vpop.eup %10232  ;;  %v7428_v44 = vadd.f32 1.0, %v10231_v28  ;;  %10248 = vpow2.f32 %v8265_v15  ;;  %v8267_v19 = vmul.f32 -1.442695, %v12835_v27  ;;  %v7268_v11 = vmul.f32 %v12772_v36, %v7150_v42 }
 0x6fa   : > { %v7427_v57 = vadd.f32 1.0, %v10233_v35  ;;  %10250 = vpow2.f32 %v8268_v61  ;;  %v12842_v50 = vadd.f32 %v12777_v30, %v7269_v32 }
 0x6fb   : > { %10252 = vrcp.f32 %v7428_v44  ;;  %v12845_v13 = vadd.f32 %v12777_v30, %v7268_v11  ;;  %v9513_v55 = vpop.f32.mrb[174].mxu1 }
 0x6fc   : > { %v10235_v43 = vpop.eup %10234  ;;  %10254 = vrcp.f32 %v7427_v57  ;;  %v8270_v10 = vmul.f32 -1.442695, %v12842_v50  ;;  %v7271_v3 = vmul.f32 %v9513_v55, %v12772_v36  ;;  %v7160_v23 = vpop.f32.mrb[175].mxu1 }
 0x6fd   : > { %v10237_v51 = vpop.eup %10236  ;;  %v7430_v6 = vadd.f32 1.0, %v10235_v43  ;;  %10256 = vpow2.f32 %v8267_v19  ;;  %v8269_v48 = vmul.f32 -1.442695, %v12845_v13  ;;  %v7270_v56 = vmul.f32 %v12772_v36, %v7160_v23 }
 0x6fe   : > { %v10239_v49 = vpop.eup %10238  ;;  %v7520_v58 = vmul.f32 %v10237_v51, %v12782_v41  ;;  %10258 = vpow2.f32 %v8270_v10  ;;  %v12860_v45 = vadd.f32 %v12777_v30, %v7271_v3 }
 0x6ff   : > { %v10241_v53 = vpop.eup %10240  ;;  %v7519_v38 = vmul.f32 %v10239_v49, %v12785_v14  ;;  %10260 = vrcp.f32 %v7430_v6  ;;  %v12864_v34 = vadd.f32 %v12777_v30, %v7270_v56  ;;  %v9516_v26 = vpop.f32.mrb[176].mxu1 }
 0x700   : > { %v10243_v18 = vpop.eup %10242  ;;  %7553 = vst.msk [vmem:[%s12854_s18 + $0x8] sm:$0xff] %vm7551_vm1, %v7520_v58  ;;  %v7429_v20 = vadd.f32 1.0, %v10241_v53  ;;  %10262 = vpow2.f32 %v8269_v48  ;;  %v8272_v41 = vmul.f32 -1.442695, %v12860_v45  ;;  %v7273_v21 = vmul.f32 %v9516_v26, %v12772_v36  ;;  %v7170_v2 = vpop.f32.mrb[177].mxu1 }
 0x701   : > { %v10245_v0 = vpop.eup %10244  ;;  %7552 = vst.msk [vmem:[%s12854_s18] sm:$0xff] %vm7551_vm1, %v7519_v38  ;;  %v7432_v14 = vadd.f32 1.0, %v10243_v18  ;;  %v8271_v59 = vmul.f32 -1.442695, %v12864_v34  ;;  %v7272_v47 = vmul.f32 %v12772_v36, %v7170_v2 }
 0x702   : > { %v10247_v8 = vpop.eup %10246  ;;  %v7522_v46 = vmul.f32 %v10245_v0, %v12792_v5  ;;  %10264 = vrcp.f32 %v7429_v20  ;;  %v12876_v63 = vadd.f32 %v12777_v30, %v7273_v21 }
 0x703   : > { %v10249_v1 = vpop.eup %10248  ;;  %v7521_v54 = vmul.f32 %v10247_v8, %v12795_v33  ;;  %10266 = vrcp.f32 %v7432_v14  ;;  %v12880_v4 = vadd.f32 %v12777_v30, %v7272_v47  ;;  %v9519_v31 = vpop.f32.mrb[178].mxu1 }
 0x704   : > { %v10251_v25 = vpop.eup %10250  ;;  %7555 = vst.msk [vmem:[%s12854_s18 + $0x18] sm:$0xff] %vm7551_vm1, %v7522_v46  ;;  %v7431_v37 = vadd.f32 1.0, %v10249_v1  ;;  %10268 = vpow2.f32 %v8272_v41  ;;  %v8274_v5 = vmul.f32 -1.442695, %v12876_v63  ;;  %v7275_v39 = vmul.f32 %v9519_v31, %v12772_v36  ;;  %v7180_v16 = vpop.f32.mrb[179].mxu1 }
 0x705   : > { %v10253_v12 = vpop.eup %10252  ;;  %7554 = vst.msk [vmem:[%s12854_s18 + $0x10] sm:$0xff] %vm7551_vm1, %v7521_v54  ;;  %v7434_v33 = vadd.f32 1.0, %v10251_v25  ;;  %10270 = vpow2.f32 %v8271_v59  ;;  %v8273_v15 = vmul.f32 -1.442695, %v12880_v4  ;;  %v7274_v24 = vmul.f32 %v12772_v36, %v7180_v16 }
 0x706   : > { %v10255_v62 = vpop.eup %10254  ;;  %v7524_v17 = vmul.f32 %v10253_v12, %v12802_v22  ;;  %10272 = vrcp.f32 %v7431_v37  ;;  %v12892_v28 = vadd.f32 %v12777_v30, %v7275_v39 }
 0x707   : > { %v10257_v61 = vpop.eup %10256  ;;  %v7523_v32 = vmul.f32 %v10255_v62, %v12805_v7  ;;  %10274 = vrcp.f32 %v7434_v33  ;;  %v12896_v42 = vadd.f32 %v12777_v30, %v7274_v24  ;;  %v9522_v35 = vpop.f32.mrb[180].mxu1 }
 0x708   : > { %v10259_v44 = vpop.eup %10258  ;;  %7557 = vst.msk [vmem:[%s12854_s18 + $0x28] sm:$0xff] %vm7551_vm1, %v7524_v17  ;;  %v7433_v19 = vadd.f32 1.0, %v10257_v61  ;;  %10276 = vpow2.f32 %v8274_v5  ;;  %v8276_v22 = vmul.f32 -1.442695, %v12892_v28  ;;  %v7277_v11 = vmul.f32 %v9522_v35, %v12772_v36  ;;  %v7190_v57 = vpop.f32.mrb[181].mxu1 }
 0x709   : > { %v10261_v55 = vpop.eup %10260  ;;  %7556 = vst.msk [vmem:[%s12854_s18 + $0x20] sm:$0xff] %vm7551_vm1, %v7523_v32  ;;  %v7436_v7 = vadd.f32 1.0, %v10259_v44  ;;  %10278 = vpow2.f32 %v8273_v15  ;;  %v7276_v43 = vmul.f32 %v12772_v36, %v7190_v57  ;;  %v8275_v23 = vmul.f32 -1.442695, %v12896_v42 }
 0x70a   : > { %v10263_v10 = vpop.eup %10262  ;;  %v7526_v3 = vmul.f32 %v10261_v55, %v12812_v9  ;;  %10280 = vrcp.f32 %v7433_v19  ;;  %v12908_v51 = vadd.f32 %v12777_v30, %v7277_v11 }
 0x70b   : > { %10282 = vrcp.f32 %v7436_v7  ;;  %v7435_v6 = vadd.f32 1.0, %v10263_v10  ;;  %v12911_v48 = vadd.f32 %v12777_v30, %v7276_v43  ;;  %v9525_v56 = vpop.f32.mrb[182].mxu1 }
 0x70c   : > { %v10265_v49 = vpop.eup %10264  ;;  %7559 = vst.msk [vmem:[%s12854_s18 + $0x38] sm:$0xff] %vm7551_vm1, %v7526_v3  ;;  %10284 = vpow2.f32 %v8276_v22  ;;  %v8278_v58 = vmul.f32 -1.442695, %v12908_v51  ;;  %v7279_v9 = vmul.f32 %v9525_v56, %v12772_v36  ;;  %v7200_v53 = vpop.f32.mrb[183].mxu1 }
 0x70d   : > { %v10267_v38 = vpop.eup %10266  ;;  %v7525_v26 = vmul.f32 %v10265_v49, %v12815_v40  ;;  %10286 = vrcp.f32 %v7435_v6  ;;  %v8277_v18 = vmul.f32 -1.442695, %v12911_v48  ;;  %v7278_v20 = vmul.f32 %v12772_v36, %v7200_v53 }
 0x70e   : > { %v10269_v41 = vpop.eup %10268  ;;  %v7528_v21 = vmul.f32 %v10267_v38, %v12822_v60  ;;  %10288 = vpow2.f32 %v8275_v23  ;;  %v12922_v2 = vadd.f32 %v12777_v30, %v7279_v9 }
 0x70f   : > { %v10271_v0 = vpop.eup %10270  ;;  %7558 = vst.msk [vmem:[%s12854_s18 + $0x30] sm:$0xff] %vm7551_vm1, %v7525_v26  ;;  %v7438_v14 = vadd.f32 1.0, %v10269_v41  ;;  %10290 = vpow2.f32 %v8278_v58  ;;  %v12927_v59 = vadd.f32 %v12777_v30, %v7278_v20  ;;  %v9528_v40 = vpop.f32.mrb[184].mxu1 }
 0x710   : > { %v10273_v47 = vpop.eup %10272  ;;  %7561 = vst.msk [vmem:[%s12854_s18 + $0x48] sm:$0xff] %vm7551_vm1, %v7528_v21  ;;  %v7437_v8 = vadd.f32 1.0, %v10271_v0  ;;  %10292 = vpow2.f32 %v8277_v18  ;;  %v8280_v60 = vmul.f32 -1.442695, %v12922_v2  ;;  %v7281_v46 = vmul.f32 %v9528_v40, %v12772_v36  ;;  %v7210_v1 = vpop.f32.mrb[185].mxu1 }
 0x711   : > { %v10275_v54 = vpop.eup %10274  ;;  %v7527_v31 = vmul.f32 %v10273_v47, %v12825_v29  ;;  %10294 = vrcp.f32 %v7438_v14  ;;  %v8279_v25 = vmul.f32 -1.442695, %v12927_v59  ;;  %v7280_v37 = vmul.f32 %v12772_v36, %v7210_v1 }
 0x712   : > { %v10277_v5 = vpop.eup %10276  ;;  %v7530_v39 = vmul.f32 %v10275_v54, %v12832_v52  ;;  %10296 = vrcp.f32 %v7437_v8  ;;  %v12938_v16 = vadd.f32 %v12777_v30, %v7281_v46 }
 0x713   : > { %v10279_v12 = vpop.eup %10278  ;;  %7560 = vst.msk [vmem:[%s12854_s18 + $0x40] sm:$0xff] %vm7551_vm1, %v7527_v31  ;;  %v7440_v33 = vadd.f32 1.0, %v10277_v5  ;;  %10298 = vpow2.f32 %v8280_v60  ;;  %v12943_v15 = vadd.f32 %v12777_v30, %v7280_v37  ;;  %v9531_v29 = vpop.f32.mrb[186].mxu1 }
 0x714   : > { %v10281_v24 = vpop.eup %10280  ;;  %7563 = vst.msk [vmem:[%s12854_s18 + $0x58] sm:$0xff] %vm7551_vm1, %v7530_v39  ;;  %v7439_v62 = vadd.f32 1.0, %v10279_v12  ;;  %10300 = vpow2.f32 %v8279_v25  ;;  %v8282_v52 = vmul.f32 -1.442695, %v12938_v16  ;;  %v7283_v17 = vmul.f32 %v9531_v29, %v12772_v36  ;;  %v7220_v61 = vpop.f32.mrb[187].mxu1 }
 0x715   : > { %v10283_v32 = vpop.eup %10282  ;;  %v7529_v35 = vmul.f32 %v10281_v24, %v12835_v27  ;;  %10302 = vrcp.f32 %v7440_v33  ;;  %v8281_v44 = vmul.f32 -1.442695, %v12943_v15  ;;  %v7282_v19 = vmul.f32 %v12772_v36, %v7220_v61 }
 0x716   : > { %v10285_v22 = vpop.eup %10284  ;;  %v7532_v11 = vmul.f32 %v10283_v32, %v12842_v50  ;;  %10304 = vrcp.f32 %v7439_v62  ;;  %v12954_v57 = vadd.f32 %v12777_v30, %v7283_v17 }
 0x717   : > { %v10287_v55 = vpop.eup %10286  ;;  %7562 = vst.msk [vmem:[%s12854_s18 + $0x50] sm:$0xff] %vm7551_vm1, %v7529_v35  ;;  %v7442_v7 = vadd.f32 1.0, %v10285_v22  ;;  %10306 = vpow2.f32 %v8282_v52  ;;  %v12959_v27 = vadd.f32 %v12777_v30, %v7282_v19  ;;  %v9534_v43 = vpop.f32.mrb[188].mxu1 }
 0x718   : > { %v10289_v10 = vpop.eup %10288  ;;  %7565 = vst.msk [vmem:[%s12854_s18 + $0x68] sm:$0xff] %vm7551_vm1, %v7532_v11  ;;  %v7531_v3 = vmul.f32 %v10287_v55, %v12845_v13  ;;  %10308 = vpow2.f32 %v8281_v44  ;;  %v8284_v50 = vmul.f32 -1.442695, %v12954_v57  ;;  %v7285_v23 = vmul.f32 %v9534_v43, %v12772_v36  ;;  %v7230_v6 = vpop.f32.mrb[189].mxu1 }
 0x719   : > { %v10291_v56 = vpop.eup %10290  ;;  %10310 = vrcp.f32 %v7442_v7  ;;  %v7441_v49 = vadd.f32 1.0, %v10289_v10  ;;  %v7284_v58 = vmul.f32 %v12772_v36, %v7230_v6  ;;  %v8283_v38 = vmul.f32 -1.442695, %v12959_v27 }
 0x71a   : > { %v10293_v9 = vpop.eup %10292  ;;  %7564 = vst.msk [vmem:[%s12854_s18 + $0x60] sm:$0xff] %vm7551_vm1, %v7531_v3  ;;  %v7444_v53 = vadd.f32 1.0, %v10291_v56  ;;  %10312 = vpow2.f32 %v8284_v50  ;;  %v12971_v13 = vadd.f32 %v12777_v30, %v7285_v23 }
 0x71b   : > { %v10295_v26 = vpop.eup %10294  ;;  %10314 = vrcp.f32 %v7441_v49  ;;  %v7443_v18 = vadd.f32 1.0, %v10293_v9  ;;  %v12974_v20 = vadd.f32 %v12777_v30, %v7284_v58  ;;  %v9537_v41 = vpop.f32.mrb[190].mxu1 }
 0x71c   : > { %v10297_v21 = vpop.eup %10296  ;;  %v7534_v0 = vmul.f32 %v10295_v26, %v12860_v45  ;;  %10316 = vrcp.f32 %v7444_v53  ;;  %v8286_v14 = vmul.f32 -1.442695, %v12971_v13  ;;  %v7287_v40 = vmul.f32 %v9537_v41, %v12772_v36  ;;  %v7240_v47 = vpop.f32.mrb[191].mxu1 }
 0x71d   : > { %v10299_v8 = vpop.eup %10298  ;;  %v7533_v60 = vmul.f32 %v10297_v21, %v12864_v34  ;;  %10318 = vrcp.f32 %v7443_v18  ;;  %v7286_v46 = vmul.f32 %v12772_v36, %v7240_v47  ;;  %v8285_v45 = vmul.f32 -1.442695, %v12974_v20 }
 0x71e   : > { %v10301_v1 = vpop.eup %10300  ;;  %7567 = vst.msk [vmem:[%s12854_s18 + $0x78] sm:$0xff] %vm7551_vm1, %v7534_v0  ;;  %v7446_v54 = vadd.f32 1.0, %v10299_v8  ;;  %10320 = vpow2.f32 %v8283_v38  ;;  %v12985_v31 = vadd.f32 %v12777_v30, %v7287_v40 }
 0x71f   : > { %v10303_v25 = vpop.eup %10302  ;;  %7566 = vst.msk [vmem:[%s12854_s18 + $0x70] sm:$0xff] %vm7551_vm1, %v7533_v60  ;;  %v7445_v37 = vadd.f32 1.0, %v10301_v1  ;;  %10322 = vpow2.f32 %v8286_v14  ;;  %v12990_v34 = vadd.f32 %v12777_v30, %v7286_v46 }
 0x720   : > { %v10305_v36 = vpop.eup %10304  ;;  %v7536_v5 = vmul.f32 %v10303_v25, %v12876_v63  ;;  %10324 = vrcp.f32 %v7446_v54  ;;  %v8288_v39 = vmul.f32 -1.442695, %v12985_v31 }
 0x721   : > { %v10307_v12 = vpop.eup %10306  ;;  %v7535_v33 = vmul.f32 %v10305_v36, %v12880_v4  ;;  %10326 = vrcp.f32 %v7445_v37  ;;  %v8287_v62 = vmul.f32 -1.442695, %v12990_v34 }
 0x722   : > { %v10309_v29 = vpop.eup %10308  ;;  %7569 = vst.msk [vmem:[%s12854_s18 + $0x88] sm:$0xff] %vm7551_vm1, %v7536_v5  ;;  %v7448_v24 = vadd.f32 1.0, %v10307_v12  ;;  %10328 = vpow2.f32 %v8285_v45 }
 0x723   : > { %v10311_v30 = vpop.eup %10310  ;;  %7568 = vst.msk [vmem:[%s12854_s18 + $0x80] sm:$0xff] %vm7551_vm1, %v7535_v33  ;;  %v7447_v52 = vadd.f32 1.0, %v10309_v29  ;;  %10330 = vpow2.f32 %v8288_v39 }
 0x724   : > { %v10313_v63 = vpop.eup %10312  ;;  %v7538_v17 = vmul.f32 %v10311_v30, %v12892_v28  ;;  %10332 = vrcp.f32 %v7448_v24 }
 0x725   : > { %v10315_v4 = vpop.eup %10314  ;;  %10334 = vrcp.f32 %v7447_v52  ;;  %v7450_v61 = vadd.f32 1.0, %v10313_v63 }
 0x726   : > { %v10317_v32 = vpop.eup %10316  ;;  %7571 = vst.msk [vmem:[%s12854_s18 + $0x98] sm:$0xff] %vm7551_vm1, %v7538_v17  ;;  %v7537_v35 = vmul.f32 %v10315_v4, %v12896_v42  ;;  %10336 = vpow2.f32 %v8287_v62 }
 0x727   : > { %v10319_v44 = vpop.eup %10318  ;;  %v7540_v19 = vmul.f32 %v10317_v32, %v12908_v51  ;;  %10338 = vrcp.f32 %v7450_v61 }
 0x728   : > { %v10321_v22 = vpop.eup %10320  ;;  %7570 = vst.msk [vmem:[%s12854_s18 + $0x90] sm:$0xff] %vm7551_vm1, %v7537_v35  ;;  %v7539_v28 = vmul.f32 %v10319_v44, %v12911_v48 }
 0x729   : > { %v10323_v11 = vpop.eup %10322  ;;  %7573 = vst.msk [vmem:[%s12854_s18 + $0xa8] sm:$0xff] %vm7551_vm1, %v7540_v19  ;;  %v7449_v55 = vadd.f32 1.0, %v10321_v22 }
 0x72a   : > { %v10325_v7 = vpop.eup %10324  ;;  %7572 = vst.msk [vmem:[%s12854_s18 + $0xa0] sm:$0xff] %vm7551_vm1, %v7539_v28  ;;  %v7452_v42 = vadd.f32 1.0, %v10323_v11 }
 0x72b   : > { %v10327_v43 = vpop.eup %10326  ;;  %v7542_v10 = vmul.f32 %v10325_v7, %v12922_v2  ;;  %10340 = vrcp.f32 %v7449_v55 }
 0x72c   : > { %v10329_v51 = vpop.eup %10328  ;;  %v7541_v3 = vmul.f32 %v10327_v43, %v12927_v59  ;;  %10342 = vrcp.f32 %v7452_v42 }
 0x72d   : > { %v10331_v48 = vpop.eup %10330  ;;  %7575 = vst.msk [vmem:[%s12854_s18 + $0xb8] sm:$0xff] %vm7551_vm1, %v7542_v10  ;;  %v7451_v50 = vadd.f32 1.0, %v10329_v51 }
 0x72e   : > { %v10333_v23 = vpop.eup %10332  ;;  %7574 = vst.msk [vmem:[%s12854_s18 + $0xb0] sm:$0xff] %vm7551_vm1, %v7541_v3  ;;  %v7454_v6 = vadd.f32 1.0, %v10331_v48 }
 0x72f   : > { %v10335_v56 = vpop.eup %10334  ;;  %v7544_v49 = vmul.f32 %v10333_v23, %v12938_v16  ;;  %10344 = vrcp.f32 %v7451_v50 }
 0x730   : > { %v10337_v2 = vpop.eup %10336  ;;  %v7543_v59 = vmul.f32 %v10335_v56, %v12943_v15  ;;  %10346 = vrcp.f32 %v7454_v6 }
 0x731   : > { %v10339_v58 = vpop.eup %10338  ;;  %7577 = vst.msk [vmem:[%s12854_s18 + $0xc8] sm:$0xff] %vm7551_vm1, %v7544_v49  ;;  %v7453_v9 = vadd.f32 1.0, %v10337_v2 }
 0x732   : > { %7576 = vst.msk [vmem:[%s12854_s18 + $0xc0] sm:$0xff] %vm7551_vm1, %v7543_v59  ;;  %v7546_v53 = vmul.f32 %v10339_v58, %v12954_v57 }
 0x733   : > { %10348 = vrcp.f32 %v7453_v9 }
 0x734   : > { %7579 = vst.msk [vmem:[%s12854_s18 + $0xd8] sm:$0xff] %vm7551_vm1, %v7546_v53 }
 0x735   : > { %v10341_v16 = vpop.eup %10340 }
 0x736   : > { %v10343_v38 = vpop.eup %10342  ;;  %v7545_v26 = vmul.f32 %v10341_v16, %v12959_v27 }
 0x737   : > { %v7548_v15 = vmul.f32 %v10343_v38, %v12971_v13 }
 0x738   : > { %7578 = vst.msk [vmem:[%s12854_s18 + $0xd0] sm:$0xff] %vm7551_vm1, %v7545_v26 }
 0x739   : > { %v10345_v18 = vpop.eup %10344  ;;  %7581 = vst.msk [vmem:[%s12854_s18 + $0xe8] sm:$0xff] %vm7551_vm1, %v7548_v15 }
 0x73a   : > { %v10347_v41 = vpop.eup %10346  ;;  %v7547_v21 = vmul.f32 %v10345_v18, %v12974_v20 }
 0x73b   : > { %v7550_v57 = vmul.f32 %v10347_v41, %v12985_v31 }
 0x73c   : > { %7580 = vst.msk [vmem:[%s12854_s18 + $0xe0] sm:$0xff] %vm7551_vm1, %v7547_v21 }
 0x73d   : > { %v10349_v0 = vpop.eup %10348  ;;  %7583 = vst.msk [vmem:[%s12854_s18 + $0xf8] sm:$0xff] %vm7551_vm1, %v7550_v57 }
 0x73e   : > { %v7549_v14 = vmul.f32 %v10349_v0, %v12990_v34 }
 0x740   : > { %7582 = vst.msk [vmem:[%s12854_s18 + $0xf0] sm:$0xff] %vm7551_vm1, %v7549_v14 }
 0x741 PF: > { %s27_s24 = sadd.s32 1, %s10390_s24  }
 0x742   : > { %p24_p4 = scmp.ge.s32.totalorder %s27_s24, 4  }
 0x744   :  { %26 = sbr.rel (!%p24_p4) target bundleno = 3 (0x3), region = 128 }

</bundles_post_ra>
